<compile_context>
chip_gen: v7x
topology: tpu7x:2x2x1
jax: 0.10.0
libtpu: 0.0.40
codegen_flags: <defaults>
</compile_context>

<pallas_src>
import functools
import math

import jax
import jax.numpy as jnp
from jax.experimental import pallas as pl
from jax.experimental.pallas import tpu as pltpu


# ----------------------------------------------------------------------------
# Tiling helper
# ----------------------------------------------------------------------------
def _pick_tile(dim, cap, align):
    """Largest tile <= cap that is a multiple of `align` and divides `dim`,
    or the full dim when dim <= cap / nothing divides (full-dim blocks are
    always legal)."""
    if dim <= cap:
        return dim
    t = (cap // align) * align
    while t >= align:
        if dim % t == 0:
            return t
        t -= align
    return dim


# ----------------------------------------------------------------------------
# Tiled linear: y = x @ W^T + b  (PyTorch nn.Linear semantics)
# ----------------------------------------------------------------------------
def _matmul_kernel(x_ref, w_ref, b_ref, o_ref, acc_ref, *, activation):
    # x: (tm, tk) activations, w: (tn, tk) weights (PyTorch layout), b: (1, tn)
    @pl.when(pl.program_id(2) == 0)
    def _():
        acc_ref[...] = jnp.zeros_like(acc_ref)

    x = x_ref[...].astype(jnp.bfloat16)
    w = w_ref[...].astype(jnp.bfloat16)
    # Contract K on dim 1 of BOTH operands -> no in-kernel transpose of the weight tile.
    acc_ref[...] += jax.lax.dot_general(
        x, w, dimension_numbers=(((1,), (1,)), ((), ())),
        preferred_element_type=jnp.float32)

    @pl.when(pl.program_id(2) == pl.num_programs(2) - 1)
    def _():
        y = acc_ref[...] + b_ref[...]
        if activation == "gelu":
            y = jax.nn.gelu(y, approximate=True)
        o_ref[...] = y.astype(o_ref.dtype)


def linear(x, w, b, activation=None):
    """y = x @ w.T + b. x: (..., K) f32, w: (N, K) (bf16 or f32), b: (N,) f32."""
    lead = x.shape[:-1]
    K = x.shape[-1]
    N = w.shape[0]
    M = math.prod(lead)
    x2 = x.reshape(M, K)

    tm = _pick_tile(M, 256, 8)
    tn = _pick_tile(N, 512, 128)
    tk = _pick_tile(K, 512, 128)
    grid = (M // tm, N // tn, K // tk)
    # Per-step VMEM (double-buffered tiles + f32 acc) stays well under the
    # v7x 64 MiB / default-scoped budget with these caps.

    y = pl.pallas_call(
        functools.partial(_matmul_kernel, activation=activation),
        out_shape=jax.ShapeDtypeStruct((M, N), jnp.float32),
        grid=grid,
        in_specs=[
            pl.BlockSpec((tm, tk), lambda i, j, k: (i, k)),
            pl.BlockSpec((tn, tk), lambda i, j, k: (j, k)),
            pl.BlockSpec((1, tn), lambda i, j, k: (0, j)),
        ],
        out_specs=pl.BlockSpec((tm, tn), lambda i, j, k: (i, j)),
        scratch_shapes=[pltpu.VMEM((tm, tn), jnp.float32)],
        compiler_params=pltpu.CompilerParams(
            dimension_semantics=("parallel", "parallel", "arbitrary")),
    )(x2, w, b.reshape(1, N))
    return y.reshape(lead + (N,))


# ----------------------------------------------------------------------------
# (residual +) LayerNorm, tiled over rows
# ----------------------------------------------------------------------------
def _layernorm_kernel(*refs, eps, has_residual):
    if has_residual:
        x_ref, r_ref, g_ref, b_ref, o_ref = refs
        x = x_ref[...] + r_ref[...]          # fused residual add (free VPU work)
    else:
        x_ref, g_ref, b_ref, o_ref = refs
        x = x_ref[...]
    mean = jnp.mean(x, axis=-1, keepdims=True)
    xc = x - mean
    var = jnp.mean(xc * xc, axis=-1, keepdims=True)
    y = xc * jax.lax.rsqrt(var + eps)
    o_ref[...] = (y * g_ref[...] + b_ref[...]).astype(o_ref.dtype)


def layernorm(x, g, b, residual=None, eps=1e-12):
    lead = x.shape[:-1]
    H = x.shape[-1]
    M = math.prod(lead)
    tm = _pick_tile(M, 512, 8)

    args = [x.reshape(M, H)]
    in_specs = [pl.BlockSpec((tm, H), lambda i: (i, 0))]
    if residual is not None:
        args.append(residual.reshape(M, H))
        in_specs.append(pl.BlockSpec((tm, H), lambda i: (i, 0)))
    args += [g.reshape(1, H), b.reshape(1, H)]
    in_specs += [pl.BlockSpec((1, H), lambda i: (0, 0)),
                 pl.BlockSpec((1, H), lambda i: (0, 0))]

    y = pl.pallas_call(
        functools.partial(_layernorm_kernel, eps=eps,
                          has_residual=residual is not None),
        out_shape=jax.ShapeDtypeStruct((M, H), jnp.float32),
        grid=(M // tm,),
        in_specs=in_specs,
        out_specs=pl.BlockSpec((tm, H), lambda i: (i, 0)),
        compiler_params=pltpu.CompilerParams(dimension_semantics=("parallel",)),
    )(*args)
    return y.reshape(lead + (H,))


# ----------------------------------------------------------------------------
# Multi-head scaled-dot-product attention (batched over heads inside the kernel)
# ----------------------------------------------------------------------------
def _mha_kernel(q_ref, k_ref, v_ref, mask_ref, o_ref, *rest, scale, return_weights):
    # q: (1, nh, Lq, dh), k/v: (1, nh, Lk, dh), mask: (1, 1, Lk) additive.
    q = q_ref[0].astype(jnp.bfloat16)
    k = k_ref[0].astype(jnp.bfloat16)
    v = v_ref[0].astype(jnp.bfloat16)

    s = jnp.einsum("hqd,hkd->hqk", q, k,
                   preferred_element_type=jnp.float32)          # (nh, Lq, Lk)
    s = s * scale + mask_ref[...]                                # broadcast (1,1,Lk)
    m = jnp.max(s, axis=-1, keepdims=True)
    p = jnp.exp(s - m)
    denom = jnp.sum(p, axis=-1, keepdims=True)
    p = p * pl.reciprocal(denom, approx=True)                    # EUP, off critical path

    o = jnp.einsum("hqk,hkd->hqd", p.astype(jnp.bfloat16), v,
                   preferred_element_type=jnp.float32)           # (nh, Lq, dh)
    o_ref[0] = o.astype(o_ref.dtype)

    if return_weights:
        attn_ref = rest[0]
        attn_ref[0] = jnp.mean(p, axis=0).astype(attn_ref.dtype)  # head-averaged


def multi_head_attention(q, k, v, key_pad_mask, num_heads, return_weights=False):
    """q: (B, Lq, H), k/v: (B, Lk, H), key_pad_mask: (B, Lk) bool (True = pad)."""
    B, Lq, H = q.shape
    Lk = k.shape[1]
    dh = H // num_heads
    scale = 1.0 / math.sqrt(dh)

    def split_heads(t, L):  # (B, L, H) -> (B, nh, L, dh) (cheap XLA reshape/transpose)
        return t.reshape(B, L, num_heads, dh).transpose(0, 2, 1, 3)

    qh, kh, vh = split_heads(q, Lq), split_heads(k, Lk), split_heads(v, Lk)
    add_mask = jnp.where(key_pad_mask, -1e9, 0.0).astype(jnp.float32).reshape(B, 1, Lk)

    o_shape = jax.ShapeDtypeStruct((B, num_heads, Lq, dh), jnp.float32)
    o_spec = pl.BlockSpec((1, num_heads, Lq, dh), lambda b: (b, 0, 0, 0))
    if return_weights:
        out_shape = (o_shape, jax.ShapeDtypeStruct((B, Lq, Lk), jnp.float32))
        out_specs = (o_spec, pl.BlockSpec((1, Lq, Lk), lambda b: (b, 0, 0)))
    else:
        out_shape, out_specs = o_shape, o_spec

    res = pl.pallas_call(
        functools.partial(_mha_kernel, scale=scale, return_weights=return_weights),
        out_shape=out_shape,
        grid=(B,),
        in_specs=[
            pl.BlockSpec((1, num_heads, Lq, dh), lambda b: (b, 0, 0, 0)),
            pl.BlockSpec((1, num_heads, Lk, dh), lambda b: (b, 0, 0, 0)),
            pl.BlockSpec((1, num_heads, Lk, dh), lambda b: (b, 0, 0, 0)),
            pl.BlockSpec((1, 1, Lk), lambda b: (b, 0, 0)),
        ],
        out_specs=out_specs,
        compiler_params=pltpu.CompilerParams(dimension_semantics=("parallel",)),
    )(qh, kh, vh, add_mask)

    if return_weights:
        oh, attn = res
    else:
        oh, attn = res, None
    out = oh.transpose(0, 2, 1, 3).reshape(B, Lq, H)   # merge heads
    return (out, attn) if return_weights else out


# ----------------------------------------------------------------------------
# LabelwiseLinearOutput: (W * x).sum(-1) + b, tiled over classes
# ----------------------------------------------------------------------------
def _labelwise_output_kernel(x_ref, w_ref, b_ref, o_ref):
    x = x_ref[...]                     # (B, tc, H)
    w = w_ref[...]                     # (tc, H)
    o_ref[...] = (jnp.sum(x * w[None, :, :], axis=-1) + b_ref[...]).astype(o_ref.dtype)


def labelwise_linear_output(x, w, b):
    B, C, H = x.shape
    tc = _pick_tile(C, 1024, 128)
    return pl.pallas_call(
        _labelwise_output_kernel,
        out_shape=jax.ShapeDtypeStruct((B, C), jnp.float32),
        grid=(C // tc,),
        in_specs=[
            pl.BlockSpec((B, tc, H), lambda j: (0, j, 0)),
            pl.BlockSpec((tc, H), lambda j: (j, 0)),
            pl.BlockSpec((1, tc), lambda j: (0, j)),
        ],
        out_specs=pl.BlockSpec((B, tc), lambda j: (0, j)),
        compiler_params=pltpu.CompilerParams(dimension_semantics=("parallel",)),
    )(x, w, b.reshape(1, C))


# ----------------------------------------------------------------------------
# Model glue (plain JAX orchestrating the Pallas kernels)
# ----------------------------------------------------------------------------
def bert_encoder(params, input_ids, pad_mask, num_heads):
    B, S = input_ids.shape
    x = jnp.take(params["tok_emb"], input_ids, axis=0) + params["pos_emb"][None, :S, :]
    x = layernorm(x, params["emb_ln_g"], params["emb_ln_b"])
    for lp in params["layers"]:
        qkv = linear(x, lp["wqkv"], lp["bqkv"])              # fused QKV (3H)
        q, k, v = jnp.split(qkv, 3, axis=-1)
        attn_out = multi_head_attention(q, k, v, pad_mask, num_heads,
                                        return_weights=False)   # no (B,S,S) writeback
        attn_out = linear(attn_out, lp["wo"], lp["bo"])
        x = layernorm(attn_out, lp["ln1_g"], lp["ln1_b"], residual=x)
        h = linear(x, lp["w1"], lp["b1"], activation="gelu")
        h = linear(h, lp["w2"], lp["b2"])
        x = layernorm(h, lp["ln2_g"], lp["ln2_b"], residual=x)
    return x


def labelwise_multihead_attention(hp, x, pad_mask, num_heads):
    """LabelwiseMultiHeadAttention: query = label embedding matrix (C, H) shared across batch."""
    B, S, H = x.shape
    C = hp["label_q_w"].shape[0]
    in_w, in_b = hp["in_proj_w"], hp["in_proj_b"]
    # Query projection: identical across batch -> compute once, then broadcast.
    q1 = linear(hp["label_q_w"], in_w[:H], in_b[:H])         # (C, H)
    q = jnp.broadcast_to(q1[None, :, :], (B, C, H))
    # Fused K+V projection of x (one HBM read of x instead of two).
    kv = linear(x, in_w[H:], in_b[H:])                        # (B, S, 2H)
    k, v = jnp.split(kv, 2, axis=-1)
    attn_out, attn_w = multi_head_attention(q, k, v, pad_mask, num_heads,
                                            return_weights=True)
    logits = linear(attn_out, hp["out_proj_w"], hp["out_proj_b"])   # (B, C, H)
    return logits, attn_w    # attn_w: (B, C, S), averaged over heads (PyTorch default)


def bert_attention_forward(params, input_ids, *, num_heads=8, pad_token_id=0):
    pad_mask = input_ids == pad_token_id     # True at pad positions (key padding mask)
    x = bert_encoder(params, input_ids, pad_mask, num_heads)          # (B, S, H)
    # post_encoder_dropout(p=0) and eval mode => identity
    logits_rep, attention = labelwise_multihead_attention(params["head"], x, pad_mask, num_heads)
    logits = labelwise_linear_output(logits_rep, params["out_w"], params["out_b"])  # (B, C)
    return {"logits": logits, "attention": attention}


# ----------------------------------------------------------------------------
# Deterministic parameter init (synthetic weights; shapes follow the module)
# ----------------------------------------------------------------------------
def init_params(key, vocab, max_seq, H, C, ffn, n_layers):
    keys = iter(jax.random.split(key, 32 + 8 * n_layers))
    bf = jnp.bfloat16

    def nrm(shape, dtype=jnp.float32, scale=0.02):
        return (scale * jax.random.normal(next(keys), shape)).astype(dtype)

    ones = lambda n: jnp.ones((n,), jnp.float32)
    zeros = lambda n: jnp.zeros((n,), jnp.float32)

    layers = []
    for _ in range(n_layers):
        layers.append(dict(
            wqkv=nrm((3 * H, H), bf), bqkv=zeros(3 * H),       # fused Q/K/V
            wo=nrm((H, H), bf), bo=zeros(H),
            ln1_g=ones(H), ln1_b=zeros(H),
            w1=nrm((ffn, H), bf), b1=zeros(ffn),
            w2=nrm((H, ffn), bf), b2=zeros(H),
            ln2_g=ones(H), ln2_b=zeros(H),
        ))
    head = dict(
        label_q_w=nrm((C, H)),                                  # Q = nn.Linear(H, C).weight
        in_proj_w=nrm((3 * H, H), bf), in_proj_b=zeros(3 * H),
        out_proj_w=nrm((H, H), bf), out_proj_b=zeros(H),
    )
    return dict(
        tok_emb=nrm((vocab, H)),
        pos_emb=nrm((max_seq, H)),
        emb_ln_g=ones(H), emb_ln_b=zeros(H),
        layers=layers,
        head=head,
        out_w=nrm((C, H)), out_b=zeros(C),                      # LabelwiseLinearOutput
    )


if __name__ == "__main__":
    B, S, H, C = 2, 16, 64, 10
    NUM_HEADS = 8
    VOCAB = 100
    FFN = 128
    N_LAYERS = 2
    PAD = 0

    key = jax.random.PRNGKey(0)
    pkey, dkey = jax.random.split(key)
    params = init_params(pkey, VOCAB, S, H, C, FFN, N_LAYERS)

    input_ids = jax.random.randint(dkey, (B, S), 1, VOCAB, dtype=jnp.int32)
    input_ids = input_ids.at[0, 12:].set(PAD)   # trailing padding, exercises the key mask
    input_ids = input_ids.at[1, 10:].set(PAD)

    fwd = jax.jit(functools.partial(bert_attention_forward,
                                    num_heads=NUM_HEADS, pad_token_id=PAD))
    out = fwd(params, input_ids)
    jax.block_until_ready(out)

    assert out["logits"].shape == (B, C)
    assert out["attention"].shape == (B, C, S)
    assert bool(jnp.all(jnp.isfinite(out["logits"])))
    assert bool(jnp.all(jnp.isfinite(out["attention"])))
    print("KERNEL_OK")
</pallas_src>

<mosaic_0001>
module attributes {stable_mosaic.version = 11 : i64} {
  func.func @_layernorm_kernel(%arg0: i32, %arg1: memref<32x64xf32, #tpu.memory_space<vmem>>, %arg2: memref<1x64xf32, #tpu.memory_space<vmem>>, %arg3: memref<1x64xf32, #tpu.memory_space<vmem>>, %arg4: memref<32x64xf32, #tpu.memory_space<vmem>>) attributes {dimension_semantics = [#tpu.dimension_semantics<parallel>], iteration_bounds = array<i64: 1>, scalar_prefetch = 0 : i64, scratch_operands = 0 : i64, tpu.core_type = #tpu.core_type<tc>, window_params = [{transform_indices = @transform_0, window_bounds = array<i64: 32, 64>}, {pipeline_mode = #tpu.pipeline_mode<synchronous>, transform_indices = @transform_1, window_bounds = array<i64: 1, 64>}, {pipeline_mode = #tpu.pipeline_mode<synchronous>, transform_indices = @transform_2, window_bounds = array<i64: 1, 64>}, {transform_indices = @transform_3, window_bounds = array<i64: 32, 64>}]} {
    %c0 = arith.constant 0 : index
    %c0_0 = arith.constant 0 : index
    %0 = vector.load %arg1[%c0, %c0_0] : memref<32x64xf32, #tpu.memory_space<vmem>>, vector<32x64xf32>
    %cst = arith.constant dense<0.000000e+00> : vector<32xf32>
    %1 = vector.multi_reduction <add>, %0, %cst [1] : vector<32x64xf32> to vector<32xf32>
    %2 = vector.shape_cast %1 : vector<32xf32> to vector<32x1xf32>
    %cst_1 = arith.constant 6.400000e+01 : f32
    %3 = vector.broadcast %cst_1 : f32 to vector<32x1xf32>
    %4 = arith.divf %2, %3 : vector<32x1xf32>
    %5 = vector.broadcast %4 : vector<32x1xf32> to vector<32x64xf32>
    %6 = arith.subf %0, %5 : vector<32x64xf32>
    %7 = arith.mulf %6, %6 : vector<32x64xf32>
    %cst_2 = arith.constant dense<0.000000e+00> : vector<32xf32>
    %8 = vector.multi_reduction <add>, %7, %cst_2 [1] : vector<32x64xf32> to vector<32xf32>
    %9 = vector.shape_cast %8 : vector<32xf32> to vector<32x1xf32>
    %cst_3 = arith.constant 6.400000e+01 : f32
    %10 = vector.broadcast %cst_3 : f32 to vector<32x1xf32>
    %11 = arith.divf %9, %10 : vector<32x1xf32>
    %cst_4 = arith.constant 9.99999996E-13 : f32
    %12 = vector.broadcast %cst_4 : f32 to vector<32x1xf32>
    %13 = arith.addf %11, %12 : vector<32x1xf32>
    %14 = math.rsqrt %13 : vector<32x1xf32>
    %15 = vector.broadcast %14 : vector<32x1xf32> to vector<32x64xf32>
    %16 = arith.mulf %6, %15 : vector<32x64xf32>
    %c0_5 = arith.constant 0 : index
    %c0_6 = arith.constant 0 : index
    %17 = vector.load %arg2[%c0_5, %c0_6] : memref<1x64xf32, #tpu.memory_space<vmem>>, vector<1x64xf32>
    %18 = vector.broadcast %17 : vector<1x64xf32> to vector<32x64xf32>
    %19 = arith.mulf %16, %18 : vector<32x64xf32>
    %c0_7 = arith.constant 0 : index
    %c0_8 = arith.constant 0 : index
    %20 = vector.load %arg3[%c0_7, %c0_8] : memref<1x64xf32, #tpu.memory_space<vmem>>, vector<1x64xf32>
    %21 = vector.broadcast %20 : vector<1x64xf32> to vector<32x64xf32>
    %22 = arith.addf %19, %21 : vector<32x64xf32>
    %c0_9 = arith.constant 0 : index
    %c0_10 = arith.constant 0 : index
    %23 = vector.load %arg4[%c0_9, %c0_10] : memref<32x64xf32, #tpu.memory_space<vmem>>, vector<32x64xf32>
    tpu.vector_store %arg4[%c0_9, %c0_10], %22 {strides = array<i32>} : memref<32x64xf32, #tpu.memory_space<vmem>>, vector<32x64xf32>,
    return
  }
  func.func @transform_0(%arg0: i32) -> (i32, i32) {
    %c0_i32 = arith.constant 0 : i32
    %c0_i32_0 = arith.constant 0 : i32
    return %arg0, %c0_i32 : i32, i32
  }
  func.func @transform_1(%arg0: i32) -> (i32, i32) {
    %c0_i32 = arith.constant 0 : i32
    %c0_i32_0 = arith.constant 0 : i32
    %c0_i32_1 = arith.constant 0 : i32
    return %c0_i32, %c0_i32_0 : i32, i32
  }
  func.func @transform_2(%arg0: i32) -> (i32, i32) {
    %c0_i32 = arith.constant 0 : i32
    %c0_i32_0 = arith.constant 0 : i32
    %c0_i32_1 = arith.constant 0 : i32
    return %c0_i32, %c0_i32_0 : i32, i32
  }
  func.func @transform_3(%arg0: i32) -> (i32, i32) {
    %c0_i32 = arith.constant 0 : i32
    %c0_i32_0 = arith.constant 0 : i32
    return %arg0, %c0_i32 : i32, i32
  }
}

module attributes {stable_mosaic.version = 11 : i64} {
  func.func @_matmul_kernel(%arg0: i32, %arg1: i32, %arg2: i32, %arg3: memref<32x64xf32, #tpu.memory_space<vmem>>, %arg4: memref<192x64xbf16, #tpu.memory_space<vmem>>, %arg5: memref<1x192xf32, #tpu.memory_space<vmem>>, %arg6: memref<32x192xf32, #tpu.memory_space<vmem>>, %arg7: memref<32x192xf32, #tpu.memory_space<vmem>>) attributes {dimension_semantics = [#tpu.dimension_semantics<parallel>, #tpu.dimension_semantics<parallel>, #tpu.dimension_semantics<arbitrary>], iteration_bounds = array<i64: 1, 1, 1>, scalar_prefetch = 0 : i64, scratch_operands = 1 : i64, tpu.core_type = #tpu.core_type<tc>, window_params = [{transform_indices = @transform_0, window_bounds = array<i64: 32, 64>}, {transform_indices = @transform_1, window_bounds = array<i64: 192, 64>}, {transform_indices = @transform_2, window_bounds = array<i64: 1, 192>}, {transform_indices = @transform_3, window_bounds = array<i64: 32, 192>}]} {
    %c0_i32 = arith.constant 0 : i32
    %0 = arith.cmpi eq, %arg2, %c0_i32 : i32
    %1 = arith.extui %0 : i1 to i32
    %c0_i32_0 = arith.constant 0 : i32
    %2 = arith.cmpi ne, %1, %c0_i32_0 : i32
    scf.if %2 {
      %cst_10 = arith.constant 0.000000e+00 : f32
      %13 = vector.broadcast %cst_10 : f32 to vector<32x192xf32>
      %c0_11 = arith.constant 0 : index
      %c0_12 = arith.constant 0 : index
      %14 = vector.load %arg7[%c0_11, %c0_12] : memref<32x192xf32, #tpu.memory_space<vmem>>, vector<32x192xf32>
      tpu.vector_store %arg7[%c0_11, %c0_12], %13 {strides = array<i32>} : memref<32x192xf32, #tpu.memory_space<vmem>>, vector<32x192xf32>,
    } else {
    }
    %c0 = arith.constant 0 : index
    %c0_1 = arith.constant 0 : index
    %3 = vector.load %arg3[%c0, %c0_1] : memref<32x64xf32, #tpu.memory_space<vmem>>, vector<32x64xf32>
    %4 = arith.truncf %3 : vector<32x64xf32> to vector<32x64xbf16>
    %c0_2 = arith.constant 0 : index
    %c0_3 = arith.constant 0 : index
    %5 = vector.load %arg4[%c0_2, %c0_3] : memref<192x64xbf16, #tpu.memory_space<vmem>>, vector<192x64xbf16>
    %c0_4 = arith.constant 0 : index
    %c0_5 = arith.constant 0 : index
    %6 = vector.load %arg7[%c0_4, %c0_5] : memref<32x192xf32, #tpu.memory_space<vmem>>, vector<32x192xf32>
    %cst = arith.constant dense<0.000000e+00> : vector<32x192xf32>
    %7 = tpu.matmul %4, %5, %cst {dimension_numbers = #tpu.dot_dimension_numbers<[1], [1], [0], [0], [0, 0, 1, 0], [], []>} : vector<32x64xbf16>, vector<192x64xbf16>, vector<32x192xf32> -> vector<32x192xf32>
    %8 = arith.addf %6, %7 : vector<32x192xf32>
    %c0_6 = arith.constant 0 : index
    %c0_7 = arith.constant 0 : index
    %9 = vector.load %arg7[%c0_6, %c0_7] : memref<32x192xf32, #tpu.memory_space<vmem>>, vector<32x192xf32>
    tpu.vector_store %arg7[%c0_6, %c0_7], %8 {strides = array<i32>} : memref<32x192xf32, #tpu.memory_space<vmem>>, vector<32x192xf32>,
    %c0_i32_8 = arith.constant 0 : i32
    %10 = arith.cmpi eq, %arg2, %c0_i32_8 : i32
    %11 = arith.extui %10 : i1 to i32
    %c0_i32_9 = arith.constant 0 : i32
    %12 = arith.cmpi ne, %11, %c0_i32_9 : i32
    scf.if %12 {
      %c0_10 = arith.constant 0 : index
      %c0_11 = arith.constant 0 : index
      %13 = vector.load %arg7[%c0_10, %c0_11] : memref<32x192xf32, #tpu.memory_space<vmem>>, vector<32x192xf32>
      %c0_12 = arith.constant 0 : index
      %c0_13 = arith.constant 0 : index
      %14 = vector.load %arg5[%c0_12, %c0_13] : memref<1x192xf32, #tpu.memory_space<vmem>>, vector<1x192xf32>
      %15 = vector.broadcast %14 : vector<1x192xf32> to vector<32x192xf32>
      %16 = arith.addf %13, %15 : vector<32x192xf32>
      %c0_14 = arith.constant 0 : index
      %c0_15 = arith.constant 0 : index
      %17 = vector.load %arg6[%c0_14, %c0_15] : memref<32x192xf32, #tpu.memory_space<vmem>>, vector<32x192xf32>
      tpu.vector_store %arg6[%c0_14, %c0_15], %16 {strides = array<i32>} : memref<32x192xf32, #tpu.memory_space<vmem>>, vector<32x192xf32>,
    } else {
    }
    return
  }
  func.func @transform_0(%arg0: i32, %arg1: i32, %arg2: i32) -> (i32, i32) {
    %c0_i32 = arith.constant 0 : i32
    return %arg0, %arg2 : i32, i32
  }
  func.func @transform_1(%arg0: i32, %arg1: i32, %arg2: i32) -> (i32, i32) {
    %c0_i32 = arith.constant 0 : i32
    return %arg1, %arg2 : i32, i32
  }
  func.func @transform_2(%arg0: i32, %arg1: i32, %arg2: i32) -> (i32, i32) {
    %c0_i32 = arith.constant 0 : i32
    %c0_i32_0 = arith.constant 0 : i32
    return %c0_i32, %arg1 : i32, i32
  }
  func.func @transform_3(%arg0: i32, %arg1: i32, %arg2: i32) -> (i32, i32) {
    %c0_i32 = arith.constant 0 : i32
    return %arg0, %arg1 : i32, i32
  }
}

module attributes {stable_mosaic.version = 11 : i64} {
  func.func @_mha_kernel(%arg0: i32, %arg1: memref<1x8x16x8xf32, #tpu.memory_space<vmem>>, %arg2: memref<1x8x16x8xf32, #tpu.memory_space<vmem>>, %arg3: memref<1x8x16x8xf32, #tpu.memory_space<vmem>>, %arg4: memref<1x1x16xf32, #tpu.memory_space<vmem>>, %arg5: memref<1x8x16x8xf32, #tpu.memory_space<vmem>>) attributes {dimension_semantics = [#tpu.dimension_semantics<parallel>], iteration_bounds = array<i64: 2>, scalar_prefetch = 0 : i64, scratch_operands = 0 : i64, tpu.core_type = #tpu.core_type<tc>, window_params = [{transform_indices = @transform_0, window_bounds = array<i64: 1, 8, 16, 8>}, {transform_indices = @transform_1, window_bounds = array<i64: 1, 8, 16, 8>}, {transform_indices = @transform_2, window_bounds = array<i64: 1, 8, 16, 8>}, {transform_indices = @transform_3, window_bounds = array<i64: 1, 1, 16>}, {transform_indices = @transform_4, window_bounds = array<i64: 1, 8, 16, 8>}]} {
    %c0 = arith.constant 0 : index
    %c0_0 = arith.constant 0 : index
    %c0_1 = arith.constant 0 : index
    %c0_2 = arith.constant 0 : index
    %0 = vector.load %arg1[%c0, %c0_0, %c0_1, %c0_2] : memref<1x8x16x8xf32, #tpu.memory_space<vmem>>, vector<1x8x16x8xf32>
    %1 = vector.shape_cast %0 : vector<1x8x16x8xf32> to vector<8x16x8xf32>
    %2 = arith.truncf %1 : vector<8x16x8xf32> to vector<8x16x8xbf16>
    %c0_3 = arith.constant 0 : index
    %c0_4 = arith.constant 0 : index
    %c0_5 = arith.constant 0 : index
    %c0_6 = arith.constant 0 : index
    %3 = vector.load %arg2[%c0_3, %c0_4, %c0_5, %c0_6] : memref<1x8x16x8xf32, #tpu.memory_space<vmem>>, vector<1x8x16x8xf32>
    %4 = vector.shape_cast %3 : vector<1x8x16x8xf32> to vector<8x16x8xf32>
    %5 = arith.truncf %4 : vector<8x16x8xf32> to vector<8x16x8xbf16>
    %c0_7 = arith.constant 0 : index
    %c0_8 = arith.constant 0 : index
    %c0_9 = arith.constant 0 : index
    %c0_10 = arith.constant 0 : index
    %6 = vector.load %arg3[%c0_7, %c0_8, %c0_9, %c0_10] : memref<1x8x16x8xf32, #tpu.memory_space<vmem>>, vector<1x8x16x8xf32>
    %7 = vector.shape_cast %6 : vector<1x8x16x8xf32> to vector<8x16x8xf32>
    %8 = arith.truncf %7 : vector<8x16x8xf32> to vector<8x16x8xbf16>
    "tpu.trace_start"() <{level = 10 : i32, message = "hqd,hkd->hqk"}> : () -> ()
    %cst = arith.constant dense<0.000000e+00> : vector<8x16x16xf32>
    %9 = tpu.matmul %2, %5, %cst {dimension_numbers = #tpu.dot_dimension_numbers<[2], [2], [1], [1], [0, 0, 0, 1, 1, 1], [0], [0]>} : vector<8x16x8xbf16>, vector<8x16x8xbf16>, vector<8x16x16xf32> -> vector<8x16x16xf32>
    "tpu.trace_stop"() : () -> ()
    %cst_11 = arith.constant 0.353553385 : f32
    %10 = vector.broadcast %cst_11 : f32 to vector<8x16x16xf32>
    %11 = arith.mulf %9, %10 : vector<8x16x16xf32>
    %c0_12 = arith.constant 0 : index
    %c0_13 = arith.constant 0 : index
    %c0_14 = arith.constant 0 : index
    %12 = vector.load %arg4[%c0_12, %c0_13, %c0_14] : memref<1x1x16xf32, #tpu.memory_space<vmem>>, vector<1x1x16xf32>
    %13 = vector.broadcast %12 : vector<1x1x16xf32> to vector<8x16x16xf32>
    %14 = arith.addf %11, %13 : vector<8x16x16xf32>
    %cst_15 = arith.constant dense<0xFF800000> : vector<8x16xf32>
    %15 = vector.multi_reduction <maximumf>, %14, %cst_15 [2] : vector<8x16x16xf32> to vector<8x16xf32>
    %16 = vector.shape_cast %15 : vector<8x16xf32> to vector<8x16x1xf32>
    %17 = vector.broadcast %16 : vector<8x16x1xf32> to vector<8x16x16xf32>
    %18 = arith.subf %14, %17 : vector<8x16x16xf32>
    %19 = math.exp %18 : vector<8x16x16xf32>
    %cst_16 = arith.constant dense<0.000000e+00> : vector<8x16xf32>
    %20 = vector.multi_reduction <add>, %19, %cst_16 [2] : vector<8x16x16xf32> to vector<8x16xf32>
    %21 = vector.shape_cast %20 : vector<8x16xf32> to vector<8x16x1xf32>
    %22 = tpu.reciprocal %21 {approx = true} : vector<8x16x1xf32> -> vector<8x16x1xf32>
    %23 = vector.broadcast %22 : vector<8x16x1xf32> to vector<8x16x16xf32>
    %24 = arith.mulf %19, %23 : vector<8x16x16xf32>
    %25 = arith.truncf %24 : vector<8x16x16xf32> to vector<8x16x16xbf16>
    "tpu.trace_start"() <{level = 10 : i32, message = "hqk,hkd->hqd"}> : () -> ()
    %cst_17 = arith.constant dense<0.000000e+00> : vector<8x16x8xf32>
    %26 = tpu.matmul %25, %8, %cst_17 {dimension_numbers = #tpu.dot_dimension_numbers<[2], [1], [1], [2], [0, 0, 0, 1, 1, 2], [0], [0]>} : vector<8x16x16xbf16>, vector<8x16x8xbf16>, vector<8x16x8xf32> -> vector<8x16x8xf32>
    "tpu.trace_stop"() : () -> ()
    %c0_18 = arith.constant 0 : index
    %c0_19 = arith.constant 0 : index
    %c0_20 = arith.constant 0 : index
    %c0_21 = arith.constant 0 : index
    %27 = vector.load %arg5[%c0_18, %c0_19, %c0_20, %c0_21] : memref<1x8x16x8xf32, #tpu.memory_space<vmem>>, vector<1x8x16x8xf32>
    %28 = vector.shape_cast %27 : vector<1x8x16x8xf32> to vector<8x16x8xf32>
    %29 = vector.shape_cast %26 : vector<8x16x8xf32> to vector<1x8x16x8xf32>
    tpu.vector_store %arg5[%c0_18, %c0_19, %c0_20, %c0_21], %29 {strides = array<i32>} : memref<1x8x16x8xf32, #tpu.memory_space<vmem>>, vector<1x8x16x8xf32>,
    return
  }
  func.func @transform_0(%arg0: i32) -> (i32, i32, i32, i32) {
    %c0_i32 = arith.constant 0 : i32
    %c0_i32_0 = arith.constant 0 : i32
    %c0_i32_1 = arith.constant 0 : i32
    %c0_i32_2 = arith.constant 0 : i32
    return %arg0, %c0_i32, %c0_i32_0, %c0_i32_1 : i32, i32, i32, i32
  }
  func.func @transform_1(%arg0: i32) -> (i32, i32, i32, i32) {
    %c0_i32 = arith.constant 0 : i32
    %c0_i32_0 = arith.constant 0 : i32
    %c0_i32_1 = arith.constant 0 : i32
    %c0_i32_2 = arith.constant 0 : i32
    return %arg0, %c0_i32, %c0_i32_0, %c0_i32_1 : i32, i32, i32, i32
  }
  func.func @transform_2(%arg0: i32) -> (i32, i32, i32, i32) {
    %c0_i32 = arith.constant 0 : i32
    %c0_i32_0 = arith.constant 0 : i32
    %c0_i32_1 = arith.constant 0 : i32
    %c0_i32_2 = arith.constant 0 : i32
    return %arg0, %c0_i32, %c0_i32_0, %c0_i32_1 : i32, i32, i32, i32
  }
  func.func @transform_3(%arg0: i32) -> (i32, i32, i32) {
    %c0_i32 = arith.constant 0 : i32
    %c0_i32_0 = arith.constant 0 : i32
    %c0_i32_1 = arith.constant 0 : i32
    return %arg0, %c0_i32, %c0_i32_0 : i32, i32, i32
  }
  func.func @transform_4(%arg0: i32) -> (i32, i32, i32, i32) {
    %c0_i32 = arith.constant 0 : i32
    %c0_i32_0 = arith.constant 0 : i32
    %c0_i32_1 = arith.constant 0 : i32
    %c0_i32_2 = arith.constant 0 : i32
    return %arg0, %c0_i32, %c0_i32_0, %c0_i32_1 : i32, i32, i32, i32
  }
}

module attributes {stable_mosaic.version = 11 : i64} {
  func.func @_matmul_kernel(%arg0: i32, %arg1: i32, %arg2: i32, %arg3: memref<32x64xf32, #tpu.memory_space<vmem>>, %arg4: memref<64x64xbf16, #tpu.memory_space<vmem>>, %arg5: memref<1x64xf32, #tpu.memory_space<vmem>>, %arg6: memref<32x64xf32, #tpu.memory_space<vmem>>, %arg7: memref<32x64xf32, #tpu.memory_space<vmem>>) attributes {dimension_semantics = [#tpu.dimension_semantics<parallel>, #tpu.dimension_semantics<parallel>, #tpu.dimension_semantics<arbitrary>], iteration_bounds = array<i64: 1, 1, 1>, scalar_prefetch = 0 : i64, scratch_operands = 1 : i64, tpu.core_type = #tpu.core_type<tc>, window_params = [{transform_indices = @transform_0, window_bounds = array<i64: 32, 64>}, {transform_indices = @transform_1, window_bounds = array<i64: 64, 64>}, {transform_indices = @transform_2, window_bounds = array<i64: 1, 64>}, {transform_indices = @transform_3, window_bounds = array<i64: 32, 64>}]} {
    %c0_i32 = arith.constant 0 : i32
    %0 = arith.cmpi eq, %arg2, %c0_i32 : i32
    %1 = arith.extui %0 : i1 to i32
    %c0_i32_0 = arith.constant 0 : i32
    %2 = arith.cmpi ne, %1, %c0_i32_0 : i32
    scf.if %2 {
      %cst_10 = arith.constant 0.000000e+00 : f32
      %13 = vector.broadcast %cst_10 : f32 to vector<32x64xf32>
      %c0_11 = arith.constant 0 : index
      %c0_12 = arith.constant 0 : index
      %14 = vector.load %arg7[%c0_11, %c0_12] : memref<32x64xf32, #tpu.memory_space<vmem>>, vector<32x64xf32>
      tpu.vector_store %arg7[%c0_11, %c0_12], %13 {strides = array<i32>} : memref<32x64xf32, #tpu.memory_space<vmem>>, vector<32x64xf32>,
    } else {
    }
    %c0 = arith.constant 0 : index
    %c0_1 = arith.constant 0 : index
    %3 = vector.load %arg3[%c0, %c0_1] : memref<32x64xf32, #tpu.memory_space<vmem>>, vector<32x64xf32>
    %4 = arith.truncf %3 : vector<32x64xf32> to vector<32x64xbf16>
    %c0_2 = arith.constant 0 : index
    %c0_3 = arith.constant 0 : index
    %5 = vector.load %arg4[%c0_2, %c0_3] : memref<64x64xbf16, #tpu.memory_space<vmem>>, vector<64x64xbf16>
    %c0_4 = arith.constant 0 : index
    %c0_5 = arith.constant 0 : index
    %6 = vector.load %arg7[%c0_4, %c0_5] : memref<32x64xf32, #tpu.memory_space<vmem>>, vector<32x64xf32>
    %cst = arith.constant dense<0.000000e+00> : vector<32x64xf32>
    %7 = tpu.matmul %4, %5, %cst {dimension_numbers = #tpu.dot_dimension_numbers<[1], [1], [0], [0], [0, 0, 1, 0], [], []>} : vector<32x64xbf16>, vector<64x64xbf16>, vector<32x64xf32> -> vector<32x64xf32>
    %8 = arith.addf %6, %7 : vector<32x64xf32>
    %c0_6 = arith.constant 0 : index
    %c0_7 = arith.constant 0 : index
    %9 = vector.load %arg7[%c0_6, %c0_7] : memref<32x64xf32, #tpu.memory_space<vmem>>, vector<32x64xf32>
    tpu.vector_store %arg7[%c0_6, %c0_7], %8 {strides = array<i32>} : memref<32x64xf32, #tpu.memory_space<vmem>>, vector<32x64xf32>,
    %c0_i32_8 = arith.constant 0 : i32
    %10 = arith.cmpi eq, %arg2, %c0_i32_8 : i32
    %11 = arith.extui %10 : i1 to i32
    %c0_i32_9 = arith.constant 0 : i32
    %12 = arith.cmpi ne, %11, %c0_i32_9 : i32
    scf.if %12 {
      %c0_10 = arith.constant 0 : index
      %c0_11 = arith.constant 0 : index
      %13 = vector.load %arg7[%c0_10, %c0_11] : memref<32x64xf32, #tpu.memory_space<vmem>>, vector<32x64xf32>
      %c0_12 = arith.constant 0 : index
      %c0_13 = arith.constant 0 : index
      %14 = vector.load %arg5[%c0_12, %c0_13] : memref<1x64xf32, #tpu.memory_space<vmem>>, vector<1x64xf32>
      %15 = vector.broadcast %14 : vector<1x64xf32> to vector<32x64xf32>
      %16 = arith.addf %13, %15 : vector<32x64xf32>
      %c0_14 = arith.constant 0 : index
      %c0_15 = arith.constant 0 : index
      %17 = vector.load %arg6[%c0_14, %c0_15] : memref<32x64xf32, #tpu.memory_space<vmem>>, vector<32x64xf32>
      tpu.vector_store %arg6[%c0_14, %c0_15], %16 {strides = array<i32>} : memref<32x64xf32, #tpu.memory_space<vmem>>, vector<32x64xf32>,
    } else {
    }
    return
  }
  func.func @transform_0(%arg0: i32, %arg1: i32, %arg2: i32) -> (i32, i32) {
    %c0_i32 = arith.constant 0 : i32
    return %arg0, %arg2 : i32, i32
  }
  func.func @transform_1(%arg0: i32, %arg1: i32, %arg2: i32) -> (i32, i32) {
    %c0_i32 = arith.constant 0 : i32
    return %arg1, %arg2 : i32, i32
  }
  func.func @transform_2(%arg0: i32, %arg1: i32, %arg2: i32) -> (i32, i32) {
    %c0_i32 = arith.constant 0 : i32
    %c0_i32_0 = arith.constant 0 : i32
    return %c0_i32, %arg1 : i32, i32
  }
  func.func @transform_3(%arg0: i32, %arg1: i32, %arg2: i32) -> (i32, i32) {
    %c0_i32 = arith.constant 0 : i32
    return %arg0, %arg1 : i32, i32
  }
}

module attributes {stable_mosaic.version = 11 : i64} {
  func.func @_layernorm_kernel(%arg0: i32, %arg1: memref<32x64xf32, #tpu.memory_space<vmem>>, %arg2: memref<32x64xf32, #tpu.memory_space<vmem>>, %arg3: memref<1x64xf32, #tpu.memory_space<vmem>>, %arg4: memref<1x64xf32, #tpu.memory_space<vmem>>, %arg5: memref<32x64xf32, #tpu.memory_space<vmem>>) attributes {dimension_semantics = [#tpu.dimension_semantics<parallel>], iteration_bounds = array<i64: 1>, scalar_prefetch = 0 : i64, scratch_operands = 0 : i64, tpu.core_type = #tpu.core_type<tc>, window_params = [{transform_indices = @transform_0, window_bounds = array<i64: 32, 64>}, {transform_indices = @transform_1, window_bounds = array<i64: 32, 64>}, {pipeline_mode = #tpu.pipeline_mode<synchronous>, transform_indices = @transform_2, window_bounds = array<i64: 1, 64>}, {pipeline_mode = #tpu.pipeline_mode<synchronous>, transform_indices = @transform_3, window_bounds = array<i64: 1, 64>}, {transform_indices = @transform_4, window_bounds = array<i64: 32, 64>}]} {
    %c0 = arith.constant 0 : index
    %c0_0 = arith.constant 0 : index
    %0 = vector.load %arg1[%c0, %c0_0] : memref<32x64xf32, #tpu.memory_space<vmem>>, vector<32x64xf32>
    %c0_1 = arith.constant 0 : index
    %c0_2 = arith.constant 0 : index
    %1 = vector.load %arg2[%c0_1, %c0_2] : memref<32x64xf32, #tpu.memory_space<vmem>>, vector<32x64xf32>
    %2 = arith.addf %0, %1 : vector<32x64xf32>
    %cst = arith.constant dense<0.000000e+00> : vector<32xf32>
    %3 = vector.multi_reduction <add>, %2, %cst [1] : vector<32x64xf32> to vector<32xf32>
    %4 = vector.shape_cast %3 : vector<32xf32> to vector<32x1xf32>
    %cst_3 = arith.constant 6.400000e+01 : f32
    %5 = vector.broadcast %cst_3 : f32 to vector<32x1xf32>
    %6 = arith.divf %4, %5 : vector<32x1xf32>
    %7 = vector.broadcast %6 : vector<32x1xf32> to vector<32x64xf32>
    %8 = arith.subf %2, %7 : vector<32x64xf32>
    %9 = arith.mulf %8, %8 : vector<32x64xf32>
    %cst_4 = arith.constant dense<0.000000e+00> : vector<32xf32>
    %10 = vector.multi_reduction <add>, %9, %cst_4 [1] : vector<32x64xf32> to vector<32xf32>
    %11 = vector.shape_cast %10 : vector<32xf32> to vector<32x1xf32>
    %cst_5 = arith.constant 6.400000e+01 : f32
    %12 = vector.broadcast %cst_5 : f32 to vector<32x1xf32>
    %13 = arith.divf %11, %12 : vector<32x1xf32>
    %cst_6 = arith.constant 9.99999996E-13 : f32
    %14 = vector.broadcast %cst_6 : f32 to vector<32x1xf32>
    %15 = arith.addf %13, %14 : vector<32x1xf32>
    %16 = math.rsqrt %15 : vector<32x1xf32>
    %17 = vector.broadcast %16 : vector<32x1xf32> to vector<32x64xf32>
    %18 = arith.mulf %8, %17 : vector<32x64xf32>
    %c0_7 = arith.constant 0 : index
    %c0_8 = arith.constant 0 : index
    %19 = vector.load %arg3[%c0_7, %c0_8] : memref<1x64xf32, #tpu.memory_space<vmem>>, vector<1x64xf32>
    %20 = vector.broadcast %19 : vector<1x64xf32> to vector<32x64xf32>
    %21 = arith.mulf %18, %20 : vector<32x64xf32>
    %c0_9 = arith.constant 0 : index
    %c0_10 = arith.constant 0 : index
    %22 = vector.load %arg4[%c0_9, %c0_10] : memref<1x64xf32, #tpu.memory_space<vmem>>, vector<1x64xf32>
    %23 = vector.broadcast %22 : vector<1x64xf32> to vector<32x64xf32>
    %24 = arith.addf %21, %23 : vector<32x64xf32>
    %c0_11 = arith.constant 0 : index
    %c0_12 = arith.constant 0 : index
    %25 = vector.load %arg5[%c0_11, %c0_12] : memref<32x64xf32, #tpu.memory_space<vmem>>, vector<32x64xf32>
    tpu.vector_store %arg5[%c0_11, %c0_12], %24 {strides = array<i32>} : memref<32x64xf32, #tpu.memory_space<vmem>>, vector<32x64xf32>,
    return
  }
  func.func @transform_0(%arg0: i32) -> (i32, i32) {
    %c0_i32 = arith.constant 0 : i32
    %c0_i32_0 = arith.constant 0 : i32
    return %arg0, %c0_i32 : i32, i32
  }
  func.func @transform_1(%arg0: i32) -> (i32, i32) {
    %c0_i32 = arith.constant 0 : i32
    %c0_i32_0 = arith.constant 0 : i32
    return %arg0, %c0_i32 : i32, i32
  }
  func.func @transform_2(%arg0: i32) -> (i32, i32) {
    %c0_i32 = arith.constant 0 : i32
    %c0_i32_0 = arith.constant 0 : i32
    %c0_i32_1 = arith.constant 0 : i32
    return %c0_i32, %c0_i32_0 : i32, i32
  }
  func.func @transform_3(%arg0: i32) -> (i32, i32) {
    %c0_i32 = arith.constant 0 : i32
    %c0_i32_0 = arith.constant 0 : i32
    %c0_i32_1 = arith.constant 0 : i32
    return %c0_i32, %c0_i32_0 : i32, i32
  }
  func.func @transform_4(%arg0: i32) -> (i32, i32) {
    %c0_i32 = arith.constant 0 : i32
    %c0_i32_0 = arith.constant 0 : i32
    return %arg0, %c0_i32 : i32, i32
  }
}

module attributes {stable_mosaic.version = 11 : i64} {
  func.func @_matmul_kernel(%arg0: i32, %arg1: i32, %arg2: i32, %arg3: memref<32x128xf32, #tpu.memory_space<vmem>>, %arg4: memref<64x128xbf16, #tpu.memory_space<vmem>>, %arg5: memref<1x64xf32, #tpu.memory_space<vmem>>, %arg6: memref<32x64xf32, #tpu.memory_space<vmem>>, %arg7: memref<32x64xf32, #tpu.memory_space<vmem>>) attributes {dimension_semantics = [#tpu.dimension_semantics<parallel>, #tpu.dimension_semantics<parallel>, #tpu.dimension_semantics<arbitrary>], iteration_bounds = array<i64: 1, 1, 1>, scalar_prefetch = 0 : i64, scratch_operands = 1 : i64, tpu.core_type = #tpu.core_type<tc>, window_params = [{transform_indices = @transform_0, window_bounds = array<i64: 32, 128>}, {transform_indices = @transform_1, window_bounds = array<i64: 64, 128>}, {transform_indices = @transform_2, window_bounds = array<i64: 1, 64>}, {transform_indices = @transform_3, window_bounds = array<i64: 32, 64>}]} {
    %c0_i32 = arith.constant 0 : i32
    %0 = arith.cmpi eq, %arg2, %c0_i32 : i32
    %1 = arith.extui %0 : i1 to i32
    %c0_i32_0 = arith.constant 0 : i32
    %2 = arith.cmpi ne, %1, %c0_i32_0 : i32
    scf.if %2 {
      %cst_10 = arith.constant 0.000000e+00 : f32
      %13 = vector.broadcast %cst_10 : f32 to vector<32x64xf32>
      %c0_11 = arith.constant 0 : index
      %c0_12 = arith.constant 0 : index
      %14 = vector.load %arg7[%c0_11, %c0_12] : memref<32x64xf32, #tpu.memory_space<vmem>>, vector<32x64xf32>
      tpu.vector_store %arg7[%c0_11, %c0_12], %13 {strides = array<i32>} : memref<32x64xf32, #tpu.memory_space<vmem>>, vector<32x64xf32>,
    } else {
    }
    %c0 = arith.constant 0 : index
    %c0_1 = arith.constant 0 : index
    %3 = vector.load %arg3[%c0, %c0_1] : memref<32x128xf32, #tpu.memory_space<vmem>>, vector<32x128xf32>
    %4 = arith.truncf %3 : vector<32x128xf32> to vector<32x128xbf16>
    %c0_2 = arith.constant 0 : index
    %c0_3 = arith.constant 0 : index
    %5 = vector.load %arg4[%c0_2, %c0_3] : memref<64x128xbf16, #tpu.memory_space<vmem>>, vector<64x128xbf16>
    %c0_4 = arith.constant 0 : index
    %c0_5 = arith.constant 0 : index
    %6 = vector.load %arg7[%c0_4, %c0_5] : memref<32x64xf32, #tpu.memory_space<vmem>>, vector<32x64xf32>
    %cst = arith.constant dense<0.000000e+00> : vector<32x64xf32>
    %7 = tpu.matmul %4, %5, %cst {dimension_numbers = #tpu.dot_dimension_numbers<[1], [1], [0], [0], [0, 0, 1, 0], [], []>} : vector<32x128xbf16>, vector<64x128xbf16>, vector<32x64xf32> -> vector<32x64xf32>
    %8 = arith.addf %6, %7 : vector<32x64xf32>
    %c0_6 = arith.constant 0 : index
    %c0_7 = arith.constant 0 : index
    %9 = vector.load %arg7[%c0_6, %c0_7] : memref<32x64xf32, #tpu.memory_space<vmem>>, vector<32x64xf32>
    tpu.vector_store %arg7[%c0_6, %c0_7], %8 {strides = array<i32>} : memref<32x64xf32, #tpu.memory_space<vmem>>, vector<32x64xf32>,
    %c0_i32_8 = arith.constant 0 : i32
    %10 = arith.cmpi eq, %arg2, %c0_i32_8 : i32
    %11 = arith.extui %10 : i1 to i32
    %c0_i32_9 = arith.constant 0 : i32
    %12 = arith.cmpi ne, %11, %c0_i32_9 : i32
    scf.if %12 {
      %c0_10 = arith.constant 0 : index
      %c0_11 = arith.constant 0 : index
      %13 = vector.load %arg7[%c0_10, %c0_11] : memref<32x64xf32, #tpu.memory_space<vmem>>, vector<32x64xf32>
      %c0_12 = arith.constant 0 : index
      %c0_13 = arith.constant 0 : index
      %14 = vector.load %arg5[%c0_12, %c0_13] : memref<1x64xf32, #tpu.memory_space<vmem>>, vector<1x64xf32>
      %15 = vector.broadcast %14 : vector<1x64xf32> to vector<32x64xf32>
      %16 = arith.addf %13, %15 : vector<32x64xf32>
      %c0_14 = arith.constant 0 : index
      %c0_15 = arith.constant 0 : index
      %17 = vector.load %arg6[%c0_14, %c0_15] : memref<32x64xf32, #tpu.memory_space<vmem>>, vector<32x64xf32>
      tpu.vector_store %arg6[%c0_14, %c0_15], %16 {strides = array<i32>} : memref<32x64xf32, #tpu.memory_space<vmem>>, vector<32x64xf32>,
    } else {
    }
    return
  }
  func.func @transform_0(%arg0: i32, %arg1: i32, %arg2: i32) -> (i32, i32) {
    %c0_i32 = arith.constant 0 : i32
    return %arg0, %arg2 : i32, i32
  }
  func.func @transform_1(%arg0: i32, %arg1: i32, %arg2: i32) -> (i32, i32) {
    %c0_i32 = arith.constant 0 : i32
    return %arg1, %arg2 : i32, i32
  }
  func.func @transform_2(%arg0: i32, %arg1: i32, %arg2: i32) -> (i32, i32) {
    %c0_i32 = arith.constant 0 : i32
    %c0_i32_0 = arith.constant 0 : i32
    return %c0_i32, %arg1 : i32, i32
  }
  func.func @transform_3(%arg0: i32, %arg1: i32, %arg2: i32) -> (i32, i32) {
    %c0_i32 = arith.constant 0 : i32
    return %arg0, %arg1 : i32, i32
  }
}

module attributes {stable_mosaic.version = 11 : i64} {
  func.func @_matmul_kernel(%arg0: i32, %arg1: i32, %arg2: i32, %arg3: memref<32x64xf32, #tpu.memory_space<vmem>>, %arg4: memref<128x64xbf16, #tpu.memory_space<vmem>>, %arg5: memref<1x128xf32, #tpu.memory_space<vmem>>, %arg6: memref<32x128xf32, #tpu.memory_space<vmem>>, %arg7: memref<32x128xf32, #tpu.memory_space<vmem>>) attributes {dimension_semantics = [#tpu.dimension_semantics<parallel>, #tpu.dimension_semantics<parallel>, #tpu.dimension_semantics<arbitrary>], iteration_bounds = array<i64: 1, 1, 1>, scalar_prefetch = 0 : i64, scratch_operands = 1 : i64, tpu.core_type = #tpu.core_type<tc>, window_params = [{transform_indices = @transform_0, window_bounds = array<i64: 32, 64>}, {transform_indices = @transform_1, window_bounds = array<i64: 128, 64>}, {transform_indices = @transform_2, window_bounds = array<i64: 1, 128>}, {transform_indices = @transform_3, window_bounds = array<i64: 32, 128>}]} {
    %c0_i32 = arith.constant 0 : i32
    %0 = arith.cmpi eq, %arg2, %c0_i32 : i32
    %1 = arith.extui %0 : i1 to i32
    %c0_i32_0 = arith.constant 0 : i32
    %2 = arith.cmpi ne, %1, %c0_i32_0 : i32
    scf.if %2 {
      %cst_10 = arith.constant 0.000000e+00 : f32
      %13 = vector.broadcast %cst_10 : f32 to vector<32x128xf32>
      %c0_11 = arith.constant 0 : index
      %c0_12 = arith.constant 0 : index
      %14 = vector.load %arg7[%c0_11, %c0_12] : memref<32x128xf32, #tpu.memory_space<vmem>>, vector<32x128xf32>
      tpu.vector_store %arg7[%c0_11, %c0_12], %13 {strides = array<i32>} : memref<32x128xf32, #tpu.memory_space<vmem>>, vector<32x128xf32>,
    } else {
    }
    %c0 = arith.constant 0 : index
    %c0_1 = arith.constant 0 : index
    %3 = vector.load %arg3[%c0, %c0_1] : memref<32x64xf32, #tpu.memory_space<vmem>>, vector<32x64xf32>
    %4 = arith.truncf %3 : vector<32x64xf32> to vector<32x64xbf16>
    %c0_2 = arith.constant 0 : index
    %c0_3 = arith.constant 0 : index
    %5 = vector.load %arg4[%c0_2, %c0_3] : memref<128x64xbf16, #tpu.memory_space<vmem>>, vector<128x64xbf16>
    %c0_4 = arith.constant 0 : index
    %c0_5 = arith.constant 0 : index
    %6 = vector.load %arg7[%c0_4, %c0_5] : memref<32x128xf32, #tpu.memory_space<vmem>>, vector<32x128xf32>
    %cst = arith.constant dense<0.000000e+00> : vector<32x128xf32>
    %7 = tpu.matmul %4, %5, %cst {dimension_numbers = #tpu.dot_dimension_numbers<[1], [1], [0], [0], [0, 0, 1, 0], [], []>} : vector<32x64xbf16>, vector<128x64xbf16>, vector<32x128xf32> -> vector<32x128xf32>
    %8 = arith.addf %6, %7 : vector<32x128xf32>
    %c0_6 = arith.constant 0 : index
    %c0_7 = arith.constant 0 : index
    %9 = vector.load %arg7[%c0_6, %c0_7] : memref<32x128xf32, #tpu.memory_space<vmem>>, vector<32x128xf32>
    tpu.vector_store %arg7[%c0_6, %c0_7], %8 {strides = array<i32>} : memref<32x128xf32, #tpu.memory_space<vmem>>, vector<32x128xf32>,
    %c0_i32_8 = arith.constant 0 : i32
    %10 = arith.cmpi eq, %arg2, %c0_i32_8 : i32
    %11 = arith.extui %10 : i1 to i32
    %c0_i32_9 = arith.constant 0 : i32
    %12 = arith.cmpi ne, %11, %c0_i32_9 : i32
    scf.if %12 {
      %c0_10 = arith.constant 0 : index
      %c0_11 = arith.constant 0 : index
      %13 = vector.load %arg7[%c0_10, %c0_11] : memref<32x128xf32, #tpu.memory_space<vmem>>, vector<32x128xf32>
      %c0_12 = arith.constant 0 : index
      %c0_13 = arith.constant 0 : index
      %14 = vector.load %arg5[%c0_12, %c0_13] : memref<1x128xf32, #tpu.memory_space<vmem>>, vector<1x128xf32>
      %15 = vector.broadcast %14 : vector<1x128xf32> to vector<32x128xf32>
      %16 = arith.addf %13, %15 : vector<32x128xf32>
      %17 = arith.mulf %16, %16 : vector<32x128xf32>
      %18 = arith.mulf %16, %17 : vector<32x128xf32>
      %cst_14 = arith.constant 4.471500e-02 : f32
      %19 = vector.broadcast %cst_14 : f32 to vector<32x128xf32>
      %20 = arith.mulf %19, %18 : vector<32x128xf32>
      %21 = arith.addf %16, %20 : vector<32x128xf32>
      %cst_15 = arith.constant 0.797884583 : f32
      %22 = vector.broadcast %cst_15 : f32 to vector<32x128xf32>
      %23 = arith.mulf %22, %21 : vector<32x128xf32>
      %24 = math.tanh %23 : vector<32x128xf32>
      %cst_16 = arith.constant 1.000000e+00 : f32
      %25 = vector.broadcast %cst_16 : f32 to vector<32x128xf32>
      %26 = arith.addf %25, %24 : vector<32x128xf32>
      %cst_17 = arith.constant 5.000000e-01 : f32
      %27 = vector.broadcast %cst_17 : f32 to vector<32x128xf32>
      %28 = arith.mulf %27, %26 : vector<32x128xf32>
      %29 = arith.mulf %16, %28 : vector<32x128xf32>
      %c0_18 = arith.constant 0 : index
      %c0_19 = arith.constant 0 : index
      %30 = vector.load %arg6[%c0_18, %c0_19] : memref<32x128xf32, #tpu.memory_space<vmem>>, vector<32x128xf32>
      tpu.vector_store %arg6[%c0_18, %c0_19], %29 {strides = array<i32>} : memref<32x128xf32, #tpu.memory_space<vmem>>, vector<32x128xf32>,
    } else {
    }
    return
  }
  func.func @transform_0(%arg0: i32, %arg1: i32, %arg2: i32) -> (i32, i32) {
    %c0_i32 = arith.constant 0 : i32
    return %arg0, %arg2 : i32, i32
  }
  func.func @transform_1(%arg0: i32, %arg1: i32, %arg2: i32) -> (i32, i32) {
    %c0_i32 = arith.constant 0 : i32
    return %arg1, %arg2 : i32, i32
  }
  func.func @transform_2(%arg0: i32, %arg1: i32, %arg2: i32) -> (i32, i32) {
    %c0_i32 = arith.constant 0 : i32
    %c0_i32_0 = arith.constant 0 : i32
    return %c0_i32, %arg1 : i32, i32
  }
  func.func @transform_3(%arg0: i32, %arg1: i32, %arg2: i32) -> (i32, i32) {
    %c0_i32 = arith.constant 0 : i32
    return %arg0, %arg1 : i32, i32
  }
}

module attributes {stable_mosaic.version = 11 : i64} {
  func.func @_matmul_kernel(%arg0: i32, %arg1: i32, %arg2: i32, %arg3: memref<32x64xf32, #tpu.memory_space<vmem>>, %arg4: memref<128x64xbf16, #tpu.memory_space<vmem>>, %arg5: memref<1x128xf32, #tpu.memory_space<vmem>>, %arg6: memref<32x128xf32, #tpu.memory_space<vmem>>, %arg7: memref<32x128xf32, #tpu.memory_space<vmem>>) attributes {dimension_semantics = [#tpu.dimension_semantics<parallel>, #tpu.dimension_semantics<parallel>, #tpu.dimension_semantics<arbitrary>], iteration_bounds = array<i64: 1, 1, 1>, scalar_prefetch = 0 : i64, scratch_operands = 1 : i64, tpu.core_type = #tpu.core_type<tc>, window_params = [{transform_indices = @transform_0, window_bounds = array<i64: 32, 64>}, {transform_indices = @transform_1, window_bounds = array<i64: 128, 64>}, {transform_indices = @transform_2, window_bounds = array<i64: 1, 128>}, {transform_indices = @transform_3, window_bounds = array<i64: 32, 128>}]} {
    %c0_i32 = arith.constant 0 : i32
    %0 = arith.cmpi eq, %arg2, %c0_i32 : i32
    %1 = arith.extui %0 : i1 to i32
    %c0_i32_0 = arith.constant 0 : i32
    %2 = arith.cmpi ne, %1, %c0_i32_0 : i32
    scf.if %2 {
      %cst_10 = arith.constant 0.000000e+00 : f32
      %13 = vector.broadcast %cst_10 : f32 to vector<32x128xf32>
      %c0_11 = arith.constant 0 : index
      %c0_12 = arith.constant 0 : index
      %14 = vector.load %arg7[%c0_11, %c0_12] : memref<32x128xf32, #tpu.memory_space<vmem>>, vector<32x128xf32>
      tpu.vector_store %arg7[%c0_11, %c0_12], %13 {strides = array<i32>} : memref<32x128xf32, #tpu.memory_space<vmem>>, vector<32x128xf32>,
    } else {
    }
    %c0 = arith.constant 0 : index
    %c0_1 = arith.constant 0 : index
    %3 = vector.load %arg3[%c0, %c0_1] : memref<32x64xf32, #tpu.memory_space<vmem>>, vector<32x64xf32>
    %4 = arith.truncf %3 : vector<32x64xf32> to vector<32x64xbf16>
    %c0_2 = arith.constant 0 : index
    %c0_3 = arith.constant 0 : index
    %5 = vector.load %arg4[%c0_2, %c0_3] : memref<128x64xbf16, #tpu.memory_space<vmem>>, vector<128x64xbf16>
    %c0_4 = arith.constant 0 : index
    %c0_5 = arith.constant 0 : index
    %6 = vector.load %arg7[%c0_4, %c0_5] : memref<32x128xf32, #tpu.memory_space<vmem>>, vector<32x128xf32>
    %cst = arith.constant dense<0.000000e+00> : vector<32x128xf32>
    %7 = tpu.matmul %4, %5, %cst {dimension_numbers = #tpu.dot_dimension_numbers<[1], [1], [0], [0], [0, 0, 1, 0], [], []>} : vector<32x64xbf16>, vector<128x64xbf16>, vector<32x128xf32> -> vector<32x128xf32>
    %8 = arith.addf %6, %7 : vector<32x128xf32>
    %c0_6 = arith.constant 0 : index
    %c0_7 = arith.constant 0 : index
    %9 = vector.load %arg7[%c0_6, %c0_7] : memref<32x128xf32, #tpu.memory_space<vmem>>, vector<32x128xf32>
    tpu.vector_store %arg7[%c0_6, %c0_7], %8 {strides = array<i32>} : memref<32x128xf32, #tpu.memory_space<vmem>>, vector<32x128xf32>,
    %c0_i32_8 = arith.constant 0 : i32
    %10 = arith.cmpi eq, %arg2, %c0_i32_8 : i32
    %11 = arith.extui %10 : i1 to i32
    %c0_i32_9 = arith.constant 0 : i32
    %12 = arith.cmpi ne, %11, %c0_i32_9 : i32
    scf.if %12 {
      %c0_10 = arith.constant 0 : index
      %c0_11 = arith.constant 0 : index
      %13 = vector.load %arg7[%c0_10, %c0_11] : memref<32x128xf32, #tpu.memory_space<vmem>>, vector<32x128xf32>
      %c0_12 = arith.constant 0 : index
      %c0_13 = arith.constant 0 : index
      %14 = vector.load %arg5[%c0_12, %c0_13] : memref<1x128xf32, #tpu.memory_space<vmem>>, vector<1x128xf32>
      %15 = vector.broadcast %14 : vector<1x128xf32> to vector<32x128xf32>
      %16 = arith.addf %13, %15 : vector<32x128xf32>
      %c0_14 = arith.constant 0 : index
      %c0_15 = arith.constant 0 : index
      %17 = vector.load %arg6[%c0_14, %c0_15] : memref<32x128xf32, #tpu.memory_space<vmem>>, vector<32x128xf32>
      tpu.vector_store %arg6[%c0_14, %c0_15], %16 {strides = array<i32>} : memref<32x128xf32, #tpu.memory_space<vmem>>, vector<32x128xf32>,
    } else {
    }
    return
  }
  func.func @transform_0(%arg0: i32, %arg1: i32, %arg2: i32) -> (i32, i32) {
    %c0_i32 = arith.constant 0 : i32
    return %arg0, %arg2 : i32, i32
  }
  func.func @transform_1(%arg0: i32, %arg1: i32, %arg2: i32) -> (i32, i32) {
    %c0_i32 = arith.constant 0 : i32
    return %arg1, %arg2 : i32, i32
  }
  func.func @transform_2(%arg0: i32, %arg1: i32, %arg2: i32) -> (i32, i32) {
    %c0_i32 = arith.constant 0 : i32
    %c0_i32_0 = arith.constant 0 : i32
    return %c0_i32, %arg1 : i32, i32
  }
  func.func @transform_3(%arg0: i32, %arg1: i32, %arg2: i32) -> (i32, i32) {
    %c0_i32 = arith.constant 0 : i32
    return %arg0, %arg1 : i32, i32
  }
}

module attributes {stable_mosaic.version = 11 : i64} {
  func.func @_matmul_kernel(%arg0: i32, %arg1: i32, %arg2: i32, %arg3: memref<10x64xf32, #tpu.memory_space<vmem>>, %arg4: memref<64x64xbf16, #tpu.memory_space<vmem>>, %arg5: memref<1x64xf32, #tpu.memory_space<vmem>>, %arg6: memref<10x64xf32, #tpu.memory_space<vmem>>, %arg7: memref<10x64xf32, #tpu.memory_space<vmem>>) attributes {dimension_semantics = [#tpu.dimension_semantics<parallel>, #tpu.dimension_semantics<parallel>, #tpu.dimension_semantics<arbitrary>], iteration_bounds = array<i64: 1, 1, 1>, scalar_prefetch = 0 : i64, scratch_operands = 1 : i64, tpu.core_type = #tpu.core_type<tc>, window_params = [{transform_indices = @transform_0, window_bounds = array<i64: 10, 64>}, {transform_indices = @transform_1, window_bounds = array<i64: 64, 64>}, {transform_indices = @transform_2, window_bounds = array<i64: 1, 64>}, {transform_indices = @transform_3, window_bounds = array<i64: 10, 64>}]} {
    %c0_i32 = arith.constant 0 : i32
    %0 = arith.cmpi eq, %arg2, %c0_i32 : i32
    %1 = arith.extui %0 : i1 to i32
    %c0_i32_0 = arith.constant 0 : i32
    %2 = arith.cmpi ne, %1, %c0_i32_0 : i32
    scf.if %2 {
      %cst_10 = arith.constant 0.000000e+00 : f32
      %13 = vector.broadcast %cst_10 : f32 to vector<10x64xf32>
      %c0_11 = arith.constant 0 : index
      %c0_12 = arith.constant 0 : index
      %14 = vector.load %arg7[%c0_11, %c0_12] : memref<10x64xf32, #tpu.memory_space<vmem>>, vector<10x64xf32>
      tpu.vector_store %arg7[%c0_11, %c0_12], %13 {strides = array<i32>} : memref<10x64xf32, #tpu.memory_space<vmem>>, vector<10x64xf32>,
    } else {
    }
    %c0 = arith.constant 0 : index
    %c0_1 = arith.constant 0 : index
    %3 = vector.load %arg3[%c0, %c0_1] : memref<10x64xf32, #tpu.memory_space<vmem>>, vector<10x64xf32>
    %4 = arith.truncf %3 : vector<10x64xf32> to vector<10x64xbf16>
    %c0_2 = arith.constant 0 : index
    %c0_3 = arith.constant 0 : index
    %5 = vector.load %arg4[%c0_2, %c0_3] : memref<64x64xbf16, #tpu.memory_space<vmem>>, vector<64x64xbf16>
    %c0_4 = arith.constant 0 : index
    %c0_5 = arith.constant 0 : index
    %6 = vector.load %arg7[%c0_4, %c0_5] : memref<10x64xf32, #tpu.memory_space<vmem>>, vector<10x64xf32>
    %cst = arith.constant dense<0.000000e+00> : vector<10x64xf32>
    %7 = tpu.matmul %4, %5, %cst {dimension_numbers = #tpu.dot_dimension_numbers<[1], [1], [0], [0], [0, 0, 1, 0], [], []>} : vector<10x64xbf16>, vector<64x64xbf16>, vector<10x64xf32> -> vector<10x64xf32>
    %8 = arith.addf %6, %7 : vector<10x64xf32>
    %c0_6 = arith.constant 0 : index
    %c0_7 = arith.constant 0 : index
    %9 = vector.load %arg7[%c0_6, %c0_7] : memref<10x64xf32, #tpu.memory_space<vmem>>, vector<10x64xf32>
    tpu.vector_store %arg7[%c0_6, %c0_7], %8 {strides = array<i32>} : memref<10x64xf32, #tpu.memory_space<vmem>>, vector<10x64xf32>,
    %c0_i32_8 = arith.constant 0 : i32
    %10 = arith.cmpi eq, %arg2, %c0_i32_8 : i32
    %11 = arith.extui %10 : i1 to i32
    %c0_i32_9 = arith.constant 0 : i32
    %12 = arith.cmpi ne, %11, %c0_i32_9 : i32
    scf.if %12 {
      %c0_10 = arith.constant 0 : index
      %c0_11 = arith.constant 0 : index
      %13 = vector.load %arg7[%c0_10, %c0_11] : memref<10x64xf32, #tpu.memory_space<vmem>>, vector<10x64xf32>
      %c0_12 = arith.constant 0 : index
      %c0_13 = arith.constant 0 : index
      %14 = vector.load %arg5[%c0_12, %c0_13] : memref<1x64xf32, #tpu.memory_space<vmem>>, vector<1x64xf32>
      %15 = vector.broadcast %14 : vector<1x64xf32> to vector<10x64xf32>
      %16 = arith.addf %13, %15 : vector<10x64xf32>
      %c0_14 = arith.constant 0 : index
      %c0_15 = arith.constant 0 : index
      %17 = vector.load %arg6[%c0_14, %c0_15] : memref<10x64xf32, #tpu.memory_space<vmem>>, vector<10x64xf32>
      tpu.vector_store %arg6[%c0_14, %c0_15], %16 {strides = array<i32>} : memref<10x64xf32, #tpu.memory_space<vmem>>, vector<10x64xf32>,
    } else {
    }
    return
  }
  func.func @transform_0(%arg0: i32, %arg1: i32, %arg2: i32) -> (i32, i32) {
    %c0_i32 = arith.constant 0 : i32
    return %arg0, %arg2 : i32, i32
  }
  func.func @transform_1(%arg0: i32, %arg1: i32, %arg2: i32) -> (i32, i32) {
    %c0_i32 = arith.constant 0 : i32
    return %arg1, %arg2 : i32, i32
  }
  func.func @transform_2(%arg0: i32, %arg1: i32, %arg2: i32) -> (i32, i32) {
    %c0_i32 = arith.constant 0 : i32
    %c0_i32_0 = arith.constant 0 : i32
    return %c0_i32, %arg1 : i32, i32
  }
  func.func @transform_3(%arg0: i32, %arg1: i32, %arg2: i32) -> (i32, i32) {
    %c0_i32 = arith.constant 0 : i32
    return %arg0, %arg1 : i32, i32
  }
}

module attributes {stable_mosaic.version = 11 : i64} {
  func.func @_labelwise_output_kernel(%arg0: i32, %arg1: memref<2x10x64xf32, #tpu.memory_space<vmem>>, %arg2: memref<10x64xf32, #tpu.memory_space<vmem>>, %arg3: memref<1x10xf32, #tpu.memory_space<vmem>>, %arg4: memref<2x10xf32, #tpu.memory_space<vmem>>) attributes {dimension_semantics = [#tpu.dimension_semantics<parallel>], iteration_bounds = array<i64: 1>, scalar_prefetch = 0 : i64, scratch_operands = 0 : i64, tpu.core_type = #tpu.core_type<tc>, window_params = [{transform_indices = @transform_0, window_bounds = array<i64: 2, 10, 64>}, {transform_indices = @transform_1, window_bounds = array<i64: 10, 64>}, {transform_indices = @transform_2, window_bounds = array<i64: 1, 10>}, {transform_indices = @transform_3, window_bounds = array<i64: 2, 10>}]} {
    %c0 = arith.constant 0 : index
    %c0_0 = arith.constant 0 : index
    %c0_1 = arith.constant 0 : index
    %0 = vector.load %arg1[%c0, %c0_0, %c0_1] : memref<2x10x64xf32, #tpu.memory_space<vmem>>, vector<2x10x64xf32>
    %c0_2 = arith.constant 0 : index
    %c0_3 = arith.constant 0 : index
    %1 = vector.load %arg2[%c0_2, %c0_3] : memref<10x64xf32, #tpu.memory_space<vmem>>, vector<10x64xf32>
    %2 = vector.shape_cast %1 : vector<10x64xf32> to vector<1x10x64xf32>
    %3 = vector.broadcast %2 : vector<1x10x64xf32> to vector<2x10x64xf32>
    %4 = arith.mulf %0, %3 : vector<2x10x64xf32>
    %cst = arith.constant dense<0.000000e+00> : vector<2x10xf32>
    %5 = vector.multi_reduction <add>, %4, %cst [2] : vector<2x10x64xf32> to vector<2x10xf32>
    %c0_4 = arith.constant 0 : index
    %c0_5 = arith.constant 0 : index
    %6 = vector.load %arg3[%c0_4, %c0_5] : memref<1x10xf32, #tpu.memory_space<vmem>>, vector<1x10xf32>
    %7 = vector.broadcast %6 : vector<1x10xf32> to vector<2x10xf32>
    %8 = arith.addf %5, %7 : vector<2x10xf32>
    %c0_6 = arith.constant 0 : index
    %c0_7 = arith.constant 0 : index
    %9 = vector.load %arg4[%c0_6, %c0_7] : memref<2x10xf32, #tpu.memory_space<vmem>>, vector<2x10xf32>
    tpu.vector_store %arg4[%c0_6, %c0_7], %8 {strides = array<i32>} : memref<2x10xf32, #tpu.memory_space<vmem>>, vector<2x10xf32>,
    return
  }
  func.func @transform_0(%arg0: i32) -> (i32, i32, i32) {
    %c0_i32 = arith.constant 0 : i32
    %c0_i32_0 = arith.constant 0 : i32
    %c0_i32_1 = arith.constant 0 : i32
    return %c0_i32, %arg0, %c0_i32_0 : i32, i32, i32
  }
  func.func @transform_1(%arg0: i32) -> (i32, i32) {
    %c0_i32 = arith.constant 0 : i32
    %c0_i32_0 = arith.constant 0 : i32
    return %arg0, %c0_i32 : i32, i32
  }
  func.func @transform_2(%arg0: i32) -> (i32, i32) {
    %c0_i32 = arith.constant 0 : i32
    %c0_i32_0 = arith.constant 0 : i32
    return %c0_i32, %arg0 : i32, i32
  }
  func.func @transform_3(%arg0: i32) -> (i32, i32) {
    %c0_i32 = arith.constant 0 : i32
    %c0_i32_0 = arith.constant 0 : i32
    return %c0_i32, %arg0 : i32, i32
  }
}

module attributes {stable_mosaic.version = 11 : i64} {
  func.func @_mha_kernel(%arg0: i32, %arg1: memref<1x8x10x8xf32, #tpu.memory_space<vmem>>, %arg2: memref<1x8x16x8xf32, #tpu.memory_space<vmem>>, %arg3: memref<1x8x16x8xf32, #tpu.memory_space<vmem>>, %arg4: memref<1x1x16xf32, #tpu.memory_space<vmem>>, %arg5: memref<1x8x10x8xf32, #tpu.memory_space<vmem>>, %arg6: memref<1x10x16xf32, #tpu.memory_space<vmem>>) attributes {dimension_semantics = [#tpu.dimension_semantics<parallel>], iteration_bounds = array<i64: 2>, scalar_prefetch = 0 : i64, scratch_operands = 0 : i64, tpu.core_type = #tpu.core_type<tc>, window_params = [{transform_indices = @transform_0, window_bounds = array<i64: 1, 8, 10, 8>}, {transform_indices = @transform_1, window_bounds = array<i64: 1, 8, 16, 8>}, {transform_indices = @transform_2, window_bounds = array<i64: 1, 8, 16, 8>}, {transform_indices = @transform_3, window_bounds = array<i64: 1, 1, 16>}, {transform_indices = @transform_4, window_bounds = array<i64: 1, 8, 10, 8>}, {transform_indices = @transform_5, window_bounds = array<i64: 1, 10, 16>}]} {
    %c0 = arith.constant 0 : index
    %c0_0 = arith.constant 0 : index
    %c0_1 = arith.constant 0 : index
    %c0_2 = arith.constant 0 : index
    %0 = vector.load %arg1[%c0, %c0_0, %c0_1, %c0_2] : memref<1x8x10x8xf32, #tpu.memory_space<vmem>>, vector<1x8x10x8xf32>
    %1 = vector.shape_cast %0 : vector<1x8x10x8xf32> to vector<8x10x8xf32>
    %2 = arith.truncf %1 : vector<8x10x8xf32> to vector<8x10x8xbf16>
    %c0_3 = arith.constant 0 : index
    %c0_4 = arith.constant 0 : index
    %c0_5 = arith.constant 0 : index
    %c0_6 = arith.constant 0 : index
    %3 = vector.load %arg2[%c0_3, %c0_4, %c0_5, %c0_6] : memref<1x8x16x8xf32, #tpu.memory_space<vmem>>, vector<1x8x16x8xf32>
    %4 = vector.shape_cast %3 : vector<1x8x16x8xf32> to vector<8x16x8xf32>
    %5 = arith.truncf %4 : vector<8x16x8xf32> to vector<8x16x8xbf16>
    %c0_7 = arith.constant 0 : index
    %c0_8 = arith.constant 0 : index
    %c0_9 = arith.constant 0 : index
    %c0_10 = arith.constant 0 : index
    %6 = vector.load %arg3[%c0_7, %c0_8, %c0_9, %c0_10] : memref<1x8x16x8xf32, #tpu.memory_space<vmem>>, vector<1x8x16x8xf32>
    %7 = vector.shape_cast %6 : vector<1x8x16x8xf32> to vector<8x16x8xf32>
    %8 = arith.truncf %7 : vector<8x16x8xf32> to vector<8x16x8xbf16>
    "tpu.trace_start"() <{level = 10 : i32, message = "hqd,hkd->hqk"}> : () -> ()
    %cst = arith.constant dense<0.000000e+00> : vector<8x10x16xf32>
    %9 = tpu.matmul %2, %5, %cst {dimension_numbers = #tpu.dot_dimension_numbers<[2], [2], [1], [1], [0, 0, 0, 1, 1, 1], [0], [0]>} : vector<8x10x8xbf16>, vector<8x16x8xbf16>, vector<8x10x16xf32> -> vector<8x10x16xf32>
    "tpu.trace_stop"() : () -> ()
    %cst_11 = arith.constant 0.353553385 : f32
    %10 = vector.broadcast %cst_11 : f32 to vector<8x10x16xf32>
    %11 = arith.mulf %9, %10 : vector<8x10x16xf32>
    %c0_12 = arith.constant 0 : index
    %c0_13 = arith.constant 0 : index
    %c0_14 = arith.constant 0 : index
    %12 = vector.load %arg4[%c0_12, %c0_13, %c0_14] : memref<1x1x16xf32, #tpu.memory_space<vmem>>, vector<1x1x16xf32>
    %13 = vector.broadcast %12 : vector<1x1x16xf32> to vector<8x10x16xf32>
    %14 = arith.addf %11, %13 : vector<8x10x16xf32>
    %cst_15 = arith.constant dense<0xFF800000> : vector<8x10xf32>
    %15 = vector.multi_reduction <maximumf>, %14, %cst_15 [2] : vector<8x10x16xf32> to vector<8x10xf32>
    %16 = vector.shape_cast %15 : vector<8x10xf32> to vector<8x10x1xf32>
    %17 = vector.broadcast %16 : vector<8x10x1xf32> to vector<8x10x16xf32>
    %18 = arith.subf %14, %17 : vector<8x10x16xf32>
    %19 = math.exp %18 : vector<8x10x16xf32>
    %cst_16 = arith.constant dense<0.000000e+00> : vector<8x10xf32>
    %20 = vector.multi_reduction <add>, %19, %cst_16 [2] : vector<8x10x16xf32> to vector<8x10xf32>
    %21 = vector.shape_cast %20 : vector<8x10xf32> to vector<8x10x1xf32>
    %22 = tpu.reciprocal %21 {approx = true} : vector<8x10x1xf32> -> vector<8x10x1xf32>
    %23 = vector.broadcast %22 : vector<8x10x1xf32> to vector<8x10x16xf32>
    %24 = arith.mulf %19, %23 : vector<8x10x16xf32>
    %25 = arith.truncf %24 : vector<8x10x16xf32> to vector<8x10x16xbf16>
    "tpu.trace_start"() <{level = 10 : i32, message = "hqk,hkd->hqd"}> : () -> ()
    %cst_17 = arith.constant dense<0.000000e+00> : vector<8x10x8xf32>
    %26 = tpu.matmul %25, %8, %cst_17 {dimension_numbers = #tpu.dot_dimension_numbers<[2], [1], [1], [2], [0, 0, 0, 1, 1, 2], [0], [0]>} : vector<8x10x16xbf16>, vector<8x16x8xbf16>, vector<8x10x8xf32> -> vector<8x10x8xf32>
    "tpu.trace_stop"() : () -> ()
    %c0_18 = arith.constant 0 : index
    %c0_19 = arith.constant 0 : index
    %c0_20 = arith.constant 0 : index
    %c0_21 = arith.constant 0 : index
    %27 = vector.load %arg5[%c0_18, %c0_19, %c0_20, %c0_21] : memref<1x8x10x8xf32, #tpu.memory_space<vmem>>, vector<1x8x10x8xf32>
    %28 = vector.shape_cast %27 : vector<1x8x10x8xf32> to vector<8x10x8xf32>
    %29 = vector.shape_cast %26 : vector<8x10x8xf32> to vector<1x8x10x8xf32>
    tpu.vector_store %arg5[%c0_18, %c0_19, %c0_20, %c0_21], %29 {strides = array<i32>} : memref<1x8x10x8xf32, #tpu.memory_space<vmem>>, vector<1x8x10x8xf32>,
    %cst_22 = arith.constant dense<0.000000e+00> : vector<10x16xf32>
    %30 = vector.multi_reduction <add>, %24, %cst_22 [0] : vector<8x10x16xf32> to vector<10x16xf32>
    %cst_23 = arith.constant 8.000000e+00 : f32
    %31 = vector.broadcast %cst_23 : f32 to vector<10x16xf32>
    %32 = arith.divf %30, %31 : vector<10x16xf32>
    %c0_24 = arith.constant 0 : index
    %c0_25 = arith.constant 0 : index
    %c0_26 = arith.constant 0 : index
    %33 = vector.load %arg6[%c0_24, %c0_25, %c0_26] : memref<1x10x16xf32, #tpu.memory_space<vmem>>, vector<1x10x16xf32>
    %34 = vector.shape_cast %33 : vector<1x10x16xf32> to vector<10x16xf32>
    %35 = vector.shape_cast %32 : vector<10x16xf32> to vector<1x10x16xf32>
    tpu.vector_store %arg6[%c0_24, %c0_25, %c0_26], %35 {strides = array<i32>} : memref<1x10x16xf32, #tpu.memory_space<vmem>>, vector<1x10x16xf32>,
    return
  }
  func.func @transform_0(%arg0: i32) -> (i32, i32, i32, i32) {
    %c0_i32 = arith.constant 0 : i32
    %c0_i32_0 = arith.constant 0 : i32
    %c0_i32_1 = arith.constant 0 : i32
    %c0_i32_2 = arith.constant 0 : i32
    return %arg0, %c0_i32, %c0_i32_0, %c0_i32_1 : i32, i32, i32, i32
  }
  func.func @transform_1(%arg0: i32) -> (i32, i32, i32, i32) {
    %c0_i32 = arith.constant 0 : i32
    %c0_i32_0 = arith.constant 0 : i32
    %c0_i32_1 = arith.constant 0 : i32
    %c0_i32_2 = arith.constant 0 : i32
    return %arg0, %c0_i32, %c0_i32_0, %c0_i32_1 : i32, i32, i32, i32
  }
  func.func @transform_2(%arg0: i32) -> (i32, i32, i32, i32) {
    %c0_i32 = arith.constant 0 : i32
    %c0_i32_0 = arith.constant 0 : i32
    %c0_i32_1 = arith.constant 0 : i32
    %c0_i32_2 = arith.constant 0 : i32
    return %arg0, %c0_i32, %c0_i32_0, %c0_i32_1 : i32, i32, i32, i32
  }
  func.func @transform_3(%arg0: i32) -> (i32, i32, i32) {
    %c0_i32 = arith.constant 0 : i32
    %c0_i32_0 = arith.constant 0 : i32
    %c0_i32_1 = arith.constant 0 : i32
    return %arg0, %c0_i32, %c0_i32_0 : i32, i32, i32
  }
  func.func @transform_4(%arg0: i32) -> (i32, i32, i32, i32) {
    %c0_i32 = arith.constant 0 : i32
    %c0_i32_0 = arith.constant 0 : i32
    %c0_i32_1 = arith.constant 0 : i32
    %c0_i32_2 = arith.constant 0 : i32
    return %arg0, %c0_i32, %c0_i32_0, %c0_i32_1 : i32, i32, i32, i32
  }
  func.func @transform_5(%arg0: i32) -> (i32, i32, i32) {
    %c0_i32 = arith.constant 0 : i32
    %c0_i32_0 = arith.constant 0 : i32
    %c0_i32_1 = arith.constant 0 : i32
    return %arg0, %c0_i32, %c0_i32_0 : i32, i32, i32
  }
}

module attributes {stable_mosaic.version = 11 : i64} {
  func.func @_matmul_kernel(%arg0: i32, %arg1: i32, %arg2: i32, %arg3: memref<20x64xf32, #tpu.memory_space<vmem>>, %arg4: memref<64x64xbf16, #tpu.memory_space<vmem>>, %arg5: memref<1x64xf32, #tpu.memory_space<vmem>>, %arg6: memref<20x64xf32, #tpu.memory_space<vmem>>, %arg7: memref<20x64xf32, #tpu.memory_space<vmem>>) attributes {dimension_semantics = [#tpu.dimension_semantics<parallel>, #tpu.dimension_semantics<parallel>, #tpu.dimension_semantics<arbitrary>], iteration_bounds = array<i64: 1, 1, 1>, scalar_prefetch = 0 : i64, scratch_operands = 1 : i64, tpu.core_type = #tpu.core_type<tc>, window_params = [{transform_indices = @transform_0, window_bounds = array<i64: 20, 64>}, {transform_indices = @transform_1, window_bounds = array<i64: 64, 64>}, {transform_indices = @transform_2, window_bounds = array<i64: 1, 64>}, {transform_indices = @transform_3, window_bounds = array<i64: 20, 64>}]} {
    %c0_i32 = arith.constant 0 : i32
    %0 = arith.cmpi eq, %arg2, %c0_i32 : i32
    %1 = arith.extui %0 : i1 to i32
    %c0_i32_0 = arith.constant 0 : i32
    %2 = arith.cmpi ne, %1, %c0_i32_0 : i32
    scf.if %2 {
      %cst_10 = arith.constant 0.000000e+00 : f32
      %13 = vector.broadcast %cst_10 : f32 to vector<20x64xf32>
      %c0_11 = arith.constant 0 : index
      %c0_12 = arith.constant 0 : index
      %14 = vector.load %arg7[%c0_11, %c0_12] : memref<20x64xf32, #tpu.memory_space<vmem>>, vector<20x64xf32>
      tpu.vector_store %arg7[%c0_11, %c0_12], %13 {strides = array<i32>} : memref<20x64xf32, #tpu.memory_space<vmem>>, vector<20x64xf32>,
    } else {
    }
    %c0 = arith.constant 0 : index
    %c0_1 = arith.constant 0 : index
    %3 = vector.load %arg3[%c0, %c0_1] : memref<20x64xf32, #tpu.memory_space<vmem>>, vector<20x64xf32>
    %4 = arith.truncf %3 : vector<20x64xf32> to vector<20x64xbf16>
    %c0_2 = arith.constant 0 : index
    %c0_3 = arith.constant 0 : index
    %5 = vector.load %arg4[%c0_2, %c0_3] : memref<64x64xbf16, #tpu.memory_space<vmem>>, vector<64x64xbf16>
    %c0_4 = arith.constant 0 : index
    %c0_5 = arith.constant 0 : index
    %6 = vector.load %arg7[%c0_4, %c0_5] : memref<20x64xf32, #tpu.memory_space<vmem>>, vector<20x64xf32>
    %cst = arith.constant dense<0.000000e+00> : vector<20x64xf32>
    %7 = tpu.matmul %4, %5, %cst {dimension_numbers = #tpu.dot_dimension_numbers<[1], [1], [0], [0], [0, 0, 1, 0], [], []>} : vector<20x64xbf16>, vector<64x64xbf16>, vector<20x64xf32> -> vector<20x64xf32>
    %8 = arith.addf %6, %7 : vector<20x64xf32>
    %c0_6 = arith.constant 0 : index
    %c0_7 = arith.constant 0 : index
    %9 = vector.load %arg7[%c0_6, %c0_7] : memref<20x64xf32, #tpu.memory_space<vmem>>, vector<20x64xf32>
    tpu.vector_store %arg7[%c0_6, %c0_7], %8 {strides = array<i32>} : memref<20x64xf32, #tpu.memory_space<vmem>>, vector<20x64xf32>,
    %c0_i32_8 = arith.constant 0 : i32
    %10 = arith.cmpi eq, %arg2, %c0_i32_8 : i32
    %11 = arith.extui %10 : i1 to i32
    %c0_i32_9 = arith.constant 0 : i32
    %12 = arith.cmpi ne, %11, %c0_i32_9 : i32
    scf.if %12 {
      %c0_10 = arith.constant 0 : index
      %c0_11 = arith.constant 0 : index
      %13 = vector.load %arg7[%c0_10, %c0_11] : memref<20x64xf32, #tpu.memory_space<vmem>>, vector<20x64xf32>
      %c0_12 = arith.constant 0 : index
      %c0_13 = arith.constant 0 : index
      %14 = vector.load %arg5[%c0_12, %c0_13] : memref<1x64xf32, #tpu.memory_space<vmem>>, vector<1x64xf32>
      %15 = vector.broadcast %14 : vector<1x64xf32> to vector<20x64xf32>
      %16 = arith.addf %13, %15 : vector<20x64xf32>
      %c0_14 = arith.constant 0 : index
      %c0_15 = arith.constant 0 : index
      %17 = vector.load %arg6[%c0_14, %c0_15] : memref<20x64xf32, #tpu.memory_space<vmem>>, vector<20x64xf32>
      tpu.vector_store %arg6[%c0_14, %c0_15], %16 {strides = array<i32>} : memref<20x64xf32, #tpu.memory_space<vmem>>, vector<20x64xf32>,
    } else {
    }
    return
  }
  func.func @transform_0(%arg0: i32, %arg1: i32, %arg2: i32) -> (i32, i32) {
    %c0_i32 = arith.constant 0 : i32
    return %arg0, %arg2 : i32, i32
  }
  func.func @transform_1(%arg0: i32, %arg1: i32, %arg2: i32) -> (i32, i32) {
    %c0_i32 = arith.constant 0 : i32
    return %arg1, %arg2 : i32, i32
  }
  func.func @transform_2(%arg0: i32, %arg1: i32, %arg2: i32) -> (i32, i32) {
    %c0_i32 = arith.constant 0 : i32
    %c0_i32_0 = arith.constant 0 : i32
    return %c0_i32, %arg1 : i32, i32
  }
  func.func @transform_3(%arg0: i32, %arg1: i32, %arg2: i32) -> (i32, i32) {
    %c0_i32 = arith.constant 0 : i32
    return %arg0, %arg1 : i32, i32
  }
}

</mosaic_0001>

<bundles_post_ra>
// kernel: bert_attention_forward.20
= control target key start
LH: loop header
LB: loop body
LE: loop exit
PB: predicated region body
PF: predicated region fallthrough
CT: control target
= control target key end

     0   :  { %vm18_vm0 = vcmask 523264   ;;  %s174_s0 = inlined_call_operand.vmem [shape: f32[32,64], index: 0, kind: input, shape index: {}]   ;;  %s175_s1 = inlined_call_operand.vmem [shape: f32[1,64], index: 1, kind: input, shape index: {}]   ;;  %s176_s2 = inlined_call_operand.vmem [shape: f32[1,64], index: 2, kind: input, shape index: {}]   ;;  %s177_s3 = inlined_call_operand.vmem [shape: f32[32,64], index: 3, kind: output, shape index: {}]  }
   0x1   :  { %v14_v0 = vld [vmem:[%s174_s0] sm:$0xff]  ;;  %v16_v1 = vld [vmem:[%s174_s0 + $0x10] sm:$0xff]  ;;  %v15_v2 = vld [vmem:[%s174_s0 + $0x8] sm:$0xff] }
   0x2   :  { %v19_v3 = vsel %vm18_vm0, %v14_v0, 0.0  ;;  %v25_v4 = vsel %vm18_vm0, %v16_v1, 0.0  ;;  %v17_v5 = vld [vmem:[%s174_s0 + $0x18] sm:$0xff]  ;;  %v22_v6 = vsel %vm18_vm0, %v15_v2, 0.0  ;;  %v102_v41 = vld [vmem:[%s175_s1] ss:$0 sm:$0xff] }
   0x3   :  { %20 = vadd.xlane.f32.xlu0 %v19_v3  ;;  %26 = vadd.xlane.f32.xlu1 %v25_v4  ;;  %v28_v7 = vsel %vm18_vm0, %v17_v5, 0.0  ;;  %v103_v43 = vld [vmem:[%s176_s2] ss:$0 sm:$0xff] }
   0x7   :  { %23 = vadd.xlane.f32.xlu0 %v22_v6  ;;  %29 = vadd.xlane.f32.xlu1 %v28_v7 }
  0x90   :  { %v21_v8 = vpop.xlane.xlu0 %20  ;;  %v27_v9 = vpop.xlane.xlu1 %26 }
  0x91   :  { %v32_v10 = vmul.f32 0.015625, %v21_v8  ;;  %v34_v11 = vmul.f32 0.015625, %v27_v9 }
  0x93   :  { %v36_v12 = vsub.f32 %v14_v0, %v32_v10  ;;  %v38_v13 = vsub.f32 %v16_v1, %v34_v11 }
  0x94   :  { %v24_v14 = vpop.xlane.xlu0 %23  ;;  %v30_v15 = vpop.xlane.xlu1 %29 }
  0x95   :  { %v33_v16 = vmul.f32 0.015625, %v24_v14  ;;  %v35_v17 = vmul.f32 0.015625, %v30_v15  ;;  %v40_v18 = vmul.f32 %v36_v12, %v36_v12  ;;  %v42_v19 = vmul.f32 %v38_v13, %v38_v13 }
  0x97   :  { %v37_v20 = vsub.f32 %v15_v2, %v33_v16  ;;  %v39_v21 = vsub.f32 %v17_v5, %v35_v17  ;;  %v44_v22 = vsel %vm18_vm0, %v40_v18, 0.0  ;;  %v50_v23 = vsel %vm18_vm0, %v42_v19, 0.0 }
  0x98   :  { %45 = vadd.xlane.f32.xlu0 %v44_v22 }
  0x99   :  { %v41_v24 = vmul.f32 %v37_v20, %v37_v20  ;;  %v43_v25 = vmul.f32 %v39_v21, %v39_v21 }
  0x9b   :  { %v47_v26 = vsel %vm18_vm0, %v41_v24, 0.0  ;;  %v53_v27 = vsel %vm18_vm0, %v43_v25, 0.0 }
  0x9c   :  { %51 = vadd.xlane.f32.xlu0 %v50_v23  ;;  %48 = vadd.xlane.f32.xlu1 %v47_v26 }
  0xa0   :  { %54 = vadd.xlane.f32.xlu1 %v53_v27 }
 0x125   :  { %v46_v28 = vpop.xlane.xlu0 %45 }
 0x126   :  { %v56_v29 = vmul.f32 0.015625, %v46_v28 }
 0x128   :  { %v60_v30 = vadd.f32 1e-12, %v56_v29 }
 0x129   :  { %v49_v31 = vpop.xlane.xlu1 %48  ;;  %v52_v32 = vpop.xlane.xlu0 %51 }
 0x12a   :  { %104 = vrsqrt.f32 %v60_v30  ;;  %v57_v33 = vmul.f32 0.015625, %v49_v31  ;;  %v58_v34 = vmul.f32 0.015625, %v52_v32 }
 0x12c   :  { %v61_v35 = vadd.f32 1e-12, %v57_v33  ;;  %v62_v36 = vadd.f32 1e-12, %v58_v34 }
 0x12d   :  { %v55_v37 = vpop.xlane.xlu1 %54 }
 0x12e   :  { %106 = vrsqrt.f32 %v61_v35  ;;  %v59_v38 = vmul.f32 0.015625, %v55_v37 }
 0x12f   :  { %108 = vrsqrt.f32 %v62_v36 }
 0x130   :  { %v63_v39 = vadd.f32 1e-12, %v59_v38 }
 0x132   :  { %110 = vrsqrt.f32 %v63_v39 }
 0x134   :  { %v105_v40 = vpop.eup %104 }
 0x135   :  { %v68_v42 = vmul.f32 %v105_v40, %v36_v12 }
 0x137   :  { %v79_v44 = vmul.f32 %v102_v41, %v68_v42 }
 0x138   :  { %v107_v45 = vpop.eup %106 }
 0x139   :  { %v109_v46 = vpop.eup %108  ;;  %v90_v47 = vadd.f32 %v103_v43, %v79_v44  ;;  %v69_v48 = vmul.f32 %v107_v45, %v37_v20 }
 0x13a   :  { %v70_v49 = vmul.f32 %v109_v46, %v38_v13 }
 0x13b   :  { %94 = vst.msk [vmem:[%s177_s3] sm:$0xff] %vm18_vm0, %v90_v47  ;;  %v80_v50 = vmul.f32 %v102_v41, %v69_v48 }
 0x13c   :  { %v111_v51 = vpop.eup %110  ;;  %v81_v52 = vmul.f32 %v102_v41, %v70_v49 }
 0x13d   :  { %v91_v53 = vadd.f32 %v103_v43, %v80_v50  ;;  %v71_v54 = vmul.f32 %v111_v51, %v39_v21 }
 0x13e   :  { %v92_v55 = vadd.f32 %v103_v43, %v81_v52 }
 0x13f   :  { %95 = vst.msk [vmem:[%s177_s3 + $0x8] sm:$0xff] %vm18_vm0, %v91_v53  ;;  %v82_v56 = vmul.f32 %v102_v41, %v71_v54 }
 0x140   :  { %96 = vst.msk [vmem:[%s177_s3 + $0x10] sm:$0xff] %vm18_vm0, %v92_v55 }
 0x141   :  { %v93_v57 = vadd.f32 %v103_v43, %v82_v56 }
 0x143   :  { %97 = vst.msk [vmem:[%s177_s3 + $0x18] sm:$0xff] %vm18_vm0, %v93_v57 }

// kernel: bert_attention_forward.21
= control target key start
LH: loop header
LB: loop body
LE: loop exit
PB: predicated region body
PF: predicated region fallthrough
CT: control target
= control target key end

     0   :  { %vm20_vm0 = vcmask 523264   ;;  %v333_v0 = vmov 0   ;;  %v334_v2 = vmov 0.0   ;;  %v251_v32 = vlaneseq  ;;  %s482_s1 = inlined_call_operand.vmem [shape: bf16[192,64], index: 1, kind: input, shape index: {}]   ;;  %s483_s0 = inlined_call_operand.vmem [shape: f32[32,64], index: 0, kind: input, shape index: {}]   ;;  %s484_s2 = inlined_call_operand.vmem [shape: f32[1,192], index: 2, kind: input, shape index: {}]   ;;  %s485_s3 = inlined_call_operand.vmem [shape: f32[32,192], index: 3, kind: output, shape index: {}]  }
   0x1   :  { %169 = vmatprep.subr.bf16.mxu0 %v333_v0  ;;  %295 = vmatprep.subr.bf16.mxu1 %v333_v0  ;;  %v321_v1 = vld [vmem:[%s482_s1] sm:$0xff]   ;;  %21 = vst.msk [vmem:[#allocation2 + $0x8] sm:$0xff] %vm20_vm0, %v334_v2  ;;  %23 = vst.msk [vmem:[#allocation2 + $0x18] sm:$0xff] %vm20_vm0, %v334_v2  ;;  %v322_v4 = vld [vmem:[%s482_s1 + $0x8] sm:$0xff]  }
   0x2   :  { %25 = vst.msk [vmem:[#allocation2 + $0x28] sm:$0xff] %vm20_vm0, %v334_v2  ;;  %27 = vst.msk [vmem:[#allocation2 + $0x38] sm:$0xff] %vm20_vm0, %v334_v2  ;;  %201 = vmatprep.mubr.bf16.mxu0 %v333_v0  ;;  %211 = vmatprep.mubr.bf16.mxu1 %v333_v0  ;;  %v134_v3 = vsel %vm20_vm0, %v321_v1, 0  ;;  %v137_v5 = vsel %vm20_vm0, %v322_v4, 0  ;;  %v323_v6 = vld [vmem:[%s482_s1 + $0x10] sm:$0xff]   ;;  %v324_v8 = vld [vmem:[%s482_s1 + $0x18] sm:$0xff]  }
   0x3   :  { %170 = vmatpush1.bf16.xpose.msra.mxu0 %v134_v3  ;;  %307 = vmatpush1.bf16.xpose.msra.mxu1 %v134_v3  ;;  %v140_v7 = vsel %vm20_vm0, %v323_v6, 0  ;;  %v143_v9 = vsel %vm20_vm0, %v324_v8, 0  ;;  %v325_v10 = vld [vmem:[%s482_s1 + $0x20] sm:$0xff]   ;;  %v326_v12 = vld [vmem:[%s482_s1 + $0x28] sm:$0xff]   ;;  %v327_v14 = vld [vmem:[%s482_s1 + $0x30] sm:$0xff]   ;;  %v252_v33 = vshrl.u32 %v251_v32, 7 }
   0x4   :  { %171 = vmatprep.subr.bf16.mxu0 %v333_v0  ;;  %296 = vmatprep.subr.bf16.mxu1 %v333_v0  ;;  %v146_v11 = vsel %vm20_vm0, %v325_v10, 0  ;;  %v149_v13 = vsel %vm20_vm0, %v326_v12, 0  ;;  %v152_v15 = vsel %vm20_vm0, %v327_v14, 0  ;;  %v328_v16 = vld [vmem:[%s482_s1 + $0x38] sm:$0xff]   ;;  %v329_v18 = vld [vmem:[%s482_s1 + $0x40] sm:$0xff]   ;;  %v330_v20 = vld [vmem:[%s482_s1 + $0x48] sm:$0xff]  }
   0x5   :  { %v155_v17 = vsel %vm20_vm0, %v328_v16, 0  ;;  %v158_v19 = vsel %vm20_vm0, %v329_v18, 0  ;;  %v161_v21 = vsel %vm20_vm0, %v330_v20, 0  ;;  %v331_v22 = vld [vmem:[%s482_s1 + $0x50] sm:$0xff]   ;;  %v332_v24 = vld [vmem:[%s482_s1 + $0x58] sm:$0xff]   ;;  %v28_v26 = vld [vmem:[%s483_s0] sm:$0xff] }
   0x6   :  { %v164_v23 = vsel %vm20_vm0, %v331_v22, 0  ;;  %v167_v25 = vsel %vm20_vm0, %v332_v24, 0  ;;  %v29_v27 = vld [vmem:[%s483_s0 + $0x8] sm:$0xff]  ;;  %v30_v28 = vld [vmem:[%s483_s0 + $0x10] sm:$0xff]  ;;  %v31_v29 = vld [vmem:[%s483_s0 + $0x18] sm:$0xff]  ;;  %v253_v34 = vsub.s32 0, %v252_v33 }
   0x7   :  { %v32_v30 = vpack.c.bf16 %v29_v27, %v28_v26  ;;  %v33_v31 = vpack.c.bf16 %v31_v29, %v30_v28  ;;  %v249_v35 = vld [vmem:[%s484_s2] sm:$0x3]  ;;  %v257_v53 = vsub.s32 1, %v252_v33 }
   0x8   :  { %v254_v36 = vrot.slane %v249_v35, %v253_v34  ;;  %v59_v37 = vld [vmem:[#allocation2 + $0x8] sm:$0xff]  ;;  %v61_v43 = vld [vmem:[#allocation2 + $0x18] sm:$0xff] }
   0x9   :  { %v63_v38 = vld [vmem:[#allocation2 + $0x28] sm:$0xff]  ;;  %v65_v44 = vld [vmem:[#allocation2 + $0x38] sm:$0xff]  ;;  %v258_v58 = vrot.slane %v249_v35, %v257_v53 }
   0xb   :  { %172 = vmatpush1.bf16.xpose.msra.mxu0 %v137_v5  ;;  %308 = vmatpush1.bf16.xpose.msra.mxu1 %v137_v5 }
   0xc   :  { %173 = vmatprep.subr.bf16.mxu0 %v333_v0  ;;  %297 = vmatprep.subr.bf16.mxu1 %v333_v0 }
  0x13   :  { %174 = vmatpush1.bf16.xpose.msra.mxu0 %v140_v7  ;;  %309 = vmatpush1.bf16.xpose.msra.mxu1 %v140_v7 }
  0x14   :  { %175 = vmatprep.subr.bf16.mxu0 %v333_v0  ;;  %298 = vmatprep.subr.bf16.mxu1 %v333_v0 }
  0x1b   :  { %176 = vmatpush1.bf16.xpose.msra.mxu0 %v143_v9  ;;  %310 = vmatpush1.bf16.xpose.msra.mxu1 %v143_v9 }
  0x1c   :  { %177 = vmatprep.subr.bf16.mxu0 %v333_v0  ;;  %299 = vmatprep.subr.bf16.mxu1 %v333_v0 }
  0x23   :  { %178 = vmatpush1.bf16.xpose.msra.mxu0 %v146_v11  ;;  %311 = vmatpush1.bf16.xpose.msra.mxu1 %v146_v11 }
  0x24   :  { %179 = vmatprep.subr.bf16.mxu0 %v333_v0  ;;  %300 = vmatprep.subr.bf16.mxu1 %v333_v0 }
  0x2b   :  { %180 = vmatpush1.bf16.xpose.msra.mxu0 %v149_v13  ;;  %312 = vmatpush1.bf16.xpose.msra.mxu1 %v149_v13 }
  0x2c   :  { %181 = vmatprep.subr.bf16.mxu0 %v333_v0  ;;  %301 = vmatprep.subr.bf16.mxu1 %v333_v0 }
  0x33   :  { %182 = vmatpush1.bf16.xpose.msra.mxu0 %v152_v15  ;;  %313 = vmatpush1.bf16.xpose.msra.mxu1 %v152_v15 }
  0x34   :  { %183 = vmatprep.subr.bf16.mxu0 %v333_v0  ;;  %302 = vmatprep.subr.bf16.mxu1 %v333_v0 }
  0x3b   :  { %184 = vmatpush1.bf16.xpose.msra.mxu0 %v155_v17  ;;  %314 = vmatpush1.bf16.xpose.msra.mxu1 %v155_v17 }
  0x3c   :  { %185 = vmatprep.subr.bf16.mxu0 %v333_v0  ;;  %303 = vmatprep.subr.bf16.mxu1 %v333_v0 }
  0x43   :  { %186 = vmatpush1.bf16.xpose.msra.mxu0 %v158_v19  ;;  %315 = vmatpush1.bf16.xpose.msra.mxu1 %v158_v19 }
  0x44   :  { %187 = vmatprep.subr.bf16.mxu0 %v333_v0  ;;  %304 = vmatprep.subr.bf16.mxu1 %v333_v0 }
  0x4b   :  { %188 = vmatpush1.bf16.xpose.msra.mxu0 %v161_v21  ;;  %316 = vmatpush1.bf16.xpose.msra.mxu1 %v161_v21 }
  0x4c   :  { %189 = vmatprep.subr.bf16.mxu0 %v333_v0  ;;  %305 = vmatprep.subr.bf16.mxu1 %v333_v0 }
  0x53   :  { %190 = vmatpush1.bf16.xpose.msra.mxu0 %v164_v23  ;;  %317 = vmatpush1.bf16.xpose.msra.mxu1 %v164_v23 }
  0x54   :  { %191 = vmatprep.subr.bf16.mxu0 %v333_v0  ;;  %306 = vmatprep.subr.bf16.mxu1 %v333_v0 }
  0x5b   :  { %192 = vmatpush1.bf16.xpose.msra.mxu0 %v167_v25  ;;  %318 = vmatpush1.bf16.xpose.msra.mxu1 %v167_v25 }
  0x62   :  { %293 = vmatmul.mubr.msk.bf16.vlgmr.msra.gmra.mrb[0].mxu0 %vm20_vm0, %v32_v30  ;;  %294 = vmatmul.mubr.msk.bf16.vlgmr.msra.gmra.mrb[0].mxu1 %vm20_vm0, %v33_v31 }
 0x135   :  { %v203_v39 = vpop.f32.mrb[0].mxu0  ;;  %v213_v40 = vpop.f32.mrb[0].mxu1 }
 0x136   :  { %v205_v41 = vpop.f32.mrb[1].mxu0  ;;  %v215_v42 = vpop.f32.mrb[1].mxu1  ;;  %v261_v49 = vadd.f32 %v254_v36, %v203_v39  ;;  %v265_v50 = vadd.f32 %v254_v36, %v213_v40 }
 0x137   :  { %v223_v45 = vadd.f32 %v205_v41, %v59_v37  ;;  %v227_v46 = vadd.f32 %v215_v42, %v63_v38  ;;  %v207_v47 = vpop.f32.mrb[2].mxu0  ;;  %v217_v48 = vpop.f32.mrb[2].mxu1 }
 0x138   :  { %v209_v51 = vpop.f32.mrb[3].mxu0  ;;  %v219_v52 = vpop.f32.mrb[3].mxu1  ;;  %269 = vst [vmem:[%s485_s3] sm:$0xff] %v261_v49  ;;  %273 = vst [vmem:[%s485_s3 + $0x20] sm:$0xff] %v265_v50  ;;  %v263_v56 = vadd.f32 %v254_v36, %v207_v47  ;;  %v267_v57 = vadd.f32 %v254_v36, %v217_v48 }
 0x139   :  { %231 = vst.msk [vmem:[#allocation2 + $0x8] sm:$0xff] %vm20_vm0, %v223_v45  ;;  %235 = vst.msk [vmem:[#allocation2 + $0x28] sm:$0xff] %vm20_vm0, %v227_v46  ;;  %v225_v54 = vadd.f32 %v209_v51, %v61_v43  ;;  %v229_v55 = vadd.f32 %v219_v52, %v65_v44 }
 0x13a   :  { %271 = vst [vmem:[%s485_s3 + $0x10] sm:$0xff] %v263_v56  ;;  %275 = vst [vmem:[%s485_s3 + $0x30] sm:$0xff] %v267_v57 }
 0x13b   :  { %233 = vst.msk [vmem:[#allocation2 + $0x18] sm:$0xff] %vm20_vm0, %v225_v54  ;;  %237 = vst.msk [vmem:[#allocation2 + $0x38] sm:$0xff] %vm20_vm0, %v229_v55 }
 0x140   :  { %v242_v59 = vld [vmem:[#allocation2 + $0x8] sm:$0xff] }
 0x141   :  { %v246_v60 = vld [vmem:[#allocation2 + $0x28] sm:$0xff]  ;;  %v262_v61 = vadd.f32 %v258_v58, %v242_v59 }
 0x142   :  { %v266_v62 = vadd.f32 %v258_v58, %v246_v60  ;;  %v244_v63 = vld [vmem:[#allocation2 + $0x18] sm:$0xff] }
 0x143   :  { %v248_v0 = vld [vmem:[#allocation2 + $0x38] sm:$0xff]  ;;  %270 = vst.msk [vmem:[%s485_s3 + $0x8] sm:$0xff] %vm20_vm0, %v262_v61  ;;  %v264_v1 = vadd.f32 %v258_v58, %v244_v63 }
 0x144   :  { %274 = vst.msk [vmem:[%s485_s3 + $0x28] sm:$0xff] %vm20_vm0, %v266_v62  ;;  %v268_v2 = vadd.f32 %v258_v58, %v248_v0 }
 0x145   :  { %272 = vst.msk [vmem:[%s485_s3 + $0x18] sm:$0xff] %vm20_vm0, %v264_v1 }
 0x146   :  { %276 = vst.msk [vmem:[%s485_s3 + $0x38] sm:$0xff] %vm20_vm0, %v268_v2 }

// kernel: bert_attention_forward.23
= control target key start
LH: loop header
LB: loop body
LE: loop exit
PB: predicated region body
PF: predicated region fallthrough
CT: control target
= control target key end

     0   :  { %vm19_vm0 = vcmask 523264   ;;  %v198_v1 = vmov 0.0   ;;  %s280_s1 = inlined_call_operand.vmem [shape: bf16[64,64], index: 1, kind: input, shape index: {}]   ;;  %s281_s0 = inlined_call_operand.vmem [shape: f32[32,64], index: 0, kind: input, shape index: {}]   ;;  %s282_s2 = inlined_call_operand.vmem [shape: f32[1,64], index: 2, kind: input, shape index: {}]   ;;  %s283_s3 = inlined_call_operand.vmem [shape: f32[32,64], index: 3, kind: output, shape index: {}]  }
   0x1   :  { %v194_v0 = vld [vmem:[%s280_s1] sm:$0xff]   ;;  %22 = vst.msk [vmem:[#allocation2 + $0x10] sm:$0xff] %vm19_vm0, %v198_v1  ;;  %20 = vst.msk [vmem:[#allocation2] sm:$0xff] %vm19_vm0, %v198_v1  ;;  %v195_v2 = vld [vmem:[%s280_s1 + $0x8] sm:$0xff]  }
   0x2   :  { %21 = vst.msk [vmem:[#allocation2 + $0x8] sm:$0xff] %vm19_vm0, %v198_v1  ;;  %23 = vst.msk [vmem:[#allocation2 + $0x18] sm:$0xff] %vm19_vm0, %v198_v1  ;;  %189 = vmatprep.subr.msk.bf16.mxu0 %vm19_vm0, %v194_v0  ;;  %v70_v3 = vsel %vm19_vm0, %v194_v0, 0  ;;  %v24_v4 = vld [vmem:[%s281_s0] sm:$0xff]  ;;  %v25_v5 = vld [vmem:[%s281_s0 + $0x8] sm:$0xff]  ;;  %v73_v7 = vsel %vm19_vm0, %v195_v2, 0 }
   0x3   :  { %178 = vmatpush3.bf16.xpose.msra.mxu0 %v70_v3  ;;  %v28_v6 = vpack.c.bf16 %v25_v5, %v24_v4  ;;  %v196_v8 = vld [vmem:[%s280_s1 + $0x10] sm:$0xff]   ;;  %v197_v10 = vld [vmem:[%s280_s1 + $0x18] sm:$0xff]   ;;  %v170_v27 = vld [vmem:[%s282_s2] ss:$0 sm:$0xff] }
   0x4   :  { %190 = vmatprep.subr.msk.bf16.mxu0 %vm19_vm0, %v195_v2  ;;  %v76_v9 = vsel %vm19_vm0, %v196_v8, 0  ;;  %v79_v11 = vsel %vm19_vm0, %v197_v10, 0  ;;  %v26_v12 = vld [vmem:[%s281_s0 + $0x10] sm:$0xff]  ;;  %v27_v13 = vld [vmem:[%s281_s0 + $0x18] sm:$0xff] }
   0x5   :  { %185 = vmatprep.mubr.msk.bf16.mxu0 %vm19_vm0, %v28_v6  ;;  %v29_v14 = vpack.c.bf16 %v27_v13, %v26_v12 }
   0x8   :  { %v40_v15 = vld [vmem:[#allocation2 + $0x10] sm:$0xff]  ;;  %v38_v16 = vld [vmem:[#allocation2] sm:$0xff] }
   0x9   :  { %v41_v18 = vld [vmem:[#allocation2 + $0x18] sm:$0xff]  ;;  %v39_v21 = vld [vmem:[#allocation2 + $0x8] sm:$0xff] }
   0xb   :  { %180 = vmatpush3.bf16.xpose.msra.mxu0 %v73_v7 }
   0xc   :  { %191 = vmatprep.subr.msk.bf16.mxu0 %vm19_vm0, %v196_v8 }
  0x13   :  { %182 = vmatpush3.bf16.xpose.msra.mxu0 %v76_v9 }
  0x14   :  { %192 = vmatprep.subr.msk.bf16.mxu0 %vm19_vm0, %v197_v10 }
  0x1b   :  { %184 = vmatpush3.bf16.xpose.msra.mxu0 %v79_v11 }
  0x22   :  { %186 = vmatmul.mubr.msk.bf16.vlgmr.msra.gmra.mrb[0].mxu0 %vm19_vm0, %v29_v14 }
  0xf5   :  { %v187_v17 = vpop.f32.mrb[0].mxu0 }
  0xf6   :  { %v132_v19 = vadd.f32 %v187_v17, %v40_v15  ;;  %v115_v20 = vpop.f32.mrb[1].mxu0 }
  0xf7   :  { %v130_v22 = vadd.f32 %v115_v20, %v38_v16  ;;  %v188_v23 = vpop.f32.mrb[2].mxu0 }
  0xf8   :  { %136 = vst.msk [vmem:[#allocation2 + $0x10] sm:$0xff] %vm19_vm0, %v132_v19  ;;  %v133_v24 = vadd.f32 %v188_v23, %v41_v18  ;;  %v118_v25 = vpop.f32.mrb[3].mxu0 }
  0xf9   :  { %134 = vst.msk [vmem:[#allocation2] sm:$0xff] %vm19_vm0, %v130_v22  ;;  %v131_v26 = vadd.f32 %v118_v25, %v39_v21 }
  0xfa   :  { %137 = vst.msk [vmem:[#allocation2 + $0x18] sm:$0xff] %vm19_vm0, %v133_v24 }
  0xfb   :  { %135 = vst.msk [vmem:[#allocation2 + $0x8] sm:$0xff] %vm19_vm0, %v131_v26 }
  0xff   :  { %v143_v28 = vld [vmem:[#allocation2 + $0x10] sm:$0xff] }
 0x100   :  { %v154_v29 = vadd.f32 %v170_v27, %v143_v28  ;;  %v141_v30 = vld [vmem:[#allocation2] sm:$0xff] }
 0x101   :  { %v152_v31 = vadd.f32 %v170_v27, %v141_v30  ;;  %v144_v32 = vld [vmem:[#allocation2 + $0x18] sm:$0xff] }
 0x102   :  { %158 = vst.msk [vmem:[%s283_s3 + $0x10] sm:$0xff] %vm19_vm0, %v154_v29  ;;  %v155_v33 = vadd.f32 %v170_v27, %v144_v32  ;;  %v142_v34 = vld [vmem:[#allocation2 + $0x8] sm:$0xff] }
 0x103   :  { %156 = vst.msk [vmem:[%s283_s3] sm:$0xff] %vm19_vm0, %v152_v31  ;;  %v153_v35 = vadd.f32 %v170_v27, %v142_v34 }
 0x104   :  { %159 = vst.msk [vmem:[%s283_s3 + $0x18] sm:$0xff] %vm19_vm0, %v155_v33 }
 0x105   :  { %157 = vst.msk [vmem:[%s283_s3 + $0x8] sm:$0xff] %vm19_vm0, %v153_v35 }

// kernel: bert_attention_forward.22
= control target key start
LH: loop header
LB: loop body
LE: loop exit
PB: predicated region body
PF: predicated region fallthrough
CT: control target
= control target key end

     0   :  { %s1655_s15 = smov 0   ;;  %s2029_s0 = inlined_call_operand.vmem [shape: f32[2,8,16,8], index: 0, kind: input, shape index: {}]   ;;  %s2030_s1 = inlined_call_operand.vmem [shape: f32[2,8,16,8], index: 1, kind: input, shape index: {}]   ;;  %s2031_s2 = inlined_call_operand.vmem [shape: f32[2,8,16,8], index: 2, kind: input, shape index: {}]   ;;  %s2032_s3 = inlined_call_operand.vmem [shape: f32[2,1,16], index: 3, kind: input, shape index: {}]   ;;  %s2033_s4 = inlined_call_operand.vmem [shape: f32[2,8,16,8], index: 4, kind: output, shape index: {}]  }
   0x1 LB: > { %s1382_s16 = sadd.s32 4294967295, %s1626_s15   ;;  %p1386_p0 = scmp.ge.s32.totalorder %s1626_s15, 1  ;;  %s1626_s15 = sphi %s1655_s15, %s14_s15  }
   0x2   : > { %p190_p1 = scmp.lt.s32.totalorder %s1626_s15, 3 }
   0x4   : > { %p191_p2 = pnand %p1386_p0, %p190_p1 }
   0x5   : > { %p229_p3 = scmp.lt.s32.totalorder (!%p191_p2), %s1382_s16, 1  ;;  %v1628_v0 = vmov (!%p191_p2), 0.0   ;;  %vm1629_vm0 = vmmov (!%p191_p2), 0   ;;  %vm325_vm1 = vcmask (!%p191_p2), 64512   ;;  %vm741_vm2 = vcmask (!%p191_p2), 130048  }
   0x6   : > { %194 = sbr.rel (%p191_p2) target bundleno = 806 (0x326), region = 36  ;;  %1450 = vmatprep.subr.bf16.mxu0 (!%p191_p2), %v1628_v0  ;;  %1456 = vmatprep.subr.bf16.mxu1 (!%p191_p2), %v1628_v0 }
   0x7   : > { %1452 = vmatprep.mubr.msk.bf16.mxu0 (!%p191_p2), %vm1629_vm0, %v1628_v0  ;;  %1458 = vmatprep.mubr.msk.bf16.mxu1 (!%p191_p2), %vm1629_vm0, %v1628_v0 }
   0xd   : > { %s2035_s16 = smov (!%p229_p3, %s1382_s16), 1 }
   0xe   : > { %s1672_s17 = sshll.u32 %s2035_s16, 7  ;;  %s246_s26 = scalar_lea.vmem %s2032_s3, %s2035_s16 }
   0xf   : > { %s1678_s20 = scalar_lea.vmem %s2030_s1, %s1672_s17  ;;  %s1688_s23 = scalar_lea.vmem %s2029_s0, %s1672_s17  ;;  %v1762_v58 = vld [vmem:[%s246_s26] ss:$0 sm:$0xff] }
  0x10   : > { %v277_v1 = vld [vmem:[%s1678_s20] sm:$0xff]  ;;  %v278_v2 = vld [vmem:[%s1678_s20 + $0x8] sm:$0xff]  ;;  %v279_v3 = vld [vmem:[%s1678_s20 + $0x10] sm:$0xff]  ;;  %s1924_s29 = scalar_lea.vmem %s2031_s2, %s1672_s17  ;;  %s1992_s6 = scalar_lea.vmem %s2033_s4, %s1672_s17 }
  0x11   : > { %v293_v4 = vpack.c.bf16 %v278_v2, %v277_v1  ;;  %v280_v5 = vld [vmem:[%s1678_s20 + $0x18] sm:$0xff]  ;;  %v281_v7 = vld [vmem:[%s1678_s20 + $0x20] sm:$0xff]  ;;  %v282_v9 = vld [vmem:[%s1678_s20 + $0x28] sm:$0xff] }
  0x12   : > { %v294_v6 = vpack.c.bf16 %v280_v5, %v279_v3  ;;  %v283_v10 = vld [vmem:[%s1678_s20 + $0x30] sm:$0xff]  ;;  %v284_v11 = vld [vmem:[%s1678_s20 + $0x38] sm:$0xff]  ;;  %v253_v13 = vld [vmem:[%s1688_s23] sm:$0xff]  ;;  %v295_v17 = vpack.c.bf16 %v282_v9, %v281_v7 }
  0x13   : > { %v330_v8 = vsel %vm325_vm1, %v293_v4, 0  ;;  %v254_v14 = vld [vmem:[%s1688_s23 + $0x8] sm:$0xff]  ;;  %v255_v15 = vld [vmem:[%s1688_s23 + $0x10] sm:$0xff]  ;;  %v256_v16 = vld [vmem:[%s1688_s23 + $0x18] sm:$0xff]  ;;  %v296_v18 = vpack.c.bf16 %v284_v11, %v283_v10 }
  0x14   : > { %1451 = vmatpush3.bf16.xpose.msra.mxu0 %v330_v8  ;;  %v377_v12 = vsel %vm325_vm1, %v294_v6, 0  ;;  %v269_v19 = vpack.c.bf16 %v254_v14, %v253_v13  ;;  %v270_v20 = vpack.c.bf16 %v256_v16, %v255_v15  ;;  %v424_v21 = vsel %vm325_vm1, %v295_v17, 0  ;;  %v285_v23 = vld [vmem:[%s1678_s20 + $0x40] sm:$0xff]  ;;  %v286_v24 = vld [vmem:[%s1678_s20 + $0x48] sm:$0xff]  ;;  %v287_v25 = vld [vmem:[%s1678_s20 + $0x50] sm:$0xff] }
  0x15   : > { %1457 = vmatpush3.bf16.xpose.msra.mxu1 %v377_v12  ;;  %1462 = vmatprep.subr.bf16.mxu0 %v1628_v0  ;;  %v471_v22 = vsel %vm325_vm1, %v296_v18, 0  ;;  %v288_v26 = vld [vmem:[%s1678_s20 + $0x58] sm:$0xff]  ;;  %v257_v27 = vld [vmem:[%s1688_s23 + $0x20] sm:$0xff]  ;;  %v258_v28 = vld [vmem:[%s1688_s23 + $0x28] sm:$0xff]  ;;  %v297_v29 = vpack.c.bf16 %v286_v24, %v285_v23 }
  0x16   : > { %1468 = vmatprep.subr.bf16.mxu1 %v1628_v0  ;;  %v259_v30 = vld [vmem:[%s1688_s23 + $0x30] sm:$0xff]  ;;  %v260_v31 = vld [vmem:[%s1688_s23 + $0x38] sm:$0xff]  ;;  %v298_v32 = vpack.c.bf16 %v288_v26, %v287_v25  ;;  %v271_v33 = vpack.c.bf16 %v258_v28, %v257_v27  ;;  %v289_v37 = vld [vmem:[%s1678_s20 + $0x60] sm:$0xff] }
  0x17   : > { %v272_v34 = vpack.c.bf16 %v260_v31, %v259_v30  ;;  %v518_v35 = vsel %vm325_vm1, %v297_v29, 0  ;;  %v290_v38 = vld [vmem:[%s1678_s20 + $0x68] sm:$0xff]  ;;  %v291_v39 = vld [vmem:[%s1678_s20 + $0x70] sm:$0xff]  ;;  %v292_v40 = vld [vmem:[%s1678_s20 + $0x78] sm:$0xff] }
  0x18   : > { %v565_v36 = vsel %vm325_vm1, %v298_v32, 0  ;;  %v261_v41 = vld [vmem:[%s1688_s23 + $0x40] sm:$0xff]  ;;  %v262_v42 = vld [vmem:[%s1688_s23 + $0x48] sm:$0xff]  ;;  %v299_v43 = vpack.c.bf16 %v290_v38, %v289_v37  ;;  %v263_v44 = vld [vmem:[%s1688_s23 + $0x50] sm:$0xff]  ;;  %v300_v46 = vpack.c.bf16 %v292_v40, %v291_v39 }
  0x19   : > { %v264_v45 = vld [vmem:[%s1688_s23 + $0x58] sm:$0xff]  ;;  %v273_v47 = vpack.c.bf16 %v262_v42, %v261_v41  ;;  %v265_v51 = vld [vmem:[%s1688_s23 + $0x60] sm:$0xff]  ;;  %v266_v52 = vld [vmem:[%s1688_s23 + $0x68] sm:$0xff] }
  0x1a   : > { %v274_v48 = vpack.c.bf16 %v264_v45, %v263_v44  ;;  %v612_v49 = vsel %vm325_vm1, %v299_v43, 0  ;;  %v659_v50 = vsel %vm325_vm1, %v300_v46, 0  ;;  %v267_v53 = vld [vmem:[%s1688_s23 + $0x70] sm:$0xff]  ;;  %v268_v54 = vld [vmem:[%s1688_s23 + $0x78] sm:$0xff]  ;;  %v275_v55 = vpack.c.bf16 %v266_v52, %v265_v51 }
  0x1b   : > { %1453 = vmatmul.mubr.msk.bf16.vlgmr.msra.gmra.mrb[0].mxu0 %vm325_vm1, %v269_v19  ;;  %v276_v56 = vpack.c.bf16 %v268_v54, %v267_v53 }
  0x1c   : > { %1459 = vmatmul.mubr.msk.bf16.vlgmr.msra.gmra.mrb[0].mxu1 %vm325_vm1, %v270_v20  ;;  %1463 = vmatpush3.bf16.xpose.msra.mxu0 %v424_v21 }
  0x1d   : > { %1469 = vmatpush3.bf16.xpose.msra.mxu1 %v471_v22  ;;  %1464 = vmatprep.mubr.msk.bf16.mxu0 %vm1629_vm0, %v1628_v0 }
  0x1e   : > { %1474 = vmatprep.subr.bf16.mxu0 %v1628_v0  ;;  %1470 = vmatprep.mubr.msk.bf16.mxu1 %vm1629_vm0, %v1628_v0 }
  0x1f   : > { %1480 = vmatprep.subr.bf16.mxu1 %v1628_v0 }
  0x23   : > { %1465 = vmatmul.mubr.msk.bf16.vlgmr.msra.gmra.mrb[4].mxu0 %vm325_vm1, %v271_v33 }
  0x24   : > { %1475 = vmatpush3.bf16.xpose.msra.mxu0 %v518_v35  ;;  %1471 = vmatmul.mubr.msk.bf16.vlgmr.msra.gmra.mrb[4].mxu1 %vm325_vm1, %v272_v34 }
  0x25   : > { %1481 = vmatpush3.bf16.xpose.msra.mxu1 %v565_v36  ;;  %1476 = vmatprep.mubr.msk.bf16.mxu0 %vm1629_vm0, %v1628_v0 }
  0x26   : > { %1486 = vmatprep.subr.bf16.mxu0 %v1628_v0  ;;  %1482 = vmatprep.mubr.msk.bf16.mxu1 %vm1629_vm0, %v1628_v0 }
  0x27   : > { %1492 = vmatprep.subr.bf16.mxu1 %v1628_v0 }
  0x2b   : > { %1477 = vmatmul.mubr.msk.bf16.vlgmr.msra.gmra.mrb[8].mxu0 %vm325_vm1, %v273_v47 }
  0x2c   : > { %1487 = vmatpush3.bf16.xpose.msra.mxu0 %v612_v49  ;;  %1483 = vmatmul.mubr.msk.bf16.vlgmr.msra.gmra.mrb[8].mxu1 %vm325_vm1, %v274_v48 }
  0x2d   : > { %1493 = vmatpush3.bf16.xpose.msra.mxu1 %v659_v50  ;;  %1488 = vmatprep.mubr.msk.bf16.mxu0 %vm1629_vm0, %v1628_v0 }
  0x2e   : > { %1494 = vmatprep.mubr.msk.bf16.mxu1 %vm1629_vm0, %v1628_v0  ;;  %1498 = vmatprep.subr.bf16.mxu0 %v1628_v0 }
  0x2f   : > { %1504 = vmatprep.subr.bf16.mxu1 %v1628_v0 }
  0x33   : > { %1489 = vmatmul.mubr.msk.bf16.vlgmr.msra.gmra.mrb[12].mxu0 %vm325_vm1, %v275_v55 }
  0x34   : > { %1495 = vmatmul.mubr.msk.bf16.vlgmr.msra.gmra.mrb[12].mxu1 %vm325_vm1, %v276_v56  ;;  %1500 = vmatprep.mubr.msk.bf16.mxu0 %vm1629_vm0, %v1628_v0 }
  0x35   : > { %1506 = vmatprep.mubr.msk.bf16.mxu1 %vm1629_vm0, %v1628_v0 }
  0xee   : > { %v366_v57 = vpop.f32.mrb[0].mxu0 }
  0xef   : > { %v702_v59 = vmul.f32 0.35355338, %v366_v57  ;;  %v413_v60 = vpop.f32.mrb[0].mxu1  ;;  %v1454_v61 = vpop.f32.mrb[1].mxu0 }
  0xf0   : > { %v704_v62 = vmul.f32 0.35355338, %v413_v60  ;;  %v369_v63 = vpop.f32.mrb[2].mxu0  ;;  %v1460_v1 = vpop.f32.mrb[1].mxu1 }
  0xf1   : > { %v703_v2 = vmul.f32 0.35355338, %v369_v63  ;;  %v1455_v3 = vpop.f32.mrb[3].mxu0  ;;  %v416_v4 = vpop.f32.mrb[2].mxu1  ;;  %v1765_v5 = vadd.f32 %v1762_v58, %v702_v59 }
  0xf2   : > { %v705_v6 = vmul.f32 0.35355338, %v416_v4  ;;  %v1461_v7 = vpop.f32.mrb[3].mxu1  ;;  %v1768_v8 = vadd.f32 %v1762_v58, %v704_v62 }
  0xf3   : > { %v742_v9 = vsel %vm741_vm2, %v1765_v5, -inf  ;;  %v1773_v10 = vadd.f32 %v1762_v58, %v703_v2 }
  0xf4   : > { %v748_v11 = vsel %vm741_vm2, %v1768_v8, -inf  ;;  %743 = vmax.xlane.f32.xlu0 %v742_v9  ;;  %v1778_v12 = vadd.f32 %v1762_v58, %v705_v6 }
  0xf5   : > { %749 = vmax.xlane.f32.xlu1 %v748_v11  ;;  %v745_v17 = vsel %vm741_vm2, %v1773_v10, -inf }
  0xf6   : > { %v460_v13 = vpop.f32.mrb[4].mxu0  ;;  %v751_v14 = vsel %vm741_vm2, %v1778_v12, -inf }
  0xf7   : > { %v706_v15 = vmul.f32 0.35355338, %v460_v13  ;;  %v1466_v16 = vpop.f32.mrb[5].mxu0  ;;  %v507_v18 = vpop.f32.mrb[4].mxu1 }
  0xf8   : > { %746 = vmax.xlane.f32.xlu0 %v745_v17  ;;  %v463_v19 = vpop.f32.mrb[6].mxu0  ;;  %v708_v20 = vmul.f32 0.35355338, %v507_v18  ;;  %v1472_v21 = vpop.f32.mrb[5].mxu1 }
  0xf9   : > { %752 = vmax.xlane.f32.xlu1 %v751_v14  ;;  %v707_v22 = vmul.f32 0.35355338, %v463_v19  ;;  %v1467_v23 = vpop.f32.mrb[7].mxu0  ;;  %v510_v24 = vpop.f32.mrb[6].mxu1  ;;  %v1785_v25 = vadd.f32 %v1762_v58, %v706_v15 }
  0xfa   : > { %v709_v26 = vmul.f32 0.35355338, %v510_v24  ;;  %v1473_v27 = vpop.f32.mrb[7].mxu1  ;;  %v1788_v28 = vadd.f32 %v1762_v58, %v708_v20 }
  0xfb   : > { %v754_v29 = vsel %vm741_vm2, %v1785_v25, -inf  ;;  %v1793_v30 = vadd.f32 %v1762_v58, %v707_v22 }
  0xfc   : > { %755 = vmax.xlane.f32.xlu0 %v754_v29  ;;  %v1796_v31 = vadd.f32 %v1762_v58, %v709_v26  ;;  %v760_v33 = vsel %vm741_vm2, %v1788_v28, -inf }
  0xfd   : > { %v757_v32 = vsel %vm741_vm2, %v1793_v30, -inf }
  0xfe   : > { %758 = vmax.xlane.f32.xlu1 %v757_v32  ;;  %v554_v34 = vpop.f32.mrb[8].mxu0  ;;  %v763_v38 = vsel %vm741_vm2, %v1796_v31, -inf }
  0xff   : > { %v710_v35 = vmul.f32 0.35355338, %v554_v34  ;;  %v1478_v36 = vpop.f32.mrb[9].mxu0  ;;  %v601_v37 = vpop.f32.mrb[8].mxu1 }
 0x100   : > { %761 = vmax.xlane.f32.xlu0 %v760_v33  ;;  %v557_v39 = vpop.f32.mrb[10].mxu0  ;;  %v712_v40 = vmul.f32 0.35355338, %v601_v37  ;;  %v1484_v41 = vpop.f32.mrb[9].mxu1 }
 0x101   : > { %v711_v42 = vmul.f32 0.35355338, %v557_v39  ;;  %v1479_v43 = vpop.f32.mrb[11].mxu0  ;;  %v604_v44 = vpop.f32.mrb[10].mxu1  ;;  %v1805_v45 = vadd.f32 %v1762_v58, %v710_v35 }
 0x102   : > { %764 = vmax.xlane.f32.xlu1 %v763_v38  ;;  %v713_v46 = vmul.f32 0.35355338, %v604_v44  ;;  %v1485_v47 = vpop.f32.mrb[11].mxu1  ;;  %v1808_v48 = vadd.f32 %v1762_v58, %v712_v40 }
 0x103   : > { %v766_v49 = vsel %vm741_vm2, %v1805_v45, -inf  ;;  %v1813_v50 = vadd.f32 %v1762_v58, %v711_v42 }
 0x104   : > { %767 = vmax.xlane.f32.xlu0 %v766_v49  ;;  %v1816_v51 = vadd.f32 %v1762_v58, %v713_v46  ;;  %v772_v53 = vsel %vm741_vm2, %v1808_v48, -inf }
 0x105   : > { %v769_v52 = vsel %vm741_vm2, %v1813_v50, -inf }
 0x106   : > { %770 = vmax.xlane.f32.xlu1 %v769_v52  ;;  %v648_v54 = vpop.f32.mrb[12].mxu0  ;;  %v775_v59 = vsel %vm741_vm2, %v1816_v51, -inf }
 0x107   : > { %v714_v55 = vmul.f32 0.35355338, %v648_v54  ;;  %v1490_v56 = vpop.f32.mrb[13].mxu0  ;;  %v695_v57 = vpop.f32.mrb[12].mxu1 }
 0x108   : > { %773 = vmax.xlane.f32.xlu0 %v772_v53  ;;  %v651_v60 = vpop.f32.mrb[14].mxu0  ;;  %v716_v61 = vmul.f32 0.35355338, %v695_v57  ;;  %v1496_v62 = vpop.f32.mrb[13].mxu1 }
 0x109   : > { %v715_v63 = vmul.f32 0.35355338, %v651_v60  ;;  %v1491_v1 = vpop.f32.mrb[15].mxu0  ;;  %v698_v2 = vpop.f32.mrb[14].mxu1  ;;  %v1825_v3 = vadd.f32 %v1762_v58, %v714_v55 }
 0x10a   : > { %776 = vmax.xlane.f32.xlu1 %v775_v59  ;;  %v717_v4 = vmul.f32 0.35355338, %v698_v2  ;;  %v1497_v6 = vpop.f32.mrb[15].mxu1  ;;  %v1828_v7 = vadd.f32 %v1762_v58, %v716_v61 }
 0x10b   : > { %v778_v9 = vsel %vm741_vm2, %v1825_v3, -inf  ;;  %v1833_v11 = vadd.f32 %v1762_v58, %v715_v63 }
 0x10c   : > { %779 = vmax.xlane.f32.xlu0 %v778_v9  ;;  %v1836_v13 = vadd.f32 %v1762_v58, %v717_v4  ;;  %v784_v15 = vsel %vm741_vm2, %v1828_v7, -inf }
 0x10d   : > { %v781_v14 = vsel %vm741_vm2, %v1833_v11, -inf }
 0x10e   : > { %782 = vmax.xlane.f32.xlu1 %v781_v14  ;;  %v787_v16 = vsel %vm741_vm2, %v1836_v13, -inf }
 0x110   : > { %785 = vmax.xlane.f32.xlu0 %v784_v15 }
 0x112   : > { %788 = vmax.xlane.f32.xlu1 %v787_v16 }
 0x181   : > { %v744_v17 = vpop.xlane.xlu0 %743 }
 0x182   : > { %v750_v18 = vpop.xlane.xlu1 %749  ;;  %v790_v19 = vsub.f32 %v1765_v5, %v744_v17 }
 0x183   : > { %v792_v20 = vsub.f32 %v1768_v8, %v750_v18 }
 0x184   : > { %v806_v58 = vmul.f32 1.442695, %v790_v19 }
 0x185   : > { %v810_v21 = vmul.f32 1.442695, %v792_v20  ;;  %v747_v22 = vpop.xlane.xlu0 %746 }
 0x186   : > { %1556 = vpow2.f32 %v806_v58  ;;  %v753_v23 = vpop.xlane.xlu1 %752  ;;  %v791_v24 = vsub.f32 %v1773_v10, %v747_v22 }
 0x187   : > { %v793_v26 = vsub.f32 %v1778_v12, %v753_v23  ;;  %1558 = vpow2.f32 %v810_v21 }
 0x188   : > { %v808_v27 = vmul.f32 1.442695, %v791_v24 }
 0x189   : > { %v812_v29 = vmul.f32 1.442695, %v793_v26  ;;  %v756_v32 = vpop.xlane.xlu0 %755 }
 0x18a   : > { %1560 = vpow2.f32 %v808_v27  ;;  %v794_v33 = vsub.f32 %v1785_v25, %v756_v32 }
 0x18b   : > { %v759_v34 = vpop.xlane.xlu1 %758  ;;  %1562 = vpow2.f32 %v812_v29 }
 0x18c   : > { %v814_v5 = vmul.f32 1.442695, %v794_v33  ;;  %v795_v8 = vsub.f32 %v1793_v30, %v759_v34 }
 0x18d   : > { %v762_v35 = vpop.xlane.xlu0 %761 }
 0x18e   : > { %1564 = vpow2.f32 %v814_v5  ;;  %v816_v36 = vmul.f32 1.442695, %v795_v8  ;;  %v796_v37 = vsub.f32 %v1788_v28, %v762_v35  ;;  %v301_v8 = vld [vmem:[%s1924_s29] sm:$0xff]  ;;  %v302_v35 = vld [vmem:[%s1924_s29 + $0x8] sm:$0xff] }
 0x18f   : > { %v765_v10 = vpop.xlane.xlu1 %764 }
 0x190   : > { %v1851_v38 = vpop.eup %1556  ;;  %1566 = vpow2.f32 %v816_v36  ;;  %v818_v12 = vmul.f32 1.442695, %v796_v37  ;;  %v797_v39 = vsub.f32 %v1796_v31, %v765_v10  ;;  %v317_v36 = vpack.c.bf16 %v302_v35, %v301_v8  ;;  %v303_v10 = vld [vmem:[%s1924_s29 + $0x10] sm:$0xff] }
 0x191   : > { %v768_v40 = vpop.xlane.xlu0 %767  ;;  %v838_v25 = vsel %vm741_vm2, %v1851_v38, 0.0  ;;  %v1856_v41 = vpop.eup %1558 }
 0x192   : > { %1568 = vpow2.f32 %v818_v12  ;;  %v820_v30 = vmul.f32 1.442695, %v797_v39  ;;  %v798_v42 = vsub.f32 %v1805_v45, %v768_v40  ;;  %839 = vadd.xlane.f32.xlu0 %v838_v25  ;;  %v844_v31 = vsel %vm741_vm2, %v1856_v41, 0.0  ;;  %1499 = vmatpush3.bf16.msra.mxu0 %v317_v36  ;;  %v304_v12 = vld [vmem:[%s1924_s29 + $0x18] sm:$0xff]  ;;  %v313_v36 = vld [vmem:[%s1924_s29 + $0x60] sm:$0xff] }
 0x193   : > { %v771_v43 = vpop.xlane.xlu1 %770  ;;  %1510 = vmatprep.subr.bf16.mxu0 %v1628_v0  ;;  %v318_v39 = vpack.c.bf16 %v304_v12, %v303_v10 }
 0x194   : > { %v1859_v28 = vpop.eup %1560  ;;  %1570 = vpow2.f32 %v820_v30  ;;  %v822_v44 = vmul.f32 1.442695, %v798_v42  ;;  %v799_v46 = vsub.f32 %v1813_v50, %v771_v43 }
 0x195   : > { %v774_v47 = vpop.xlane.xlu0 %773  ;;  %v841_v49 = vsel %vm741_vm2, %v1859_v28, 0.0  ;;  %v1866_v52 = vpop.eup %1562  ;;  %1505 = vmatpush3.bf16.msra.mxu1 %v318_v39 }
 0x196   : > { %1572 = vpow2.f32 %v822_v44  ;;  %v824_v53 = vmul.f32 1.442695, %v799_v46  ;;  %v800_v45 = vsub.f32 %v1808_v48, %v774_v47  ;;  %845 = vadd.xlane.f32.xlu0 %v844_v31  ;;  %842 = vadd.xlane.f32.xlu1 %v841_v49  ;;  %v847_v60 = vsel %vm741_vm2, %v1866_v52, 0.0  ;;  %v305_v31 = vld [vmem:[%s1924_s29 + $0x20] sm:$0xff]  ;;  %v306_v49 = vld [vmem:[%s1924_s29 + $0x28] sm:$0xff] }
 0x197   : > { %v777_v54 = vpop.xlane.xlu1 %776  ;;  %1516 = vmatprep.subr.bf16.mxu1 %v1628_v0 }
 0x198   : > { %v1869_v55 = vpop.eup %1564  ;;  %1574 = vpow2.f32 %v824_v53  ;;  %v826_v50 = vmul.f32 1.442695, %v800_v45  ;;  %v801_v56 = vsub.f32 %v1816_v51, %v777_v54 }
 0x199   : > { %v780_v57 = vpop.xlane.xlu0 %779  ;;  %v850_v59 = vsel %vm741_vm2, %v1869_v55, 0.0 }
 0x19a   : > { %v1876_v61 = vpop.eup %1566  ;;  %1576 = vpow2.f32 %v826_v50  ;;  %v828_v48 = vmul.f32 1.442695, %v801_v56  ;;  %v802_v62 = vsub.f32 %v1825_v3, %v780_v57  ;;  %851 = vadd.xlane.f32.xlu0 %v850_v59  ;;  %848 = vadd.xlane.f32.xlu1 %v847_v60  ;;  %v319_v59 = vpack.c.bf16 %v306_v49, %v305_v31 }
 0x19b   : > { %v783_v63 = vpop.xlane.xlu1 %782  ;;  %v853_v9 = vsel %vm741_vm2, %v1876_v61, 0.0 }
 0x19c   : > { %v1879_v1 = vpop.eup %1568  ;;  %1578 = vpow2.f32 %v828_v48  ;;  %v830_v51 = vmul.f32 1.442695, %v802_v62  ;;  %v803_v2 = vsub.f32 %v1833_v11, %v783_v63  ;;  %v307_v48 = vld [vmem:[%s1924_s29 + $0x30] sm:$0xff]  ;;  %v308_v62 = vld [vmem:[%s1924_s29 + $0x38] sm:$0xff] }
 0x19d   : > { %v786_v4 = vpop.xlane.xlu0 %785  ;;  %v856_v6 = vsel %vm741_vm2, %v1879_v1, 0.0 }
 0x19e   : > { %v1886_v14 = vpop.eup %1570  ;;  %1580 = vpow2.f32 %v830_v51  ;;  %v832_v3 = vmul.f32 1.442695, %v803_v2  ;;  %v804_v15 = vsub.f32 %v1828_v7, %v786_v4  ;;  %857 = vadd.xlane.f32.xlu0 %v856_v6  ;;  %854 = vadd.xlane.f32.xlu1 %v853_v9 }
 0x19f   : > { %v789_v16 = vpop.xlane.xlu1 %788  ;;  %v859_v20 = vsel %vm741_vm2, %v1886_v14, 0.0 }
 0x1a0   : > { %v1889_v17 = vpop.eup %1572  ;;  %1582 = vpow2.f32 %v832_v3  ;;  %v834_v11 = vmul.f32 1.442695, %v804_v15  ;;  %v805_v18 = vsub.f32 %v1836_v13, %v789_v16  ;;  %v309_v3 = vld [vmem:[%s1924_s29 + $0x40] sm:$0xff]  ;;  %v310_v15 = vld [vmem:[%s1924_s29 + $0x48] sm:$0xff] }
 0x1a1   : > { %v862_v19 = vsel %vm741_vm2, %v1889_v17, 0.0 }
 0x1a2   : > { %v1896_v58 = vpop.eup %1574  ;;  %1584 = vpow2.f32 %v834_v11  ;;  %v836_v21 = vmul.f32 1.442695, %v805_v18  ;;  %863 = vadd.xlane.f32.xlu0 %v862_v19  ;;  %860 = vadd.xlane.f32.xlu1 %v859_v20  ;;  %v321_v20 = vpack.c.bf16 %v310_v15, %v309_v3 }
 0x1a3   : > { %v865_v13 = vsel %vm741_vm2, %v1896_v58, 0.0 }
 0x1a4   : > { %v1898_v7 = vpop.eup %1576  ;;  %1586 = vpow2.f32 %v836_v21 }
 0x1a5   : > { %v868_v22 = vsel %vm741_vm2, %v1898_v7, 0.0 }
 0x1a6   : > { %v1904_v23 = vpop.eup %1578  ;;  %869 = vadd.xlane.f32.xlu0 %v868_v22  ;;  %866 = vadd.xlane.f32.xlu1 %v865_v13  ;;  %v311_v22 = vld [vmem:[%s1924_s29 + $0x50] sm:$0xff]  ;;  %v312_v13 = vld [vmem:[%s1924_s29 + $0x58] sm:$0xff] }
 0x1a7   : > { %v871_v27 = vsel %vm741_vm2, %v1904_v23, 0.0  ;;  %v322_v8 = vpack.c.bf16 %v312_v13, %v311_v22 }
 0x1a8   : > { %v1906_v24 = vpop.eup %1580 }
 0x1a9   : > { %v874_v26 = vsel %vm741_vm2, %v1906_v24, 0.0 }
 0x1aa   : > { %v1912_v29 = vpop.eup %1582  ;;  %875 = vadd.xlane.f32.xlu0 %v874_v26  ;;  %872 = vadd.xlane.f32.xlu1 %v871_v27 }
 0x1ab   : > { %v877_v34 = vsel %vm741_vm2, %v1912_v29, 0.0 }
 0x1ac   : > { %v1914_v32 = vpop.eup %1584 }
 0x1ad   : > { %v880_v33 = vsel %vm741_vm2, %v1914_v32, 0.0 }
 0x1ae   : > { %v1926_v5 = vpop.eup %1586  ;;  %881 = vadd.xlane.f32.xlu0 %v880_v33  ;;  %878 = vadd.xlane.f32.xlu1 %v877_v34 }
 0x1af   : > { %v883_v37 = vsel %vm741_vm2, %v1926_v5, 0.0 }
 0x1b2   : > { %884 = vadd.xlane.f32.xlu1 %v883_v37  ;;  %v314_v37 = vld [vmem:[%s1924_s29 + $0x68] sm:$0xff] }
 0x21f   : > { %v840_v40 = vpop.xlane.xlu0 %839 }
 0x220   : > { %1588 = vrcp.f32 %v840_v40  ;;  %v323_v40 = vpack.c.bf16 %v314_v37, %v313_v36 }
 0x223   : > { %v846_v25 = vpop.xlane.xlu0 %845  ;;  %v843_v30 = vpop.xlane.xlu1 %842 }
 0x224   : > { %1590 = vrcp.f32 %v843_v30  ;;  %v315_v30 = vld [vmem:[%s1924_s29 + $0x70] sm:$0xff] }
 0x225   : > { %1592 = vrcp.f32 %v846_v25 }
 0x227   : > { %v852_v42 = vpop.xlane.xlu0 %851  ;;  %v849_v43 = vpop.xlane.xlu1 %848 }
 0x228   : > { %1594 = vrcp.f32 %v849_v43 }
 0x229   : > { %1596 = vrcp.f32 %v852_v42  ;;  %v316_v42 = vld [vmem:[%s1924_s29 + $0x78] sm:$0xff] }
 0x22a   : > { %v1589_v47 = vpop.eup %1588 }
 0x22b   : > { %v858_v44 = vpop.xlane.xlu0 %857  ;;  %v855_v46 = vpop.xlane.xlu1 %854  ;;  %v902_v50 = vmul.f32 %v1589_v47, %v1851_v38 }
 0x22c   : > { %1598 = vrcp.f32 %v855_v46  ;;  %v324_v46 = vpack.c.bf16 %v316_v42, %v315_v30 }
 0x22d   : > { %1600 = vrcp.f32 %v858_v44 }
 0x22e   : > { %v1591_v53 = vpop.eup %1590 }
 0x22f   : > { %v864_v45 = vpop.xlane.xlu0 %863  ;;  %v861_v54 = vpop.xlane.xlu1 %860  ;;  %v903_v56 = vmul.f32 %v1591_v53, %v1859_v28  ;;  %v320_v28 = vpack.c.bf16 %v308_v62, %v307_v48 }
 0x230   : > { %v1593_v57 = vpop.eup %1592  ;;  %1602 = vrcp.f32 %v861_v54 }
 0x231   : > { %v918_v60 = vpack.c.bf16 %v903_v56, %v902_v50  ;;  %1604 = vrcp.f32 %v864_v45  ;;  %v904_v4 = vmul.f32 %v1593_v57, %v1856_v41 }
 0x232   : > { %v1595_v63 = vpop.eup %1594 }
 0x233   : > { %v870_v51 = vpop.xlane.xlu0 %869  ;;  %v867_v2 = vpop.xlane.xlu1 %866  ;;  %v905_v6 = vmul.f32 %v1595_v63, %v1866_v52  ;;  %1501 = vmatmul.mubr.msk.bf16.vlgmr.msra.gmra.mrb[16].mxu0 %vm741_vm2, %v918_v60 }
 0x234   : > { %v1597_v38 = vpop.eup %1596  ;;  %1606 = vrcp.f32 %v867_v2  ;;  %1511 = vmatpush3.bf16.msra.mxu0 %v319_v59  ;;  %1512 = vmatprep.mubr.msk.bf16.mxu0 %vm1629_vm0, %v1628_v0 }
 0x235   : > { %v919_v9 = vpack.c.bf16 %v905_v6, %v904_v4  ;;  %1522 = vmatprep.subr.bf16.mxu0 %v1628_v0  ;;  %1608 = vrcp.f32 %v870_v51  ;;  %v906_v11 = vmul.f32 %v1597_v38, %v1869_v55 }
 0x236   : > { %v1599_v16 = vpop.eup %1598 }
 0x237   : > { %v876_v41 = vpop.xlane.xlu0 %875  ;;  %v873_v52 = vpop.xlane.xlu1 %872  ;;  %v907_v18 = vmul.f32 %v1599_v16, %v1876_v61  ;;  %1507 = vmatmul.mubr.msk.bf16.vlgmr.msra.gmra.mrb[16].mxu1 %vm741_vm2, %v919_v9 }
 0x238   : > { %v1601_v19 = vpop.eup %1600  ;;  %1517 = vmatpush3.bf16.msra.mxu1 %v320_v28  ;;  %1610 = vrcp.f32 %v873_v52  ;;  %1518 = vmatprep.mubr.msk.bf16.mxu1 %vm1629_vm0, %v1628_v0 }
 0x239   : > { %v920_v21 = vpack.c.bf16 %v907_v18, %v906_v11  ;;  %1528 = vmatprep.subr.bf16.mxu1 %v1628_v0  ;;  %1612 = vrcp.f32 %v876_v41  ;;  %v908_v27 = vmul.f32 %v1601_v19, %v1879_v1 }
 0x23a   : > { %v1603_v26 = vpop.eup %1602 }
 0x23b   : > { %v882_v55 = vpop.xlane.xlu0 %881  ;;  %v879_v61 = vpop.xlane.xlu1 %878  ;;  %v909_v33 = vmul.f32 %v1603_v26, %v1886_v14  ;;  %1513 = vmatmul.mubr.msk.bf16.vlgmr.msra.gmra.mrb[20].mxu0 %vm741_vm2, %v920_v21 }
 0x23c   : > { %v1605_v34 = vpop.eup %1604  ;;  %1614 = vrcp.f32 %v879_v61  ;;  %1523 = vmatpush3.bf16.msra.mxu0 %v321_v20  ;;  %1524 = vmatprep.mubr.msk.bf16.mxu0 %vm1629_vm0, %v1628_v0 }
 0x23d   : > { %1616 = vrcp.f32 %v882_v55  ;;  %v921_v35 = vpack.c.bf16 %v909_v33, %v908_v27  ;;  %1534 = vmatprep.subr.bf16.mxu0 %v1628_v0  ;;  %v910_v14 = vmul.f32 %v1605_v34, %v1889_v17 }
 0x23e   : > { %v1607_v1 = vpop.eup %1606 }
 0x23f   : > { %v885_v10 = vpop.xlane.xlu1 %884  ;;  %v911_v12 = vmul.f32 %v1607_v1, %v1896_v58  ;;  %1519 = vmatmul.mubr.msk.bf16.vlgmr.msra.gmra.mrb[20].mxu1 %vm741_vm2, %v921_v35  ;;  %v1609_v39 = vpop.eup %1608 }
 0x240   : > { %1618 = vrcp.f32 %v885_v10  ;;  %1529 = vmatpush3.bf16.msra.mxu1 %v322_v8  ;;  %1530 = vmatprep.mubr.msk.bf16.mxu1 %vm1629_vm0, %v1628_v0  ;;  %v912_v44 = vmul.f32 %v1609_v39, %v1898_v7 }
 0x241   : > { %v922_v25 = vpack.c.bf16 %v911_v12, %v910_v14  ;;  %1540 = vmatprep.subr.bf16.mxu1 %v1628_v0 }
 0x242   : > { %v1611_v43 = vpop.eup %1610 }
 0x243   : > { %v913_v17 = vmul.f32 %v1611_v43, %v1904_v23  ;;  %1525 = vmatmul.mubr.msk.bf16.vlgmr.msra.gmra.mrb[24].mxu0 %vm741_vm2, %v922_v25  ;;  %v1613_v58 = vpop.eup %1612 }
 0x244   : > { %1535 = vmatpush3.bf16.msra.mxu0 %v323_v40  ;;  %1536 = vmatprep.mubr.msk.bf16.mxu0 %vm1629_vm0, %v1628_v0  ;;  %v914_v53 = vmul.f32 %v1613_v58, %v1906_v24 }
 0x245   : > { %v923_v47 = vpack.c.bf16 %v913_v17, %v912_v44 }
 0x246   : > { %v1615_v31 = vpop.eup %1614 }
 0x247   : > { %v1617_v49 = vpop.eup %1616  ;;  %v915_v45 = vmul.f32 %v1615_v31, %v1912_v29  ;;  %1531 = vmatmul.mubr.msk.bf16.vlgmr.msra.gmra.mrb[24].mxu1 %vm741_vm2, %v923_v47 }
 0x248   : > { %1541 = vmatpush3.bf16.msra.mxu1 %v324_v46  ;;  %1542 = vmatprep.mubr.msk.bf16.mxu1 %vm1629_vm0, %v1628_v0  ;;  %v916_v54 = vmul.f32 %v1617_v49, %v1914_v32 }
 0x249   : > { %v924_v23 = vpack.c.bf16 %v915_v45, %v914_v53 }
 0x24a   : > { %v1619_v7 = vpop.eup %1618 }
 0x24b   : > { %v917_v50 = vmul.f32 %v1619_v7, %v1926_v5  ;;  %1537 = vmatmul.mubr.msk.bf16.vlgmr.msra.gmra.mrb[28].mxu0 %vm741_vm2, %v924_v23 }
 0x24d   : > { %v925_v56 = vpack.c.bf16 %v917_v50, %v916_v54 }
 0x24f   : > { %1543 = vmatmul.mubr.msk.bf16.vlgmr.msra.gmra.mrb[28].mxu1 %vm741_vm2, %v925_v56 }
 0x306   : > { %v963_v0 = vpop.f32.mrb[16].mxu0 }
 0x307   : > { %1278 = vst.msk [vmem:[%s1992_s6] sm:$0xff] %vm325_vm1, %v963_v0  ;;  %v1502_v24 = vpop.f32.mrb[17].mxu0 }
 0x308   : > { %v966_v29 = vpop.f32.mrb[18].mxu0 }
 0x309   : > { %1279 = vst.msk [vmem:[%s1992_s6 + $0x8] sm:$0xff] %vm325_vm1, %v966_v29  ;;  %v1503_v32 = vpop.f32.mrb[19].mxu0 }
 0x30a   : > { %v1007_v5 = vpop.f32.mrb[16].mxu1 }
 0x30b   : > { %1280 = vst.msk [vmem:[%s1992_s6 + $0x10] sm:$0xff] %vm325_vm1, %v1007_v5  ;;  %v1508_v57 = vpop.f32.mrb[17].mxu1 }
 0x30c   : > { %v1010_v59 = vpop.f32.mrb[18].mxu1 }
 0x30d   : > { %1281 = vst.msk [vmem:[%s1992_s6 + $0x18] sm:$0xff] %vm325_vm1, %v1010_v59  ;;  %v1509_v60 = vpop.f32.mrb[19].mxu1 }
 0x30e   : > { %v1051_v48 = vpop.f32.mrb[20].mxu0 }
 0x30f   : > { %1282 = vst.msk [vmem:[%s1992_s6 + $0x20] sm:$0xff] %vm325_vm1, %v1051_v48  ;;  %v1514_v62 = vpop.f32.mrb[21].mxu0 }
 0x310   : > { %v1054_v63 = vpop.f32.mrb[22].mxu0 }
 0x311   : > { %1283 = vst.msk [vmem:[%s1992_s6 + $0x28] sm:$0xff] %vm325_vm1, %v1054_v63  ;;  %v1515_v51 = vpop.f32.mrb[23].mxu0 }
 0x312   : > { %v1095_v2 = vpop.f32.mrb[20].mxu1 }
 0x313   : > { %1284 = vst.msk [vmem:[%s1992_s6 + $0x30] sm:$0xff] %vm325_vm1, %v1095_v2  ;;  %v1520_v4 = vpop.f32.mrb[21].mxu1 }
 0x314   : > { %v1098_v6 = vpop.f32.mrb[22].mxu1 }
 0x315   : > { %1285 = vst.msk [vmem:[%s1992_s6 + $0x38] sm:$0xff] %vm325_vm1, %v1098_v6  ;;  %v1521_v38 = vpop.f32.mrb[23].mxu1 }
 0x316   : > { %v1139_v28 = vpop.f32.mrb[24].mxu0 }
 0x317   : > { %1286 = vst.msk [vmem:[%s1992_s6 + $0x40] sm:$0xff] %vm325_vm1, %v1139_v28  ;;  %v1526_v9 = vpop.f32.mrb[25].mxu0 }
 0x318   : > { %v1142_v3 = vpop.f32.mrb[26].mxu0 }
 0x319   : > { %1287 = vst.msk [vmem:[%s1992_s6 + $0x48] sm:$0xff] %vm325_vm1, %v1142_v3  ;;  %v1527_v15 = vpop.f32.mrb[27].mxu0 }
 0x31a   : > { %v1183_v16 = vpop.f32.mrb[24].mxu1 }
 0x31b   : > { %1288 = vst.msk [vmem:[%s1992_s6 + $0x50] sm:$0xff] %vm325_vm1, %v1183_v16  ;;  %v1532_v41 = vpop.f32.mrb[25].mxu1 }
 0x31c   : > { %v1186_v52 = vpop.f32.mrb[26].mxu1 }
 0x31d   : > { %1289 = vst.msk [vmem:[%s1992_s6 + $0x58] sm:$0xff] %vm325_vm1, %v1186_v52  ;;  %v1533_v11 = vpop.f32.mrb[27].mxu1 }
 0x31e   : > { %v1227_v18 = vpop.f32.mrb[28].mxu0 }
 0x31f   : > { %1290 = vst.msk [vmem:[%s1992_s6 + $0x60] sm:$0xff] %vm325_vm1, %v1227_v18  ;;  %v1538_v19 = vpop.f32.mrb[29].mxu0 }
 0x320   : > { %v1230_v20 = vpop.f32.mrb[30].mxu0 }
 0x321   : > { %1291 = vst.msk [vmem:[%s1992_s6 + $0x68] sm:$0xff] %vm325_vm1, %v1230_v20  ;;  %v1539_v21 = vpop.f32.mrb[31].mxu0 }
 0x322   : > { %v1271_v22 = vpop.f32.mrb[28].mxu1 }
 0x323   : > { %1292 = vst.msk [vmem:[%s1992_s6 + $0x70] sm:$0xff] %vm325_vm1, %v1271_v22  ;;  %v1544_v13 = vpop.f32.mrb[29].mxu1 }
 0x324   : > { %v1274_v26 = vpop.f32.mrb[30].mxu1 }
 0x325   : > { %1293 = vst.msk [vmem:[%s1992_s6 + $0x78] sm:$0xff] %vm325_vm1, %v1274_v26  ;;  %v1545_v55 = vpop.f32.mrb[31].mxu1 }
 0x326 PF: > { %s14_s15 = sadd.s32 1, %s1626_s15  }
 0x327   : > { %p11_p4 = scmp.ge.s32.totalorder %s14_s15, 4  }
 0x329   :  { %13 = sbr.rel (!%p11_p4) target bundleno = 1 (0x1), region = 75 }

// kernel: bert_attention_forward.24
= control target key start
LH: loop header
LB: loop body
LE: loop exit
PB: predicated region body
PF: predicated region fallthrough
CT: control target
= control target key end

     0   :  { %vm29_vm0 = vcmask 523264   ;;  %s202_s0 = inlined_call_operand.vmem [shape: f32[32,64], index: 0, kind: input, shape index: {}]   ;;  %s203_s1 = inlined_call_operand.vmem [shape: f32[32,64], index: 1, kind: input, shape index: {}]   ;;  %s204_s2 = inlined_call_operand.vmem [shape: f32[1,64], index: 2, kind: input, shape index: {}]   ;;  %s205_s3 = inlined_call_operand.vmem [shape: f32[1,64], index: 3, kind: input, shape index: {}]   ;;  %s206_s4 = inlined_call_operand.vmem [shape: f32[32,64], index: 4, kind: output, shape index: {}]  }
   0x1   :  { %v17_v0 = vld [vmem:[%s202_s0] sm:$0xff]  ;;  %v19_v2 = vld [vmem:[%s202_s0 + $0x10] sm:$0xff]  ;;  %v18_v5 = vld [vmem:[%s202_s0 + $0x8] sm:$0xff] }
   0x2   :  { %v21_v1 = vld [vmem:[%s203_s1] sm:$0xff]  ;;  %v23_v4 = vld [vmem:[%s203_s1 + $0x10] sm:$0xff]  ;;  %v22_v6 = vld [vmem:[%s203_s1 + $0x8] sm:$0xff] }
   0x3   :  { %v25_v3 = vadd.f32 %v21_v1, %v17_v0  ;;  %v27_v7 = vadd.f32 %v23_v4, %v19_v2  ;;  %v26_v8 = vadd.f32 %v22_v6, %v18_v5  ;;  %v20_v9 = vld [vmem:[%s202_s0 + $0x18] sm:$0xff]  ;;  %v113_v49 = vld [vmem:[%s204_s2] ss:$0 sm:$0xff] }
   0x4   :  { %v24_v10 = vld [vmem:[%s203_s1 + $0x18] sm:$0xff]  ;;  %v114_v51 = vld [vmem:[%s205_s3] ss:$0 sm:$0xff] }
   0x5   :  { %v30_v11 = vsel %vm29_vm0, %v25_v3, 0.0  ;;  %v28_v12 = vadd.f32 %v24_v10, %v20_v9  ;;  %v36_v13 = vsel %vm29_vm0, %v27_v7, 0.0  ;;  %v33_v14 = vsel %vm29_vm0, %v26_v8, 0.0 }
   0x6   :  { %31 = vadd.xlane.f32.xlu0 %v30_v11  ;;  %37 = vadd.xlane.f32.xlu1 %v36_v13 }
   0x7   :  { %v39_v15 = vsel %vm29_vm0, %v28_v12, 0.0 }
   0xa   :  { %34 = vadd.xlane.f32.xlu0 %v33_v14  ;;  %40 = vadd.xlane.f32.xlu1 %v39_v15 }
  0x93   :  { %v32_v16 = vpop.xlane.xlu0 %31  ;;  %v38_v18 = vpop.xlane.xlu1 %37 }
  0x94   :  { %v43_v17 = vmul.f32 0.015625, %v32_v16  ;;  %v45_v19 = vmul.f32 0.015625, %v38_v18 }
  0x96   :  { %v47_v20 = vsub.f32 %v25_v3, %v43_v17  ;;  %v49_v21 = vsub.f32 %v27_v7, %v45_v19 }
  0x97   :  { %v35_v22 = vpop.xlane.xlu0 %34  ;;  %v41_v24 = vpop.xlane.xlu1 %40 }
  0x98   :  { %v44_v23 = vmul.f32 0.015625, %v35_v22  ;;  %v51_v25 = vmul.f32 %v47_v20, %v47_v20  ;;  %v46_v26 = vmul.f32 0.015625, %v41_v24  ;;  %v53_v27 = vmul.f32 %v49_v21, %v49_v21 }
  0x9a   :  { %v48_v28 = vsub.f32 %v26_v8, %v44_v23  ;;  %v55_v29 = vsel %vm29_vm0, %v51_v25, 0.0  ;;  %v50_v30 = vsub.f32 %v28_v12, %v46_v26  ;;  %v61_v31 = vsel %vm29_vm0, %v53_v27, 0.0 }
  0x9b   :  { %56 = vadd.xlane.f32.xlu0 %v55_v29 }
  0x9c   :  { %v52_v32 = vmul.f32 %v48_v28, %v48_v28  ;;  %v54_v33 = vmul.f32 %v50_v30, %v50_v30 }
  0x9e   :  { %v58_v34 = vsel %vm29_vm0, %v52_v32, 0.0  ;;  %v64_v35 = vsel %vm29_vm0, %v54_v33, 0.0 }
  0x9f   :  { %62 = vadd.xlane.f32.xlu0 %v61_v31  ;;  %59 = vadd.xlane.f32.xlu1 %v58_v34 }
  0xa3   :  { %65 = vadd.xlane.f32.xlu1 %v64_v35 }
 0x128   :  { %v57_v36 = vpop.xlane.xlu0 %56 }
 0x129   :  { %v67_v37 = vmul.f32 0.015625, %v57_v36 }
 0x12b   :  { %v71_v38 = vadd.f32 1e-12, %v67_v37 }
 0x12c   :  { %v60_v39 = vpop.xlane.xlu1 %59  ;;  %v63_v40 = vpop.xlane.xlu0 %62 }
 0x12d   :  { %115 = vrsqrt.f32 %v71_v38  ;;  %v68_v41 = vmul.f32 0.015625, %v60_v39  ;;  %v69_v42 = vmul.f32 0.015625, %v63_v40 }
 0x12f   :  { %v72_v43 = vadd.f32 1e-12, %v68_v41  ;;  %v73_v44 = vadd.f32 1e-12, %v69_v42 }
 0x130   :  { %v66_v45 = vpop.xlane.xlu1 %65 }
 0x131   :  { %117 = vrsqrt.f32 %v72_v43  ;;  %v70_v46 = vmul.f32 0.015625, %v66_v45 }
 0x132   :  { %119 = vrsqrt.f32 %v73_v44 }
 0x133   :  { %v74_v47 = vadd.f32 1e-12, %v70_v46 }
 0x135   :  { %121 = vrsqrt.f32 %v74_v47 }
 0x137   :  { %v116_v48 = vpop.eup %115 }
 0x138   :  { %v79_v50 = vmul.f32 %v116_v48, %v47_v20 }
 0x13a   :  { %v90_v52 = vmul.f32 %v113_v49, %v79_v50 }
 0x13b   :  { %v118_v53 = vpop.eup %117 }
 0x13c   :  { %v120_v54 = vpop.eup %119  ;;  %v101_v55 = vadd.f32 %v114_v51, %v90_v52  ;;  %v80_v56 = vmul.f32 %v118_v53, %v48_v28 }
 0x13d   :  { %v81_v57 = vmul.f32 %v120_v54, %v49_v21 }
 0x13e   :  { %105 = vst.msk [vmem:[%s206_s4] sm:$0xff] %vm29_vm0, %v101_v55  ;;  %v91_v58 = vmul.f32 %v113_v49, %v80_v56 }
 0x13f   :  { %v122_v59 = vpop.eup %121  ;;  %v92_v60 = vmul.f32 %v113_v49, %v81_v57 }
 0x140   :  { %v102_v61 = vadd.f32 %v114_v51, %v91_v58  ;;  %v82_v62 = vmul.f32 %v122_v59, %v50_v30 }
 0x141   :  { %v103_v63 = vadd.f32 %v114_v51, %v92_v60 }
 0x142   :  { %106 = vst.msk [vmem:[%s206_s4 + $0x8] sm:$0xff] %vm29_vm0, %v102_v61  ;;  %v93_v0 = vmul.f32 %v113_v49, %v82_v62 }
 0x143   :  { %107 = vst.msk [vmem:[%s206_s4 + $0x10] sm:$0xff] %vm29_vm0, %v103_v63 }
 0x144   :  { %v104_v1 = vadd.f32 %v114_v51, %v93_v0 }
 0x146   :  { %108 = vst.msk [vmem:[%s206_s4 + $0x18] sm:$0xff] %vm29_vm0, %v104_v1 }

// kernel: bert_attention_forward.26
= control target key start
LH: loop header
LB: loop body
LE: loop exit
PB: predicated region body
PF: predicated region fallthrough
CT: control target
= control target key end

     0   :  { %vm19_vm0 = vcmask 523264   ;;  %v178_v1 = vmov 0.0   ;;  %s250_s1 = inlined_call_operand.vmem [shape: bf16[64,128], index: 1, kind: input, shape index: {}]   ;;  %s251_s0 = inlined_call_operand.vmem [shape: f32[32,128], index: 0, kind: input, shape index: {}]   ;;  %s252_s2 = inlined_call_operand.vmem [shape: f32[1,64], index: 2, kind: input, shape index: {}]   ;;  %s253_s3 = inlined_call_operand.vmem [shape: f32[32,64], index: 3, kind: output, shape index: {}]  }
   0x1   :  { %v174_v0 = vld [vmem:[%s250_s1] sm:$0xff]   ;;  %22 = vst.msk [vmem:[#allocation2 + $0x10] sm:$0xff] %vm19_vm0, %v178_v1  ;;  %20 = vst.msk [vmem:[#allocation2] sm:$0xff] %vm19_vm0, %v178_v1  ;;  %v175_v2 = vld [vmem:[%s250_s1 + $0x8] sm:$0xff]  }
   0x2   :  { %21 = vst.msk [vmem:[#allocation2 + $0x8] sm:$0xff] %vm19_vm0, %v178_v1  ;;  %23 = vst.msk [vmem:[#allocation2 + $0x18] sm:$0xff] %vm19_vm0, %v178_v1  ;;  %161 = vmatprep.subr.bf16.mxu0 %v174_v0  ;;  %v24_v3 = vld [vmem:[%s251_s0] sm:$0xff]  ;;  %v25_v4 = vld [vmem:[%s251_s0 + $0x8] sm:$0xff] }
   0x3   :  { %162 = vmatpush3.bf16.xpose.msra.mxu0 %v174_v0  ;;  %v28_v5 = vpack.c.bf16 %v25_v4, %v24_v3  ;;  %v176_v6 = vld [vmem:[%s250_s1 + $0x10] sm:$0xff]   ;;  %v177_v7 = vld [vmem:[%s250_s1 + $0x18] sm:$0xff]   ;;  %v154_v23 = vld [vmem:[%s252_s2] ss:$0 sm:$0xff] }
   0x4   :  { %163 = vmatprep.subr.bf16.mxu0 %v175_v2  ;;  %v26_v8 = vld [vmem:[%s251_s0 + $0x10] sm:$0xff]  ;;  %v27_v9 = vld [vmem:[%s251_s0 + $0x18] sm:$0xff] }
   0x5   :  { %169 = vmatprep.mubr.bf16.mxu0 %v28_v5  ;;  %v29_v10 = vpack.c.bf16 %v27_v9, %v26_v8 }
   0x8   :  { %v40_v11 = vld [vmem:[#allocation2 + $0x10] sm:$0xff]  ;;  %v38_v12 = vld [vmem:[#allocation2] sm:$0xff] }
   0x9   :  { %v41_v14 = vld [vmem:[#allocation2 + $0x18] sm:$0xff]  ;;  %v39_v17 = vld [vmem:[#allocation2 + $0x8] sm:$0xff] }
   0xb   :  { %164 = vmatpush3.bf16.xpose.msra.mxu0 %v175_v2 }
   0xc   :  { %165 = vmatprep.subr.bf16.mxu0 %v176_v6 }
  0x13   :  { %166 = vmatpush3.bf16.xpose.msra.mxu0 %v176_v6 }
  0x14   :  { %167 = vmatprep.subr.bf16.mxu0 %v177_v7 }
  0x1b   :  { %168 = vmatpush3.bf16.xpose.msra.mxu0 %v177_v7 }
  0x22   :  { %170 = vmatmul.mubr.bf16.vlgmr.msra.gmra.mrb[0].mxu0 %v29_v10 }
  0xf5   :  { %v171_v13 = vpop.f32.mrb[0].mxu0 }
  0xf6   :  { %v117_v15 = vadd.f32 %v171_v13, %v40_v11  ;;  %v100_v16 = vpop.f32.mrb[1].mxu0 }
  0xf7   :  { %v115_v18 = vadd.f32 %v100_v16, %v38_v12  ;;  %v172_v19 = vpop.f32.mrb[2].mxu0 }
  0xf8   :  { %122 = vst.msk [vmem:[#allocation2 + $0x10] sm:$0xff] %vm19_vm0, %v117_v15  ;;  %v118_v20 = vadd.f32 %v172_v19, %v41_v14  ;;  %v103_v21 = vpop.f32.mrb[3].mxu0 }
  0xf9   :  { %120 = vst.msk [vmem:[#allocation2] sm:$0xff] %vm19_vm0, %v115_v18  ;;  %v116_v22 = vadd.f32 %v103_v21, %v39_v17 }
  0xfa   :  { %123 = vst.msk [vmem:[#allocation2 + $0x18] sm:$0xff] %vm19_vm0, %v118_v20 }
  0xfb   :  { %121 = vst.msk [vmem:[#allocation2 + $0x8] sm:$0xff] %vm19_vm0, %v116_v22 }
  0xff   :  { %v129_v24 = vld [vmem:[#allocation2 + $0x10] sm:$0xff] }
 0x100   :  { %v140_v25 = vadd.f32 %v154_v23, %v129_v24  ;;  %v127_v26 = vld [vmem:[#allocation2] sm:$0xff] }
 0x101   :  { %v138_v27 = vadd.f32 %v154_v23, %v127_v26  ;;  %v130_v28 = vld [vmem:[#allocation2 + $0x18] sm:$0xff] }
 0x102   :  { %144 = vst.msk [vmem:[%s253_s3 + $0x10] sm:$0xff] %vm19_vm0, %v140_v25  ;;  %v141_v29 = vadd.f32 %v154_v23, %v130_v28  ;;  %v128_v30 = vld [vmem:[#allocation2 + $0x8] sm:$0xff] }
 0x103   :  { %142 = vst.msk [vmem:[%s253_s3] sm:$0xff] %vm19_vm0, %v138_v27  ;;  %v139_v31 = vadd.f32 %v154_v23, %v128_v30 }
 0x104   :  { %145 = vst.msk [vmem:[%s253_s3 + $0x18] sm:$0xff] %vm19_vm0, %v141_v29 }
 0x105   :  { %143 = vst.msk [vmem:[%s253_s3 + $0x8] sm:$0xff] %vm19_vm0, %v139_v31 }

// kernel: bert_attention_forward.25
= control target key start
LH: loop header
LB: loop body
LE: loop exit
PB: predicated region body
PF: predicated region fallthrough
CT: control target
= control target key end

     0   :  { %vm89_vm0 = vcmask 523264   ;;  %s393_s1 = inlined_call_operand.vmem [shape: bf16[128,64], index: 1, kind: input, shape index: {}]   ;;  %s394_s0 = inlined_call_operand.vmem [shape: f32[32,64], index: 0, kind: input, shape index: {}]   ;;  %s395_s2 = inlined_call_operand.vmem [shape: f32[1,128], index: 2, kind: input, shape index: {}]   ;;  %s396_s3 = inlined_call_operand.vmem [shape: f32[32,128], index: 3, kind: output, shape index: {}]  }
   0x1   :  { %v288_v0 = vld [vmem:[%s393_s1] sm:$0xff]   ;;  %v289_v1 = vld [vmem:[%s393_s1 + $0x8] sm:$0xff]   ;;  %v290_v4 = vld [vmem:[%s393_s1 + $0x10] sm:$0xff]  }
   0x2   :  { %280 = vmatprep.subr.msk.bf16.mxu0 %vm89_vm0, %v288_v0  ;;  %v97_v2 = vsel %vm89_vm0, %v288_v0, 0  ;;  %v100_v3 = vsel %vm89_vm0, %v289_v1, 0  ;;  %v23_v5 = vld [vmem:[%s394_s0] sm:$0xff]  ;;  %v24_v6 = vld [vmem:[%s394_s0 + $0x8] sm:$0xff]  ;;  %v103_v8 = vsel %vm89_vm0, %v290_v4, 0  ;;  %v291_v9 = vld [vmem:[%s393_s1 + $0x18] sm:$0xff]  }
   0x3   :  { %261 = vmatpush3.bf16.xpose.msra.mxu0 %v97_v2  ;;  %v27_v7 = vpack.c.bf16 %v24_v6, %v23_v5  ;;  %v106_v10 = vsel %vm89_vm0, %v291_v9, 0  ;;  %v292_v11 = vld [vmem:[%s393_s1 + $0x20] sm:$0xff]   ;;  %v293_v13 = vld [vmem:[%s393_s1 + $0x28] sm:$0xff]   ;;  %v294_v15 = vld [vmem:[%s393_s1 + $0x30] sm:$0xff]  }
   0x4   :  { %281 = vmatprep.subr.msk.bf16.mxu0 %vm89_vm0, %v289_v1  ;;  %v109_v12 = vsel %vm89_vm0, %v292_v11, 0  ;;  %v112_v14 = vsel %vm89_vm0, %v293_v13, 0  ;;  %v115_v16 = vsel %vm89_vm0, %v294_v15, 0  ;;  %v295_v17 = vld [vmem:[%s393_s1 + $0x38] sm:$0xff]   ;;  %v25_v19 = vld [vmem:[%s394_s0 + $0x10] sm:$0xff] }
   0x5   :  { %276 = vmatprep.mubr.msk.bf16.mxu0 %vm89_vm0, %v27_v7  ;;  %v118_v18 = vsel %vm89_vm0, %v295_v17, 0  ;;  %v26_v20 = vld [vmem:[%s394_s0 + $0x18] sm:$0xff]  ;;  %v249_v22 = vld [vmem:[%s395_s2] ss:$0 sm:$0xff] }
   0x6   :  { %v28_v21 = vpack.c.bf16 %v26_v20, %v25_v19 }
   0xb   :  { %263 = vmatpush3.bf16.xpose.msra.mxu0 %v100_v3 }
   0xc   :  { %282 = vmatprep.subr.msk.bf16.mxu0 %vm89_vm0, %v290_v4 }
  0x13   :  { %265 = vmatpush3.bf16.xpose.msra.mxu0 %v103_v8 }
  0x14   :  { %283 = vmatprep.subr.msk.bf16.mxu0 %vm89_vm0, %v291_v9 }
  0x1b   :  { %267 = vmatpush3.bf16.xpose.msra.mxu0 %v106_v10 }
  0x1c   :  { %284 = vmatprep.subr.msk.bf16.mxu0 %vm89_vm0, %v292_v11 }
  0x23   :  { %269 = vmatpush3.bf16.xpose.msra.mxu0 %v109_v12 }
  0x24   :  { %285 = vmatprep.subr.msk.bf16.mxu0 %vm89_vm0, %v293_v13 }
  0x2b   :  { %271 = vmatpush3.bf16.xpose.msra.mxu0 %v112_v14 }
  0x2c   :  { %286 = vmatprep.subr.msk.bf16.mxu0 %vm89_vm0, %v294_v15 }
  0x33   :  { %273 = vmatpush3.bf16.xpose.msra.mxu0 %v115_v16 }
  0x34   :  { %287 = vmatprep.subr.msk.bf16.mxu0 %vm89_vm0, %v295_v17 }
  0x3b   :  { %275 = vmatpush3.bf16.xpose.msra.mxu0 %v118_v18 }
  0x42   :  { %277 = vmatmul.mubr.msk.bf16.vlgmr.msra.gmra.mrb[0].mxu0 %vm89_vm0, %v28_v21 }
 0x115   :  { %v278_v23 = vpop.f32.mrb[0].mxu0 }
 0x116   :  { %v193_v24 = vadd.f32 %v278_v23, %v249_v22  ;;  %v154_v25 = vpop.f32.mrb[1].mxu0 }
 0x117   :  { %v191_v26 = vadd.f32 %v249_v22, %v154_v25  ;;  %v279_v27 = vpop.f32.mrb[2].mxu0 }
 0x118   :  { %v197_v28 = vmul.f32 %v193_v24, %v193_v24  ;;  %v194_v29 = vadd.f32 %v279_v27, %v249_v22  ;;  %v157_v30 = vpop.f32.mrb[3].mxu0 }
 0x119   :  { %v195_v31 = vmul.f32 %v191_v26, %v191_v26  ;;  %v192_v32 = vadd.f32 %v249_v22, %v157_v30 }
 0x11a   :  { %v201_v33 = vmul.f32 %v197_v28, %v193_v24  ;;  %v198_v34 = vmul.f32 %v194_v29, %v194_v29 }
 0x11b   :  { %v199_v35 = vmul.f32 %v195_v31, %v191_v26  ;;  %v196_v36 = vmul.f32 %v192_v32, %v192_v32 }
 0x11c   :  { %v205_v37 = vmul.f32 0.044715, %v201_v33  ;;  %v202_v38 = vmul.f32 %v198_v34, %v194_v29 }
 0x11d   :  { %v203_v39 = vmul.f32 0.044715, %v199_v35  ;;  %v200_v40 = vmul.f32 %v196_v36, %v192_v32 }
 0x11e   :  { %v209_v41 = vadd.f32 %v205_v37, %v193_v24  ;;  %v206_v42 = vmul.f32 0.044715, %v202_v38 }
 0x11f   :  { %v207_v43 = vadd.f32 %v203_v39, %v191_v26  ;;  %v204_v44 = vmul.f32 0.044715, %v200_v40 }
 0x120   :  { %v213_v45 = vmul.f32 0.7978846, %v209_v41  ;;  %v210_v46 = vadd.f32 %v206_v42, %v194_v29 }
 0x121   :  { %v211_v47 = vmul.f32 0.7978846, %v207_v43  ;;  %v208_v48 = vadd.f32 %v204_v44, %v192_v32 }
 0x122   :  { %296 = vtanh.f32 %v213_v45  ;;  %v214_v49 = vmul.f32 0.7978846, %v210_v46 }
 0x123   :  { %298 = vtanh.f32 %v211_v47  ;;  %v212_v50 = vmul.f32 0.7978846, %v208_v48 }
 0x124   :  { %300 = vtanh.f32 %v214_v49 }
 0x125   :  { %302 = vtanh.f32 %v212_v50 }
 0x12c   :  { %v297_v51 = vpop.eup %296 }
 0x12d   :  { %v299_v52 = vpop.eup %298  ;;  %v221_v53 = vadd.f32 1.0, %v297_v51 }
 0x12e   :  { %v301_v54 = vpop.eup %300  ;;  %v219_v55 = vadd.f32 1.0, %v299_v52 }
 0x12f   :  { %v303_v56 = vpop.eup %302  ;;  %v225_v57 = vmul.f32 0.5, %v221_v53  ;;  %v222_v58 = vadd.f32 1.0, %v301_v54 }
 0x130   :  { %v223_v59 = vmul.f32 0.5, %v219_v55  ;;  %v220_v60 = vadd.f32 1.0, %v303_v56 }
 0x131   :  { %v229_v61 = vmul.f32 %v225_v57, %v193_v24  ;;  %v226_v62 = vmul.f32 0.5, %v222_v58 }
 0x132   :  { %v227_v63 = vmul.f32 %v223_v59, %v191_v26  ;;  %v224_v0 = vmul.f32 0.5, %v220_v60 }
 0x133   :  { %233 = vst [vmem:[%s396_s3 + $0x10] sm:$0xff] %v229_v61  ;;  %v230_v1 = vmul.f32 %v226_v62, %v194_v29 }
 0x134   :  { %231 = vst [vmem:[%s396_s3] sm:$0xff] %v227_v63  ;;  %v228_v2 = vmul.f32 %v224_v0, %v192_v32 }
 0x135   :  { %234 = vst [vmem:[%s396_s3 + $0x18] sm:$0xff] %v230_v1 }
 0x136   :  { %232 = vst [vmem:[%s396_s3 + $0x8] sm:$0xff] %v228_v2 }

// kernel: bert_attention_forward.36
= control target key start
LH: loop header
LB: loop body
LE: loop exit
PB: predicated region body
PF: predicated region fallthrough
CT: control target
= control target key end

     0   :  { %vm89_vm0 = vcmask 523264   ;;  %s349_s1 = inlined_call_operand.vmem [shape: bf16[128,64], index: 1, kind: input, shape index: {}]   ;;  %s350_s0 = inlined_call_operand.vmem [shape: f32[32,64], index: 0, kind: input, shape index: {}]   ;;  %s351_s2 = inlined_call_operand.vmem [shape: f32[1,128], index: 2, kind: input, shape index: {}]   ;;  %s352_s3 = inlined_call_operand.vmem [shape: f32[32,128], index: 3, kind: output, shape index: {}]  }
   0x1   :  { %v252_v0 = vld [vmem:[%s349_s1] sm:$0xff]   ;;  %v253_v1 = vld [vmem:[%s349_s1 + $0x8] sm:$0xff]   ;;  %v254_v4 = vld [vmem:[%s349_s1 + $0x10] sm:$0xff]  }
   0x2   :  { %244 = vmatprep.subr.msk.bf16.mxu0 %vm89_vm0, %v252_v0  ;;  %v97_v2 = vsel %vm89_vm0, %v252_v0, 0  ;;  %v100_v3 = vsel %vm89_vm0, %v253_v1, 0  ;;  %v23_v5 = vld [vmem:[%s350_s0] sm:$0xff]  ;;  %v24_v6 = vld [vmem:[%s350_s0 + $0x8] sm:$0xff]  ;;  %v103_v8 = vsel %vm89_vm0, %v254_v4, 0  ;;  %v255_v9 = vld [vmem:[%s349_s1 + $0x18] sm:$0xff]  }
   0x3   :  { %225 = vmatpush3.bf16.xpose.msra.mxu0 %v97_v2  ;;  %v27_v7 = vpack.c.bf16 %v24_v6, %v23_v5  ;;  %v106_v10 = vsel %vm89_vm0, %v255_v9, 0  ;;  %v256_v11 = vld [vmem:[%s349_s1 + $0x20] sm:$0xff]   ;;  %v257_v13 = vld [vmem:[%s349_s1 + $0x28] sm:$0xff]   ;;  %v258_v15 = vld [vmem:[%s349_s1 + $0x30] sm:$0xff]  }
   0x4   :  { %245 = vmatprep.subr.msk.bf16.mxu0 %vm89_vm0, %v253_v1  ;;  %v109_v12 = vsel %vm89_vm0, %v256_v11, 0  ;;  %v112_v14 = vsel %vm89_vm0, %v257_v13, 0  ;;  %v115_v16 = vsel %vm89_vm0, %v258_v15, 0  ;;  %v259_v17 = vld [vmem:[%s349_s1 + $0x38] sm:$0xff]   ;;  %v25_v19 = vld [vmem:[%s350_s0 + $0x10] sm:$0xff] }
   0x5   :  { %240 = vmatprep.mubr.msk.bf16.mxu0 %vm89_vm0, %v27_v7  ;;  %v118_v18 = vsel %vm89_vm0, %v259_v17, 0  ;;  %v26_v20 = vld [vmem:[%s350_s0 + $0x18] sm:$0xff]  ;;  %v213_v22 = vld [vmem:[%s351_s2] ss:$0 sm:$0xff] }
   0x6   :  { %v28_v21 = vpack.c.bf16 %v26_v20, %v25_v19 }
   0xb   :  { %227 = vmatpush3.bf16.xpose.msra.mxu0 %v100_v3 }
   0xc   :  { %246 = vmatprep.subr.msk.bf16.mxu0 %vm89_vm0, %v254_v4 }
  0x13   :  { %229 = vmatpush3.bf16.xpose.msra.mxu0 %v103_v8 }
  0x14   :  { %247 = vmatprep.subr.msk.bf16.mxu0 %vm89_vm0, %v255_v9 }
  0x1b   :  { %231 = vmatpush3.bf16.xpose.msra.mxu0 %v106_v10 }
  0x1c   :  { %248 = vmatprep.subr.msk.bf16.mxu0 %vm89_vm0, %v256_v11 }
  0x23   :  { %233 = vmatpush3.bf16.xpose.msra.mxu0 %v109_v12 }
  0x24   :  { %249 = vmatprep.subr.msk.bf16.mxu0 %vm89_vm0, %v257_v13 }
  0x2b   :  { %235 = vmatpush3.bf16.xpose.msra.mxu0 %v112_v14 }
  0x2c   :  { %250 = vmatprep.subr.msk.bf16.mxu0 %vm89_vm0, %v258_v15 }
  0x33   :  { %237 = vmatpush3.bf16.xpose.msra.mxu0 %v115_v16 }
  0x34   :  { %251 = vmatprep.subr.msk.bf16.mxu0 %vm89_vm0, %v259_v17 }
  0x3b   :  { %239 = vmatpush3.bf16.xpose.msra.mxu0 %v118_v18 }
  0x42   :  { %241 = vmatmul.mubr.msk.bf16.vlgmr.msra.gmra.mrb[0].mxu0 %vm89_vm0, %v28_v21 }
 0x115   :  { %v242_v23 = vpop.f32.mrb[0].mxu0 }
 0x116   :  { %v193_v24 = vadd.f32 %v242_v23, %v213_v22  ;;  %v154_v25 = vpop.f32.mrb[1].mxu0 }
 0x117   :  { %v191_v26 = vadd.f32 %v213_v22, %v154_v25  ;;  %v243_v27 = vpop.f32.mrb[2].mxu0 }
 0x118   :  { %197 = vst [vmem:[%s352_s3 + $0x10] sm:$0xff] %v193_v24  ;;  %v194_v28 = vadd.f32 %v243_v27, %v213_v22  ;;  %v157_v29 = vpop.f32.mrb[3].mxu0 }
 0x119   :  { %195 = vst [vmem:[%s352_s3] sm:$0xff] %v191_v26  ;;  %v192_v30 = vadd.f32 %v213_v22, %v157_v29 }
 0x11a   :  { %198 = vst [vmem:[%s352_s3 + $0x18] sm:$0xff] %v194_v28 }
 0x11b   :  { %196 = vst [vmem:[%s352_s3 + $0x8] sm:$0xff] %v192_v30 }

// kernel: bert_attention_forward.35
= control target key start
LH: loop header
LB: loop body
LE: loop exit
PB: predicated region body
PF: predicated region fallthrough
CT: control target
= control target key end

     0   :  { %vm19_vm0 = vcmask 523264   ;;  %v167_v0 = vmov 0.0   ;;  %vm168_vm1 = vmmov 0   ;;  %vm21_vm2 = vcmask 517120   ;;  %s227_s1 = inlined_call_operand.vmem [shape: bf16[64,64], index: 1, kind: input, shape index: {}]   ;;  %s228_s0 = inlined_call_operand.vmem [shape: f32[10,64], index: 0, kind: input, shape index: {}]   ;;  %s229_s2 = inlined_call_operand.vmem [shape: f32[1,64], index: 2, kind: input, shape index: {}]   ;;  %s230_s3 = inlined_call_operand.vmem [shape: f32[10,64], index: 3, kind: output, shape index: {}]  }
   0x1   :  { %149 = vmatprep.subr.bf16.mxu0 %v167_v0  ;;  %v163_v1 = vld [vmem:[%s227_s1] sm:$0xff]   ;;  %20 = vst.msk [vmem:[#allocation2] sm:$0xff] %vm19_vm0, %v167_v0  ;;  %157 = vmatprep.mubr.msk.bf16.mxu0 %vm168_vm1, %v167_v0  ;;  %v164_v3 = vld [vmem:[%s227_s1 + $0x8] sm:$0xff]   ;;  %v165_v5 = vld [vmem:[%s227_s1 + $0x10] sm:$0xff]  }
   0x2   :  { %v61_v2 = vsel %vm19_vm0, %v163_v1, 0  ;;  %v64_v4 = vsel %vm19_vm0, %v164_v3, 0  ;;  %v67_v6 = vsel %vm19_vm0, %v165_v5, 0  ;;  %v166_v7 = vld [vmem:[%s227_s1 + $0x18] sm:$0xff]   ;;  %v23_v9 = vld [vmem:[%s228_s0] sm:$0xff] }
   0x3   :  { %150 = vmatpush3.bf16.xpose.msra.mxu0 %v61_v2  ;;  %v70_v8 = vsel %vm19_vm0, %v166_v7, 0  ;;  %v24_v10 = vld [vmem:[%s228_s0 + $0x8] sm:$0x3]  ;;  %22 = vst.msk [vmem:[#allocation2 + $0x8] sm:$0x3] %vm21_vm2, %v167_v0 }
   0x4   :  { %151 = vmatprep.subr.bf16.mxu0 %v167_v0  ;;  %v25_v11 = vpack.c.bf16 %v24_v10, %v23_v9  ;;  %v143_v20 = vld [vmem:[%s229_s2] ss:$0 sm:$0xff] }
   0x8   :  { %v34_v12 = vld [vmem:[#allocation2] sm:$0xff] }
   0xa   :  { %v35_v14 = vld [vmem:[#allocation2 + $0x8] sm:$0x3] }
   0xb   :  { %152 = vmatpush3.bf16.xpose.msra.mxu0 %v64_v4 }
   0xc   :  { %153 = vmatprep.subr.bf16.mxu0 %v167_v0 }
  0x13   :  { %154 = vmatpush3.bf16.xpose.msra.mxu0 %v67_v6 }
  0x14   :  { %155 = vmatprep.subr.bf16.mxu0 %v167_v0 }
  0x1b   :  { %156 = vmatpush3.bf16.xpose.msra.mxu0 %v70_v8 }
  0x22   :  { %158 = vmatmul.mubr.msk.bf16.vlgmr.msra.gmra.mrb[0].mxu0 %vm19_vm0, %v25_v11 }
  0xf5   :  { %v106_v13 = vpop.f32.mrb[0].mxu0 }
  0xf6   :  { %v113_v15 = vadd.f32 %v106_v13, %v34_v12  ;;  %v159_v16 = vpop.f32.mrb[1].mxu0 }
  0xf7   :  { %v109_v17 = vpop.f32.mrb[2].mxu0 }
  0xf8   :  { %115 = vst.msk [vmem:[#allocation2] sm:$0xff] %vm19_vm0, %v113_v15  ;;  %v114_v18 = vadd.f32 %v109_v17, %v35_v14  ;;  %v160_v19 = vpop.f32.mrb[3].mxu0 }
  0xfa   :  { %117 = vst.msk [vmem:[#allocation2 + $0x8] sm:$0x3] %vm21_vm2, %v114_v18 }
  0xff   :  { %v121_v21 = vld [vmem:[#allocation2] sm:$0xff] }
 0x100   :  { %v130_v22 = vadd.f32 %v143_v20, %v121_v21 }
 0x101   :  { %v122_v23 = vld [vmem:[#allocation2 + $0x8] sm:$0x3] }
 0x102   :  { %v131_v24 = vadd.f32 %v143_v20, %v122_v23  ;;  %132 = vst.msk [vmem:[%s230_s3] sm:$0xff] %vm19_vm0, %v130_v22 }
 0x104   :  { %133 = vst.msk [vmem:[%s230_s3 + $0x8] sm:$0x3] %vm21_vm2, %v131_v24 }

// kernel: bert_attention_forward.39
= control target key start
LH: loop header
LB: loop body
LE: loop exit
PB: predicated region body
PF: predicated region fallthrough
CT: control target
= control target key end

     0   :  { %vm25_vm0 = vcmask 523264   ;;  %vm29_vm1 = vcmask 517120   ;;  %s199_s0 = inlined_call_operand.vmem [shape: f32[2,10,64], index: 0, kind: input, shape index: {}]   ;;  %s200_s1 = inlined_call_operand.vmem [shape: f32[10,64], index: 1, kind: input, shape index: {}]   ;;  %s201_s2 = inlined_call_operand.vmem [shape: f32[1,10], index: 2, kind: input, shape index: {}]   ;;  %s202_s3 = inlined_call_operand.hbm [shape: f32[2,10], index: 3, kind: output, shape index: {}]  }
   0x1   :  { %v17_v0 = vld [vmem:[%s199_s0 + $0x10] sm:$0xff]  ;;  %v19_v1 = vld [vmem:[%s200_s1] sm:$0xff]  ;;  %v18_v5 = vld [vmem:[%s199_s0 + $0x18] sm:$0x3] }
   0x2   :  { %v15_v2 = vld [vmem:[%s199_s0] sm:$0xff]  ;;  %v23_v3 = vmul.f32 %v19_v1, %v17_v0  ;;  %v20_v6 = vld [vmem:[%s200_s1 + $0x8] sm:$0x3] }
   0x3   :  { %v21_v4 = vmul.f32 %v19_v1, %v15_v2  ;;  %v16_v7 = vld [vmem:[%s199_s0 + $0x8] sm:$0x3]  ;;  %v24_v8 = vmul.f32 %v20_v6, %v18_v5 }
   0x4   :  { %v22_v9 = vmul.f32 %v20_v6, %v16_v7 }
   0x5   :  { %8 = vsyncpa [#allocation3], 0  ;;  %v33_v10 = vsel %vm25_vm0, %v23_v3, 0.0  ;;  %v26_v11 = vsel %vm25_vm0, %v21_v4, 0.0  ;;  %v36_v12 = vsel %vm29_vm1, %v24_v8, 0.0  ;;  %v144_v15 = vmov 0  }
   0x6   :  { %34 = vadd.xlane.f32.xlu1 %v33_v10  ;;  %27 = vadd.xlane.f32.xlu0 %v26_v11  ;;  %v30_v13 = vsel %vm29_vm1, %v22_v9, 0.0  ;;  %v115_v14 = vld [vmem:[%s201_s2] ss:$0 sm:$0xff]  ;;  %v74_v26 = vlaneseq  ;;  %vm85_vm2 = vcmask 130112   ;;  %s145_s0 = smov [#allocation2]   ;;  %vm96_vm3 = vcmask 1041409  }
   0x7   :  { %119 = vset.pattern.permute.xlu0 %v144_v15  ;;  %118 = vset.pattern.permute.xlu1 %v144_v15  ;;  %s107_s1 = sshll.u32 %s145_s0, 4  ;;  %vm99_vm4 = vcmask 74752   ;;  %s108_s1 = int_to_ptr.vmem [resolvable:$true] %s107_s1 }
   0x8   :  { %v75_v27 = vand.u32 127, %v74_v26  ;;  %v77_v30 = vshrl.u32 %v74_v26, 7  ;;  %s120_s2 = scalar_lea.vmem %s108_s1, 32  ;;  %p125_p1 = scmp.lt.s32.totalorder %s108_s1, %s108_s1 }
   0x9   :  { %p121_p0 = scmp.ne.s32.totalorder %s108_s1, %s120_s2  ;;  %p126_p2 = scmp.lt.s32.totalorder %s120_s2, %s120_s2 }
   0xa   :  { %37 = vadd.xlane.f32.xlu1 %v36_v12  ;;  %31 = vadd.xlane.f32.xlu0 %v30_v13  ;;  %v80_v28 = vadd.s32 4294967288, %v75_v27  ;;  %v78_v33 = vsub.s32 %v75_v27, %v77_v30 }
   0xb   :  { %p127_p3 = por %p126_p2, %p125_p1 }
   0xc   :  { %v83_v31 = vsub.s32 %v80_v28, %v77_v30 }
   0xd   :  { %p128_p4 = pnand %p127_p3, %p121_p0 }
  0x1b   :  { %50 = vbcast.lane.b32.xlu1 %v115_v14, 264 }
  0x20   :  { %46 = vbcast.lane.b32.xlu0 %v115_v14, 256 }
  0x93   :  { %v35_v16 = vpop.xlane.xlu1 %34  ;;  %v28_v17 = vpop.xlane.xlu0 %27 }
  0x97   :  { %v38_v18 = vpop.xlane.xlu1 %37  ;;  %v32_v19 = vpop.xlane.xlu0 %31 }
  0x9b   :  { %v47_v20 = vpop.permute.xlu0 %46  ;;  %v51_v23 = vpop.permute.xlu1 %50 }
  0x9c   :  { %v54_v21 = vadd.f32 %v47_v20, %v28_v17  ;;  %v56_v22 = vadd.f32 %v47_v20, %v35_v16  ;;  %v55_v24 = vadd.f32 %v51_v23, %v32_v19  ;;  %v57_v25 = vadd.f32 %v51_v23, %v38_v18 }
  0x9e   :  { %69 = vperm.xlu0 %119, %v56_v22   ;;  %63 = vperm.xlu1 %118, %v54_v21  }
  0xa2   :  { %66 = vperm.xlu1 %118, %v55_v24  }
  0xa6   :  { %72 = vperm.xlu1 %118, %v57_v25  }
 0x11d   :  { %v64_v29 = vpop.permute.xlu1 %63  ;;  %v70_v34 = vpop.permute.xlu0 %69 }
 0x11e   :  { %v90_v37 = vrot.slane %v70_v34, %v78_v33  ;;  %v79_v38 = vrot.slane %v64_v29, %v78_v33 }
 0x121   :  { %v67_v32 = vpop.permute.xlu1 %66 }
 0x122   :  { %v84_v35 = vrot.slane %v67_v32, %v83_v31 }
 0x124   :  { %v86_v40 = vsel %vm85_vm2, %v84_v35, %v79_v38 }
 0x125   :  { %v73_v36 = vpop.permute.xlu1 %72 }
 0x126   :  { %v94_v39 = vrot.slane %v73_v36, %v83_v31 }
 0x128   :  { %v95_v41 = vsel %vm85_vm2, %v94_v39, %v90_v37 }
 0x129   :  { %v97_v42 = vsel %vm96_vm3, %v95_v41, %v86_v40 }
 0x12a   :  { %100 = vst.msk [vmem:[#allocation2] sm:$0x3] %vm99_vm4, %v97_v42 }
 0x12b   :  { %131 = shalt.err (!%p128_p4)
}
 0x12c   :  { %s132_s28 = scalar_lea.hbm %s202_s3, 32 }
 0x12d   :  { %p133_p5 = scmp.ne.s32.totalorder %s202_s3, %s132_s28  ;;  %p136_p6 = scmp.lt.u32.totalorder %s132_s28, %s202_s3 }
 0x12f   :  { %p138_p7 = pnand %p136_p6, %p133_p5 }
 0x131   :  { %141 = shalt.err (!%p138_p7)
}
 0x132   :  { %110 = dma.vmem_to_hbm [thread:$0]  %s108_s1, 32, %s202_s3, [#allocation3]  }
 0x133   :  { %142 = dma.done.wait [#allocation3], 32  }
 0x134   :  { %143 = vsyncadd [#allocation3], 4294967264 }
 0x135   :  { %114 = vsyncpa [#allocation3], 1 }

// kernel: bert_attention_forward.38
= control target key start
LH: loop header
LB: loop body
LE: loop exit
PB: predicated region body
PF: predicated region fallthrough
CT: control target
= control target key end

     0   :  { %vm19_vm0 = vcmask 523264   ;;  %vm22_vm1 = vcmask 519168   ;;  %v191_v1 = vmov 0.0   ;;  %s264_s1 = inlined_call_operand.vmem [shape: bf16[64,64], index: 1, kind: input, shape index: {}]   ;;  %s265_s0 = inlined_call_operand.vmem [shape: f32[20,64], index: 0, kind: input, shape index: {}]   ;;  %s266_s2 = inlined_call_operand.vmem [shape: f32[1,64], index: 2, kind: input, shape index: {}]   ;;  %s267_s3 = inlined_call_operand.vmem [shape: f32[20,64], index: 3, kind: output, shape index: {}]  }
   0x1   :  { %v187_v0 = vld [vmem:[%s264_s1] sm:$0xff]   ;;  %23 = vst.msk [vmem:[#allocation2 + $0x10] sm:$0xf] %vm22_vm1, %v191_v1  ;;  %v188_v2 = vld [vmem:[%s264_s1 + $0x8] sm:$0xff]   ;;  %v189_v8 = vld [vmem:[%s264_s1 + $0x10] sm:$0xff]  }
   0x2   :  { %20 = vst.msk [vmem:[#allocation2] sm:$0xff] %vm19_vm0, %v191_v1  ;;  %21 = vst.msk [vmem:[#allocation2 + $0x8] sm:$0xff] %vm19_vm0, %v191_v1  ;;  %182 = vmatprep.subr.msk.bf16.mxu0 %vm19_vm0, %v187_v0  ;;  %v68_v3 = vsel %vm19_vm0, %v187_v0, 0  ;;  %v24_v4 = vld [vmem:[%s265_s0] sm:$0xff]  ;;  %v25_v5 = vld [vmem:[%s265_s0 + $0x8] sm:$0xff]  ;;  %v71_v7 = vsel %vm19_vm0, %v188_v2, 0 }
   0x3   :  { %171 = vmatpush3.bf16.xpose.msra.mxu0 %v68_v3  ;;  %v27_v6 = vpack.c.bf16 %v25_v5, %v24_v4  ;;  %v74_v9 = vsel %vm19_vm0, %v189_v8, 0  ;;  %v190_v10 = vld [vmem:[%s264_s1 + $0x18] sm:$0xff]   ;;  %v26_v12 = vld [vmem:[%s265_s0 + $0x10] sm:$0xf]  ;;  %v163_v24 = vld [vmem:[%s266_s2] ss:$0 sm:$0xff] }
   0x4   :  { %183 = vmatprep.subr.msk.bf16.mxu0 %vm19_vm0, %v188_v2  ;;  %v77_v11 = vsel %vm19_vm0, %v190_v10, 0  ;;  %v28_v13 = vpack.c.bf16 %v26_v12, %v26_v12 }
   0x5   :  { %178 = vmatprep.mubr.msk.bf16.mxu0 %vm19_vm0, %v27_v6 }
   0x8   :  { %v39_v14 = vld [vmem:[#allocation2 + $0x10] sm:$0xf] }
   0x9   :  { %v37_v15 = vld [vmem:[#allocation2] sm:$0xff]  ;;  %v38_v19 = vld [vmem:[#allocation2 + $0x8] sm:$0xff] }
   0xb   :  { %173 = vmatpush3.bf16.xpose.msra.mxu0 %v71_v7 }
   0xc   :  { %184 = vmatprep.subr.msk.bf16.mxu0 %vm19_vm0, %v189_v8 }
  0x13   :  { %175 = vmatpush3.bf16.xpose.msra.mxu0 %v74_v9 }
  0x14   :  { %185 = vmatprep.subr.msk.bf16.mxu0 %vm19_vm0, %v190_v10 }
  0x1b   :  { %177 = vmatpush3.bf16.xpose.msra.mxu0 %v77_v11 }
  0x22   :  { %179 = vmatmul.mubr.msk.bf16.vlgmr.msra.gmra.mrb[0].mxu0 %vm19_vm0, %v28_v13 }
  0xf5   :  { %v180_v16 = vpop.f32.mrb[0].mxu0 }
  0xf6   :  { %v129_v17 = vadd.f32 %v180_v16, %v39_v14  ;;  %v113_v18 = vpop.f32.mrb[1].mxu0 }
  0xf7   :  { %v127_v20 = vadd.f32 %v113_v18, %v37_v15  ;;  %v181_v21 = vpop.f32.mrb[2].mxu0 }
  0xf8   :  { %133 = vst.msk [vmem:[#allocation2 + $0x10] sm:$0xf] %vm22_vm1, %v129_v17  ;;  %v116_v22 = vpop.f32.mrb[3].mxu0 }
  0xf9   :  { %130 = vst.msk [vmem:[#allocation2] sm:$0xff] %vm19_vm0, %v127_v20  ;;  %v128_v23 = vadd.f32 %v116_v22, %v38_v19 }
  0xfb   :  { %131 = vst.msk [vmem:[#allocation2 + $0x8] sm:$0xff] %vm19_vm0, %v128_v23 }
  0xff   :  { %v139_v25 = vld [vmem:[#allocation2 + $0x10] sm:$0xf] }
 0x100   :  { %v149_v26 = vadd.f32 %v163_v24, %v139_v25  ;;  %v137_v27 = vld [vmem:[#allocation2] sm:$0xff] }
 0x101   :  { %v147_v28 = vadd.f32 %v163_v24, %v137_v27 }
 0x102   :  { %152 = vst.msk [vmem:[%s267_s3 + $0x10] sm:$0xf] %vm22_vm1, %v149_v26  ;;  %v138_v29 = vld [vmem:[#allocation2 + $0x8] sm:$0xff] }
 0x103   :  { %150 = vst.msk [vmem:[%s267_s3] sm:$0xff] %vm19_vm0, %v147_v28  ;;  %v148_v30 = vadd.f32 %v163_v24, %v138_v29 }
 0x105   :  { %151 = vst.msk [vmem:[%s267_s3 + $0x8] sm:$0xff] %vm19_vm0, %v148_v30 }

// kernel: bert_attention_forward.37
= control target key start
LH: loop header
LB: loop body
LE: loop exit
PB: predicated region body
PF: predicated region fallthrough
CT: control target
= control target key end

     0   :  { %s1773_s18 = smov 0   ;;  %s2173_s0 = inlined_call_operand.vmem [shape: f32[2,8,10,8], index: 0, kind: input, shape index: {}]   ;;  %s2174_s1 = inlined_call_operand.vmem [shape: f32[2,8,16,8], index: 1, kind: input, shape index: {}]   ;;  %s2175_s2 = inlined_call_operand.vmem [shape: f32[2,8,16,8], index: 2, kind: input, shape index: {}]   ;;  %s2176_s3 = inlined_call_operand.vmem [shape: f32[2,1,16], index: 3, kind: input, shape index: {}]   ;;  %s2177_s4 = inlined_call_operand.vmem [shape: f32[2,8,10,8], index: 4, kind: output, shape index: {0}]   ;;  %s2178_s5 = inlined_call_operand.vmem [shape: f32[2,10,16], index: 5, kind: output, shape index: {1}]  }
   0x1 LB: > { %s1492_s19 = sadd.s32 4294967295, %s1739_s18   ;;  %p1496_p0 = scmp.ge.s32.totalorder %s1739_s18, 1  ;;  %s1739_s18 = sphi %s1773_s18, %s16_s18  }
   0x2   : > { %p218_p1 = scmp.lt.s32.totalorder %s1739_s18, 3 }
   0x4   : > { %p219_p2 = pnand %p1496_p0, %p218_p1 }
   0x5   : > { %p264_p3 = scmp.lt.s32.totalorder (!%p219_p2), %s1492_s19, 1  ;;  %v1741_v0 = vmov (!%p219_p2), 0.0   ;;  %vm1742_vm0 = vmmov (!%p219_p2), 0   ;;  %vm365_vm1 = vcmask (!%p219_p2), 64512   ;;  %vm781_vm2 = vcmask (!%p219_p2), 130048  }
   0x6   : > { %222 = sbr.rel (%p219_p2) target bundleno = 807 (0x327), region = 36  ;;  %1563 = vmatprep.subr.bf16.mxu0 (!%p219_p2), %v1741_v0  ;;  %1569 = vmatprep.subr.bf16.mxu1 (!%p219_p2), %v1741_v0  ;;  %vm785_vm3 = vcmask (!%p219_p2), 123904   ;;  %vm1320_vm4 = vcmask (!%p219_p2), 58368  }
   0x7   : > { %1565 = vmatprep.mubr.msk.bf16.mxu0 (!%p219_p2), %vm1742_vm0, %v1741_v0  ;;  %1571 = vmatprep.mubr.msk.bf16.mxu1 (!%p219_p2), %vm1742_vm0, %v1741_v0 }
   0xd   : > { %s2180_s19 = smov (!%p264_p3, %s1492_s19), 1 }
   0xe   : > { %s1790_s20 = sshll.u32 %s2180_s19, 7  ;;  %s281_s29 = scalar_lea.vmem %s2176_s3, %s2180_s19 }
   0xf   : > { %s1796_s23 = scalar_lea.vmem %s2174_s1, %s1790_s20  ;;  %s1806_s26 = scalar_lea.vmem %s2173_s0, %s1790_s20  ;;  %v1880_v58 = vld [vmem:[%s281_s29] ss:$0 sm:$0xff] }
  0x10   : > { %v317_v1 = vld [vmem:[%s1796_s23] sm:$0xff]  ;;  %v318_v2 = vld [vmem:[%s1796_s23 + $0x8] sm:$0xff]  ;;  %v319_v3 = vld [vmem:[%s1796_s23 + $0x10] sm:$0xff]  ;;  %s2042_s7 = scalar_lea.vmem %s2175_s2, %s1790_s20  ;;  %s1530_s8 = sshll.u32 %s2180_s19, 4 }
  0x11   : > { %v333_v4 = vpack.c.bf16 %v318_v2, %v317_v1  ;;  %v320_v5 = vld [vmem:[%s1796_s23 + $0x18] sm:$0xff]  ;;  %v321_v7 = vld [vmem:[%s1796_s23 + $0x20] sm:$0xff]  ;;  %v322_v9 = vld [vmem:[%s1796_s23 + $0x28] sm:$0xff]  ;;  %s291_s11 = scalar_lea.vmem %s2178_s5, %s1530_s8  ;;  %s2136_s14 = scalar_lea.vmem %s2177_s4, %s1790_s20 }
  0x12   : > { %v334_v6 = vpack.c.bf16 %v320_v5, %v319_v3  ;;  %v323_v10 = vld [vmem:[%s1796_s23 + $0x30] sm:$0xff]  ;;  %v324_v11 = vld [vmem:[%s1796_s23 + $0x38] sm:$0xff]  ;;  %v293_v13 = vld [vmem:[%s1806_s26] sm:$0xff]  ;;  %v335_v17 = vpack.c.bf16 %v322_v9, %v321_v7 }
  0x13   : > { %v370_v8 = vsel %vm365_vm1, %v333_v4, 0  ;;  %v294_v14 = vld [vmem:[%s1806_s26 + $0x8] sm:$0x3]  ;;  %v295_v15 = vld [vmem:[%s1806_s26 + $0x10] sm:$0xff]  ;;  %v296_v16 = vld [vmem:[%s1806_s26 + $0x18] sm:$0x3]  ;;  %v336_v18 = vpack.c.bf16 %v324_v11, %v323_v10 }
  0x14   : > { %1564 = vmatpush3.bf16.xpose.msra.mxu0 %v370_v8  ;;  %v417_v12 = vsel %vm365_vm1, %v334_v6, 0  ;;  %v309_v19 = vpack.c.bf16 %v294_v14, %v293_v13  ;;  %v310_v20 = vpack.c.bf16 %v296_v16, %v295_v15  ;;  %v464_v21 = vsel %vm365_vm1, %v335_v17, 0  ;;  %v325_v23 = vld [vmem:[%s1796_s23 + $0x40] sm:$0xff]  ;;  %v326_v24 = vld [vmem:[%s1796_s23 + $0x48] sm:$0xff]  ;;  %v327_v25 = vld [vmem:[%s1796_s23 + $0x50] sm:$0xff] }
  0x15   : > { %1570 = vmatpush3.bf16.xpose.msra.mxu1 %v417_v12  ;;  %1575 = vmatprep.subr.bf16.mxu0 %v1741_v0  ;;  %v511_v22 = vsel %vm365_vm1, %v336_v18, 0  ;;  %v328_v26 = vld [vmem:[%s1796_s23 + $0x58] sm:$0xff]  ;;  %v297_v27 = vld [vmem:[%s1806_s26 + $0x20] sm:$0xff]  ;;  %v298_v28 = vld [vmem:[%s1806_s26 + $0x28] sm:$0x3]  ;;  %v337_v29 = vpack.c.bf16 %v326_v24, %v325_v23 }
  0x16   : > { %1581 = vmatprep.subr.bf16.mxu1 %v1741_v0  ;;  %v299_v30 = vld [vmem:[%s1806_s26 + $0x30] sm:$0xff]  ;;  %v300_v31 = vld [vmem:[%s1806_s26 + $0x38] sm:$0x3]  ;;  %v338_v32 = vpack.c.bf16 %v328_v26, %v327_v25  ;;  %v311_v33 = vpack.c.bf16 %v298_v28, %v297_v27  ;;  %v329_v37 = vld [vmem:[%s1796_s23 + $0x60] sm:$0xff] }
  0x17   : > { %v312_v34 = vpack.c.bf16 %v300_v31, %v299_v30  ;;  %v558_v35 = vsel %vm365_vm1, %v337_v29, 0  ;;  %v330_v38 = vld [vmem:[%s1796_s23 + $0x68] sm:$0xff]  ;;  %v331_v39 = vld [vmem:[%s1796_s23 + $0x70] sm:$0xff]  ;;  %v332_v40 = vld [vmem:[%s1796_s23 + $0x78] sm:$0xff] }
  0x18   : > { %v605_v36 = vsel %vm365_vm1, %v338_v32, 0  ;;  %v301_v41 = vld [vmem:[%s1806_s26 + $0x40] sm:$0xff]  ;;  %v302_v42 = vld [vmem:[%s1806_s26 + $0x48] sm:$0x3]  ;;  %v339_v43 = vpack.c.bf16 %v330_v38, %v329_v37  ;;  %v303_v44 = vld [vmem:[%s1806_s26 + $0x50] sm:$0xff]  ;;  %v340_v46 = vpack.c.bf16 %v332_v40, %v331_v39 }
  0x19   : > { %v304_v45 = vld [vmem:[%s1806_s26 + $0x58] sm:$0x3]  ;;  %v313_v47 = vpack.c.bf16 %v302_v42, %v301_v41  ;;  %v305_v51 = vld [vmem:[%s1806_s26 + $0x60] sm:$0xff]  ;;  %v306_v52 = vld [vmem:[%s1806_s26 + $0x68] sm:$0x3] }
  0x1a   : > { %v314_v48 = vpack.c.bf16 %v304_v45, %v303_v44  ;;  %v652_v49 = vsel %vm365_vm1, %v339_v43, 0  ;;  %v699_v50 = vsel %vm365_vm1, %v340_v46, 0  ;;  %v307_v53 = vld [vmem:[%s1806_s26 + $0x70] sm:$0xff]  ;;  %v308_v54 = vld [vmem:[%s1806_s26 + $0x78] sm:$0x3]  ;;  %v315_v55 = vpack.c.bf16 %v306_v52, %v305_v51 }
  0x1b   : > { %1566 = vmatmul.mubr.msk.bf16.vlgmr.msra.gmra.mrb[0].mxu0 %vm365_vm1, %v309_v19  ;;  %v316_v56 = vpack.c.bf16 %v308_v54, %v307_v53 }
  0x1c   : > { %1572 = vmatmul.mubr.msk.bf16.vlgmr.msra.gmra.mrb[0].mxu1 %vm365_vm1, %v310_v20  ;;  %1576 = vmatpush3.bf16.xpose.msra.mxu0 %v464_v21 }
  0x1d   : > { %1582 = vmatpush3.bf16.xpose.msra.mxu1 %v511_v22  ;;  %1577 = vmatprep.mubr.msk.bf16.mxu0 %vm1742_vm0, %v1741_v0 }
  0x1e   : > { %1587 = vmatprep.subr.bf16.mxu0 %v1741_v0  ;;  %1583 = vmatprep.mubr.msk.bf16.mxu1 %vm1742_vm0, %v1741_v0 }
  0x1f   : > { %1593 = vmatprep.subr.bf16.mxu1 %v1741_v0 }
  0x23   : > { %1578 = vmatmul.mubr.msk.bf16.vlgmr.msra.gmra.mrb[4].mxu0 %vm365_vm1, %v311_v33 }
  0x24   : > { %1588 = vmatpush3.bf16.xpose.msra.mxu0 %v558_v35  ;;  %1584 = vmatmul.mubr.msk.bf16.vlgmr.msra.gmra.mrb[4].mxu1 %vm365_vm1, %v312_v34 }
  0x25   : > { %1594 = vmatpush3.bf16.xpose.msra.mxu1 %v605_v36  ;;  %1589 = vmatprep.mubr.msk.bf16.mxu0 %vm1742_vm0, %v1741_v0 }
  0x26   : > { %1599 = vmatprep.subr.bf16.mxu0 %v1741_v0  ;;  %1595 = vmatprep.mubr.msk.bf16.mxu1 %vm1742_vm0, %v1741_v0 }
  0x27   : > { %1605 = vmatprep.subr.bf16.mxu1 %v1741_v0 }
  0x2b   : > { %1590 = vmatmul.mubr.msk.bf16.vlgmr.msra.gmra.mrb[8].mxu0 %vm365_vm1, %v313_v47 }
  0x2c   : > { %1600 = vmatpush3.bf16.xpose.msra.mxu0 %v652_v49  ;;  %1596 = vmatmul.mubr.msk.bf16.vlgmr.msra.gmra.mrb[8].mxu1 %vm365_vm1, %v314_v48 }
  0x2d   : > { %1606 = vmatpush3.bf16.xpose.msra.mxu1 %v699_v50  ;;  %1601 = vmatprep.mubr.msk.bf16.mxu0 %vm1742_vm0, %v1741_v0 }
  0x2e   : > { %1607 = vmatprep.mubr.msk.bf16.mxu1 %vm1742_vm0, %v1741_v0  ;;  %1611 = vmatprep.subr.bf16.mxu0 %v1741_v0 }
  0x2f   : > { %1617 = vmatprep.subr.bf16.mxu1 %v1741_v0 }
  0x33   : > { %1602 = vmatmul.mubr.msk.bf16.vlgmr.msra.gmra.mrb[12].mxu0 %vm365_vm1, %v315_v55 }
  0x34   : > { %1608 = vmatmul.mubr.msk.bf16.vlgmr.msra.gmra.mrb[12].mxu1 %vm365_vm1, %v316_v56  ;;  %1613 = vmatprep.mubr.msk.bf16.mxu0 %vm1742_vm0, %v1741_v0 }
  0x35   : > { %1619 = vmatprep.mubr.msk.bf16.mxu1 %vm1742_vm0, %v1741_v0 }
  0xee   : > { %v406_v57 = vpop.f32.mrb[0].mxu0 }
  0xef   : > { %v742_v59 = vmul.f32 0.35355338, %v406_v57  ;;  %v453_v60 = vpop.f32.mrb[0].mxu1  ;;  %v1567_v61 = vpop.f32.mrb[1].mxu0 }
  0xf0   : > { %v744_v62 = vmul.f32 0.35355338, %v453_v60  ;;  %v409_v63 = vpop.f32.mrb[2].mxu0  ;;  %v1573_v1 = vpop.f32.mrb[1].mxu1 }
  0xf1   : > { %v743_v2 = vmul.f32 0.35355338, %v409_v63  ;;  %v1568_v3 = vpop.f32.mrb[3].mxu0  ;;  %v456_v4 = vpop.f32.mrb[2].mxu1  ;;  %v1883_v5 = vadd.f32 %v1880_v58, %v742_v59 }
  0xf2   : > { %v745_v6 = vmul.f32 0.35355338, %v456_v4  ;;  %v1574_v7 = vpop.f32.mrb[3].mxu1  ;;  %v1886_v8 = vadd.f32 %v1880_v58, %v744_v62 }
  0xf3   : > { %v782_v9 = vsel %vm781_vm2, %v1883_v5, -inf  ;;  %v1891_v10 = vadd.f32 %v1880_v58, %v743_v2 }
  0xf4   : > { %v789_v11 = vsel %vm781_vm2, %v1886_v8, -inf  ;;  %783 = vmax.xlane.f32.xlu0 %v782_v9  ;;  %v1896_v12 = vadd.f32 %v1880_v58, %v745_v6 }
  0xf5   : > { %790 = vmax.xlane.f32.xlu1 %v789_v11  ;;  %v786_v17 = vsel %vm785_vm3, %v1891_v10, -inf }
  0xf6   : > { %v500_v13 = vpop.f32.mrb[4].mxu0  ;;  %v792_v14 = vsel %vm785_vm3, %v1896_v12, -inf }
  0xf7   : > { %v746_v15 = vmul.f32 0.35355338, %v500_v13  ;;  %v1579_v16 = vpop.f32.mrb[5].mxu0  ;;  %v547_v18 = vpop.f32.mrb[4].mxu1 }
  0xf8   : > { %787 = vmax.xlane.f32.xlu0 %v786_v17  ;;  %v503_v19 = vpop.f32.mrb[6].mxu0  ;;  %v748_v20 = vmul.f32 0.35355338, %v547_v18  ;;  %v1585_v21 = vpop.f32.mrb[5].mxu1 }
  0xf9   : > { %793 = vmax.xlane.f32.xlu1 %v792_v14  ;;  %v747_v22 = vmul.f32 0.35355338, %v503_v19  ;;  %v1580_v23 = vpop.f32.mrb[7].mxu0  ;;  %v550_v24 = vpop.f32.mrb[6].mxu1  ;;  %v1903_v25 = vadd.f32 %v1880_v58, %v746_v15 }
  0xfa   : > { %v749_v26 = vmul.f32 0.35355338, %v550_v24  ;;  %v1586_v27 = vpop.f32.mrb[7].mxu1  ;;  %v1906_v28 = vadd.f32 %v1880_v58, %v748_v20 }
  0xfb   : > { %v795_v29 = vsel %vm781_vm2, %v1903_v25, -inf  ;;  %v1911_v30 = vadd.f32 %v1880_v58, %v747_v22 }
  0xfc   : > { %796 = vmax.xlane.f32.xlu0 %v795_v29  ;;  %v1914_v31 = vadd.f32 %v1880_v58, %v749_v26  ;;  %v801_v33 = vsel %vm781_vm2, %v1906_v28, -inf }
  0xfd   : > { %v798_v32 = vsel %vm785_vm3, %v1911_v30, -inf }
  0xfe   : > { %799 = vmax.xlane.f32.xlu1 %v798_v32  ;;  %v594_v34 = vpop.f32.mrb[8].mxu0  ;;  %v804_v38 = vsel %vm785_vm3, %v1914_v31, -inf }
  0xff   : > { %v750_v35 = vmul.f32 0.35355338, %v594_v34  ;;  %v1591_v36 = vpop.f32.mrb[9].mxu0  ;;  %v641_v37 = vpop.f32.mrb[8].mxu1 }
 0x100   : > { %802 = vmax.xlane.f32.xlu0 %v801_v33  ;;  %v597_v39 = vpop.f32.mrb[10].mxu0  ;;  %v752_v40 = vmul.f32 0.35355338, %v641_v37  ;;  %v1597_v41 = vpop.f32.mrb[9].mxu1 }
 0x101   : > { %v751_v42 = vmul.f32 0.35355338, %v597_v39  ;;  %v1592_v43 = vpop.f32.mrb[11].mxu0  ;;  %v644_v44 = vpop.f32.mrb[10].mxu1  ;;  %v1923_v45 = vadd.f32 %v1880_v58, %v750_v35 }
 0x102   : > { %805 = vmax.xlane.f32.xlu1 %v804_v38  ;;  %v753_v46 = vmul.f32 0.35355338, %v644_v44  ;;  %v1598_v47 = vpop.f32.mrb[11].mxu1  ;;  %v1926_v48 = vadd.f32 %v1880_v58, %v752_v40 }
 0x103   : > { %v807_v49 = vsel %vm781_vm2, %v1923_v45, -inf  ;;  %v1931_v50 = vadd.f32 %v1880_v58, %v751_v42 }
 0x104   : > { %808 = vmax.xlane.f32.xlu0 %v807_v49  ;;  %v1934_v51 = vadd.f32 %v1880_v58, %v753_v46  ;;  %v813_v53 = vsel %vm781_vm2, %v1926_v48, -inf }
 0x105   : > { %v810_v52 = vsel %vm785_vm3, %v1931_v50, -inf }
 0x106   : > { %811 = vmax.xlane.f32.xlu1 %v810_v52  ;;  %v688_v54 = vpop.f32.mrb[12].mxu0  ;;  %v816_v59 = vsel %vm785_vm3, %v1934_v51, -inf }
 0x107   : > { %v754_v55 = vmul.f32 0.35355338, %v688_v54  ;;  %v1603_v56 = vpop.f32.mrb[13].mxu0  ;;  %v735_v57 = vpop.f32.mrb[12].mxu1 }
 0x108   : > { %814 = vmax.xlane.f32.xlu0 %v813_v53  ;;  %v691_v60 = vpop.f32.mrb[14].mxu0  ;;  %v756_v61 = vmul.f32 0.35355338, %v735_v57  ;;  %v1609_v62 = vpop.f32.mrb[13].mxu1 }
 0x109   : > { %v755_v63 = vmul.f32 0.35355338, %v691_v60  ;;  %v1604_v1 = vpop.f32.mrb[15].mxu0  ;;  %v738_v2 = vpop.f32.mrb[14].mxu1  ;;  %v1943_v3 = vadd.f32 %v1880_v58, %v754_v55 }
 0x10a   : > { %817 = vmax.xlane.f32.xlu1 %v816_v59  ;;  %v757_v4 = vmul.f32 0.35355338, %v738_v2  ;;  %v1610_v6 = vpop.f32.mrb[15].mxu1  ;;  %v1946_v7 = vadd.f32 %v1880_v58, %v756_v61 }
 0x10b   : > { %v819_v9 = vsel %vm781_vm2, %v1943_v3, -inf  ;;  %v1951_v11 = vadd.f32 %v1880_v58, %v755_v63 }
 0x10c   : > { %820 = vmax.xlane.f32.xlu0 %v819_v9  ;;  %v1954_v13 = vadd.f32 %v1880_v58, %v757_v4  ;;  %v825_v15 = vsel %vm781_vm2, %v1946_v7, -inf }
 0x10d   : > { %v822_v14 = vsel %vm785_vm3, %v1951_v11, -inf }
 0x10e   : > { %823 = vmax.xlane.f32.xlu1 %v822_v14  ;;  %v828_v16 = vsel %vm785_vm3, %v1954_v13, -inf }
 0x110   : > { %826 = vmax.xlane.f32.xlu0 %v825_v15 }
 0x112   : > { %829 = vmax.xlane.f32.xlu1 %v828_v16 }
 0x181   : > { %v784_v17 = vpop.xlane.xlu0 %783 }
 0x182   : > { %v791_v18 = vpop.xlane.xlu1 %790  ;;  %v831_v19 = vsub.f32 %v1883_v5, %v784_v17 }
 0x183   : > { %v833_v20 = vsub.f32 %v1886_v8, %v791_v18 }
 0x184   : > { %v847_v58 = vmul.f32 1.442695, %v831_v19 }
 0x185   : > { %v851_v21 = vmul.f32 1.442695, %v833_v20  ;;  %v788_v22 = vpop.xlane.xlu0 %787 }
 0x186   : > { %1669 = vpow2.f32 %v847_v58  ;;  %v794_v23 = vpop.xlane.xlu1 %793  ;;  %v832_v24 = vsub.f32 %v1891_v10, %v788_v22 }
 0x187   : > { %v834_v26 = vsub.f32 %v1896_v12, %v794_v23  ;;  %1671 = vpow2.f32 %v851_v21 }
 0x188   : > { %v849_v27 = vmul.f32 1.442695, %v832_v24 }
 0x189   : > { %v853_v29 = vmul.f32 1.442695, %v834_v26  ;;  %v797_v32 = vpop.xlane.xlu0 %796 }
 0x18a   : > { %1673 = vpow2.f32 %v849_v27  ;;  %v835_v33 = vsub.f32 %v1903_v25, %v797_v32 }
 0x18b   : > { %v800_v34 = vpop.xlane.xlu1 %799  ;;  %1675 = vpow2.f32 %v853_v29 }
 0x18c   : > { %v855_v5 = vmul.f32 1.442695, %v835_v33  ;;  %v836_v8 = vsub.f32 %v1911_v30, %v800_v34 }
 0x18d   : > { %v803_v35 = vpop.xlane.xlu0 %802 }
 0x18e   : > { %1677 = vpow2.f32 %v855_v5  ;;  %v857_v36 = vmul.f32 1.442695, %v836_v8  ;;  %v837_v37 = vsub.f32 %v1906_v28, %v803_v35  ;;  %v341_v8 = vld [vmem:[%s2042_s7] sm:$0xff]  ;;  %v342_v35 = vld [vmem:[%s2042_s7 + $0x8] sm:$0xff] }
 0x18f   : > { %v806_v10 = vpop.xlane.xlu1 %805 }
 0x190   : > { %v1969_v38 = vpop.eup %1669  ;;  %1679 = vpow2.f32 %v857_v36  ;;  %v859_v12 = vmul.f32 1.442695, %v837_v37  ;;  %v838_v39 = vsub.f32 %v1914_v31, %v806_v10  ;;  %v357_v36 = vpack.c.bf16 %v342_v35, %v341_v8  ;;  %v343_v10 = vld [vmem:[%s2042_s7 + $0x10] sm:$0xff] }
 0x191   : > { %v809_v40 = vpop.xlane.xlu0 %808  ;;  %v879_v25 = vsel %vm781_vm2, %v1969_v38, 0.0  ;;  %v1974_v41 = vpop.eup %1671 }
 0x192   : > { %1681 = vpow2.f32 %v859_v12  ;;  %v861_v30 = vmul.f32 1.442695, %v838_v39  ;;  %v839_v42 = vsub.f32 %v1923_v45, %v809_v40  ;;  %880 = vadd.xlane.f32.xlu0 %v879_v25  ;;  %v885_v31 = vsel %vm781_vm2, %v1974_v41, 0.0  ;;  %1612 = vmatpush3.bf16.msra.mxu0 %v357_v36  ;;  %v344_v12 = vld [vmem:[%s2042_s7 + $0x18] sm:$0xff] }
 0x193   : > { %v812_v43 = vpop.xlane.xlu1 %811  ;;  %1623 = vmatprep.subr.bf16.mxu0 %v1741_v0  ;;  %v358_v39 = vpack.c.bf16 %v344_v12, %v343_v10 }
 0x194   : > { %v1977_v28 = vpop.eup %1673  ;;  %1683 = vpow2.f32 %v861_v30  ;;  %v863_v44 = vmul.f32 1.442695, %v839_v42  ;;  %v840_v46 = vsub.f32 %v1931_v50, %v812_v43 }
 0x195   : > { %v815_v47 = vpop.xlane.xlu0 %814  ;;  %v882_v49 = vsel %vm785_vm3, %v1977_v28, 0.0  ;;  %v1984_v52 = vpop.eup %1675  ;;  %1618 = vmatpush3.bf16.msra.mxu1 %v358_v39 }
 0x196   : > { %1685 = vpow2.f32 %v863_v44  ;;  %v865_v53 = vmul.f32 1.442695, %v840_v46  ;;  %v841_v45 = vsub.f32 %v1926_v48, %v815_v47  ;;  %886 = vadd.xlane.f32.xlu0 %v885_v31  ;;  %883 = vadd.xlane.f32.xlu1 %v882_v49  ;;  %v888_v60 = vsel %vm785_vm3, %v1984_v52, 0.0  ;;  %v345_v31 = vld [vmem:[%s2042_s7 + $0x20] sm:$0xff]  ;;  %v346_v49 = vld [vmem:[%s2042_s7 + $0x28] sm:$0xff] }
 0x197   : > { %v818_v54 = vpop.xlane.xlu1 %817  ;;  %1629 = vmatprep.subr.bf16.mxu1 %v1741_v0 }
 0x198   : > { %v1987_v55 = vpop.eup %1677  ;;  %1687 = vpow2.f32 %v865_v53  ;;  %v867_v50 = vmul.f32 1.442695, %v841_v45  ;;  %v842_v56 = vsub.f32 %v1934_v51, %v818_v54 }
 0x199   : > { %v821_v57 = vpop.xlane.xlu0 %820  ;;  %v891_v59 = vsel %vm781_vm2, %v1987_v55, 0.0 }
 0x19a   : > { %v1994_v61 = vpop.eup %1679  ;;  %1689 = vpow2.f32 %v867_v50  ;;  %v869_v48 = vmul.f32 1.442695, %v842_v56  ;;  %v843_v62 = vsub.f32 %v1943_v3, %v821_v57  ;;  %892 = vadd.xlane.f32.xlu0 %v891_v59  ;;  %889 = vadd.xlane.f32.xlu1 %v888_v60  ;;  %v359_v59 = vpack.c.bf16 %v346_v49, %v345_v31 }
 0x19b   : > { %v824_v63 = vpop.xlane.xlu1 %823  ;;  %v894_v9 = vsel %vm785_vm3, %v1994_v61, 0.0 }
 0x19c   : > { %v1997_v1 = vpop.eup %1681  ;;  %1691 = vpow2.f32 %v869_v48  ;;  %v871_v51 = vmul.f32 1.442695, %v843_v62  ;;  %v844_v2 = vsub.f32 %v1951_v11, %v824_v63  ;;  %v347_v48 = vld [vmem:[%s2042_s7 + $0x30] sm:$0xff]  ;;  %v348_v62 = vld [vmem:[%s2042_s7 + $0x38] sm:$0xff] }
 0x19d   : > { %v827_v4 = vpop.xlane.xlu0 %826  ;;  %v897_v6 = vsel %vm781_vm2, %v1997_v1, 0.0 }
 0x19e   : > { %v2004_v14 = vpop.eup %1683  ;;  %1693 = vpow2.f32 %v871_v51  ;;  %v873_v3 = vmul.f32 1.442695, %v844_v2  ;;  %v845_v15 = vsub.f32 %v1946_v7, %v827_v4  ;;  %898 = vadd.xlane.f32.xlu0 %v897_v6  ;;  %895 = vadd.xlane.f32.xlu1 %v894_v9  ;;  %v360_v6 = vpack.c.bf16 %v348_v62, %v347_v48 }
 0x19f   : > { %v830_v16 = vpop.xlane.xlu1 %829  ;;  %v900_v20 = vsel %vm785_vm3, %v2004_v14, 0.0 }
 0x1a0   : > { %v2007_v17 = vpop.eup %1685  ;;  %1695 = vpow2.f32 %v873_v3  ;;  %v875_v11 = vmul.f32 1.442695, %v845_v15  ;;  %v846_v18 = vsub.f32 %v1954_v13, %v830_v16  ;;  %v349_v3 = vld [vmem:[%s2042_s7 + $0x40] sm:$0xff]  ;;  %v350_v15 = vld [vmem:[%s2042_s7 + $0x48] sm:$0xff] }
 0x1a1   : > { %v903_v19 = vsel %vm781_vm2, %v2007_v17, 0.0 }
 0x1a2   : > { %v2014_v58 = vpop.eup %1687  ;;  %1697 = vpow2.f32 %v875_v11  ;;  %v877_v21 = vmul.f32 1.442695, %v846_v18  ;;  %904 = vadd.xlane.f32.xlu0 %v903_v19  ;;  %901 = vadd.xlane.f32.xlu1 %v900_v20  ;;  %v361_v20 = vpack.c.bf16 %v350_v15, %v349_v3 }
 0x1a3   : > { %v906_v13 = vsel %vm785_vm3, %v2014_v58, 0.0 }
 0x1a4   : > { %v2016_v7 = vpop.eup %1689  ;;  %1699 = vpow2.f32 %v877_v21  ;;  %v351_v21 = vld [vmem:[%s2042_s7 + $0x50] sm:$0xff] }
 0x1a5   : > { %v909_v22 = vsel %vm781_vm2, %v2016_v7, 0.0 }
 0x1a6   : > { %v2022_v23 = vpop.eup %1691  ;;  %910 = vadd.xlane.f32.xlu0 %v909_v22  ;;  %907 = vadd.xlane.f32.xlu1 %v906_v13  ;;  %v352_v22 = vld [vmem:[%s2042_s7 + $0x58] sm:$0xff] }
 0x1a7   : > { %v912_v27 = vsel %vm785_vm3, %v2022_v23, 0.0  ;;  %v362_v35 = vpack.c.bf16 %v352_v22, %v351_v21 }
 0x1a8   : > { %v2024_v24 = vpop.eup %1693 }
 0x1a9   : > { %v915_v26 = vsel %vm781_vm2, %v2024_v24, 0.0 }
 0x1aa   : > { %v2030_v29 = vpop.eup %1695  ;;  %916 = vadd.xlane.f32.xlu0 %v915_v26  ;;  %913 = vadd.xlane.f32.xlu1 %v912_v27 }
 0x1ab   : > { %v918_v34 = vsel %vm785_vm3, %v2030_v29, 0.0 }
 0x1ac   : > { %v2032_v32 = vpop.eup %1697 }
 0x1ad   : > { %v921_v33 = vsel %vm781_vm2, %v2032_v32, 0.0 }
 0x1ae   : > { %v2044_v5 = vpop.eup %1699  ;;  %922 = vadd.xlane.f32.xlu0 %v921_v33  ;;  %919 = vadd.xlane.f32.xlu1 %v918_v34 }
 0x1af   : > { %v924_v37 = vsel %vm785_vm3, %v2044_v5, 0.0 }
 0x1b2   : > { %925 = vadd.xlane.f32.xlu1 %v924_v37 }
 0x21f   : > { %v881_v40 = vpop.xlane.xlu0 %880 }
 0x220   : > { %1701 = vrcp.f32 %v881_v40  ;;  %v354_v40 = vld [vmem:[%s2042_s7 + $0x68] sm:$0xff] }
 0x223   : > { %v887_v25 = vpop.xlane.xlu0 %886  ;;  %v884_v30 = vpop.xlane.xlu1 %883 }
 0x224   : > { %1703 = vrcp.f32 %v884_v30 }
 0x225   : > { %1705 = vrcp.f32 %v887_v25 }
 0x227   : > { %v893_v42 = vpop.xlane.xlu0 %892  ;;  %v890_v43 = vpop.xlane.xlu1 %889 }
 0x228   : > { %1707 = vrcp.f32 %v890_v43 }
 0x229   : > { %1709 = vrcp.f32 %v893_v42 }
 0x22a   : > { %v1702_v47 = vpop.eup %1701 }
 0x22b   : > { %v899_v44 = vpop.xlane.xlu0 %898  ;;  %v896_v46 = vpop.xlane.xlu1 %895  ;;  %v943_v50 = vmul.f32 %v1702_v47, %v1969_v38 }
 0x22c   : > { %1711 = vrcp.f32 %v896_v46 }
 0x22d   : > { %1713 = vrcp.f32 %v899_v44  ;;  %v1336_v36 = vsel %vm781_vm2, %v943_v50, 0.0 }
 0x22e   : > { %v1704_v53 = vpop.eup %1703 }
 0x22f   : > { %v905_v45 = vpop.xlane.xlu0 %904  ;;  %v902_v54 = vpop.xlane.xlu1 %901  ;;  %v2058_v56 = vmul.f32 %v1704_v53, %v1977_v28 }
 0x230   : > { %1715 = vrcp.f32 %v905_v45  ;;  %v1706_v57 = vpop.eup %1705 }
 0x231   : > { %1717 = vrcp.f32 %v902_v54  ;;  %v959_v60 = vpack.c.bf16 %v2058_v56, %v943_v50  ;;  %v945_v4 = vmul.f32 %v1706_v57, %v1974_v41  ;;  %v1351_v47 = vsel %vm785_vm3, %v2058_v56, 0.0  ;;  %v356_v57 = vld [vmem:[%s2042_s7 + $0x78] sm:$0xff] }
 0x232   : > { %v1708_v63 = vpop.eup %1707 }
 0x233   : > { %v911_v51 = vpop.xlane.xlu0 %910  ;;  %v908_v2 = vpop.xlane.xlu1 %907  ;;  %v946_v38 = vmul.f32 %v1708_v63, %v1984_v52  ;;  %1614 = vmatmul.mubr.msk.bf16.vlgmr.msra.gmra.mrb[16].mxu0 %vm781_vm2, %v959_v60 }
 0x234   : > { %1719 = vrcp.f32 %v911_v51  ;;  %v1710_v28 = vpop.eup %1709  ;;  %1624 = vmatpush3.bf16.msra.mxu0 %v359_v59  ;;  %1625 = vmatprep.mubr.msk.bf16.mxu0 %vm1742_vm0, %v1741_v0 }
 0x235   : > { %1721 = vrcp.f32 %v908_v2  ;;  %v960_v9 = vpack.c.bf16 %v946_v38, %v945_v4  ;;  %1635 = vmatprep.subr.bf16.mxu0 %v1741_v0  ;;  %v947_v18 = vmul.f32 %v1710_v28, %v1987_v55  ;;  %v1337_v55 = vsel %vm781_vm2, %v945_v4, 0.0 }
 0x236   : > { %v1712_v41 = vpop.eup %1711  ;;  %v1338_v12 = vadd.f32 %v1337_v55, %v1336_v36  ;;  %v1352_v30 = vsel %vm785_vm3, %v946_v38, 0.0 }
 0x237   : > { %v917_v16 = vpop.xlane.xlu0 %916  ;;  %v914_v52 = vpop.xlane.xlu1 %913  ;;  %v948_v19 = vmul.f32 %v1712_v41, %v1994_v61  ;;  %1620 = vmatmul.mubr.msk.bf16.vlgmr.msra.gmra.mrb[16].mxu1 %vm781_vm2, %v960_v9  ;;  %v1339_v37 = vsel %vm781_vm2, %v947_v18, 0.0  ;;  %v1353_v45 = vadd.f32 %v1352_v30, %v1351_v47 }
 0x238   : > { %v1714_v11 = vpop.eup %1713  ;;  %1723 = vrcp.f32 %v917_v16  ;;  %1630 = vmatpush3.bf16.msra.mxu1 %v360_v6  ;;  %1631 = vmatprep.mubr.msk.bf16.mxu1 %vm1742_vm0, %v1741_v0  ;;  %v1340_v44 = vadd.f32 %v1339_v37, %v1338_v12 }
 0x239   : > { %1725 = vrcp.f32 %v914_v52  ;;  %v961_v26 = vpack.c.bf16 %v948_v19, %v947_v18  ;;  %1641 = vmatprep.subr.bf16.mxu1 %v1741_v0  ;;  %v949_v61 = vmul.f32 %v1714_v11, %v1997_v1  ;;  %v1354_v31 = vsel %vm785_vm3, %v948_v19, 0.0 }
 0x23a   : > { %v1716_v13 = vpop.eup %1715  ;;  %v1355_v62 = vadd.f32 %v1354_v31, %v1353_v45 }
 0x23b   : > { %v1718_v27 = vpop.eup %1717  ;;  %v923_v33 = vpop.xlane.xlu0 %922  ;;  %1626 = vmatmul.mubr.msk.bf16.vlgmr.msra.gmra.mrb[20].mxu0 %vm781_vm2, %v961_v26  ;;  %v951_v10 = vmul.f32 %v1716_v13, %v2007_v17  ;;  %v1341_v42 = vsel %vm781_vm2, %v949_v61, 0.0 }
 0x23c   : > { %v920_v34 = vpop.xlane.xlu1 %919  ;;  %v950_v8 = vmul.f32 %v1718_v27, %v2004_v14  ;;  %1727 = vrcp.f32 %v923_v33  ;;  %1636 = vmatpush3.bf16.msra.mxu0 %v361_v20  ;;  %1637 = vmatprep.mubr.msk.bf16.mxu0 %vm1742_vm0, %v1741_v0  ;;  %v353_v14 = vld [vmem:[%s2042_s7 + $0x60] sm:$0xff]  ;;  %v1342_v54 = vadd.f32 %v1341_v42, %v1340_v44 }
 0x23d   : > { %1729 = vrcp.f32 %v920_v34  ;;  %1647 = vmatprep.subr.bf16.mxu0 %v1741_v0  ;;  %v1343_v49 = vsel %vm781_vm2, %v951_v10, 0.0 }
 0x23e   : > { %v1720_v1 = vpop.eup %1719  ;;  %v962_v39 = vpack.c.bf16 %v950_v8, %v949_v61  ;;  %v1356_v56 = vsel %vm785_vm3, %v950_v8, 0.0  ;;  %v1344_v63 = vadd.f32 %v1343_v49, %v1342_v54 }
 0x23f   : > { %v1722_v25 = vpop.eup %1721  ;;  %v953_v43 = vmul.f32 %v1720_v1, %v2016_v7  ;;  %v363_v7 = vpack.c.bf16 %v354_v40, %v353_v14  ;;  %v1357_v6 = vadd.f32 %v1356_v56, %v1355_v62 }
 0x240   : > { %v926_v17 = vpop.xlane.xlu1 %925  ;;  %v952_v46 = vmul.f32 %v1722_v25, %v2014_v58  ;;  %1632 = vmatmul.mubr.msk.bf16.vlgmr.msra.gmra.mrb[20].mxu1 %vm781_vm2, %v962_v39  ;;  %v355_v58 = vld [vmem:[%s2042_s7 + $0x70] sm:$0xff] }
 0x241   : > { %1731 = vrcp.f32 %v926_v17  ;;  %1642 = vmatpush3.bf16.msra.mxu1 %v362_v35  ;;  %1643 = vmatprep.mubr.msk.bf16.mxu1 %vm1742_vm0, %v1741_v0  ;;  %v1345_v60 = vsel %vm781_vm2, %v953_v43, 0.0  ;;  %v364_v38 = vpack.c.bf16 %v356_v57, %v355_v58 }
 0x242   : > { %v1724_v53 = vpop.eup %1723  ;;  %v963_v50 = vpack.c.bf16 %v952_v46, %v951_v10  ;;  %1653 = vmatprep.subr.bf16.mxu1 %v1741_v0  ;;  %v1358_v2 = vsel %vm785_vm3, %v952_v46, 0.0  ;;  %v1346_v9 = vadd.f32 %v1345_v60, %v1344_v63 }
 0x243   : > { %v1726_v59 = vpop.eup %1725  ;;  %v955_v48 = vmul.f32 %v1724_v53, %v2024_v24  ;;  %v1359_v41 = vadd.f32 %v1358_v2, %v1357_v6 }
 0x244   : > { %v954_v51 = vmul.f32 %v1726_v59, %v2022_v23  ;;  %1638 = vmatmul.mubr.msk.bf16.vlgmr.msra.gmra.mrb[24].mxu0 %vm781_vm2, %v963_v50 }
 0x245   : > { %v1347_v4 = vsel %vm781_vm2, %v955_v48, 0.0  ;;  %1648 = vmatpush3.bf16.msra.mxu0 %v363_v7  ;;  %1649 = vmatprep.mubr.msk.bf16.mxu0 %vm1742_vm0, %v1741_v0 }
 0x246   : > { %v1728_v28 = vpop.eup %1727  ;;  %v964_v24 = vpack.c.bf16 %v954_v51, %v953_v43  ;;  %v1360_v15 = vsel %vm785_vm3, %v954_v51, 0.0  ;;  %v1348_v16 = vadd.f32 %v1347_v4, %v1346_v9 }
 0x247   : > { %v1730_v3 = vpop.eup %1729  ;;  %v957_v23 = vmul.f32 %v1728_v28, %v2032_v32  ;;  %v1361_v19 = vadd.f32 %v1360_v15, %v1359_v41 }
 0x248   : > { %v956_v52 = vmul.f32 %v1730_v3, %v2030_v29  ;;  %1644 = vmatmul.mubr.msk.bf16.vlgmr.msra.gmra.mrb[24].mxu1 %vm781_vm2, %v964_v24 }
 0x249   : > { %v1349_v11 = vsel %vm781_vm2, %v957_v23, 0.0  ;;  %1654 = vmatpush3.bf16.msra.mxu1 %v364_v38  ;;  %1655 = vmatprep.mubr.msk.bf16.mxu1 %vm1742_vm0, %v1741_v0 }
 0x24a   : > { %v1350_v20 = vadd.f32 %v1349_v11, %v1348_v16  ;;  %v1362_v21 = vsel %vm785_vm3, %v956_v52, 0.0  ;;  %v965_v32 = vpack.c.bf16 %v956_v52, %v955_v48 }
 0x24b   : > { %v1732_v18 = vpop.eup %1731  ;;  %v1363_v13 = vadd.f32 %v1362_v21, %v1361_v19 }
 0x24c   : > { %v958_v29 = vmul.f32 %v1732_v18, %v2044_v5  ;;  %v1367_v22 = vmul.f32 0.125, %v1350_v20  ;;  %1650 = vmatmul.mubr.msk.bf16.vlgmr.msra.gmra.mrb[28].mxu0 %vm781_vm2, %v965_v32 }
 0x24e   : > { %v1364_v26 = vsel %vm785_vm3, %v958_v29, 0.0  ;;  %v966_v0 = vpack.c.bf16 %v958_v29, %v957_v23  ;;  %1369 = vst.msk [vmem:[%s291_s11] sm:$0xff] %vm781_vm2, %v1367_v22 }
 0x24f   : > { %v1365_v27 = vadd.f32 %v1364_v26, %v1363_v13 }
 0x250   : > { %1656 = vmatmul.mubr.msk.bf16.vlgmr.msra.gmra.mrb[28].mxu1 %vm781_vm2, %v966_v0 }
 0x251   : > { %v1368_v55 = vmul.f32 0.125, %v1365_v27 }
 0x253   : > { %1370 = vst.msk [vmem:[%s291_s11 + $0x8] sm:$0x3] %vm785_vm3, %v1368_v55 }
 0x306   : > { %v1004_v5 = vpop.f32.mrb[16].mxu0 }
 0x307   : > { %1319 = vst.msk [vmem:[%s2136_s14] sm:$0xff] %vm365_vm1, %v1004_v5  ;;  %v1615_v61 = vpop.f32.mrb[17].mxu0 }
 0x308   : > { %v1007_v33 = vpop.f32.mrb[18].mxu0 }
 0x309   : > { %1321 = vst.msk [vmem:[%s2136_s14 + $0x8] sm:$0x3] %vm1320_vm4, %v1007_v33  ;;  %v1616_v34 = vpop.f32.mrb[19].mxu0 }
 0x30a   : > { %v1048_v8 = vpop.f32.mrb[16].mxu1 }
 0x30b   : > { %1322 = vst.msk [vmem:[%s2136_s14 + $0x10] sm:$0xff] %vm365_vm1, %v1048_v8  ;;  %v1621_v35 = vpop.f32.mrb[17].mxu1 }
 0x30c   : > { %v1051_v36 = vpop.f32.mrb[18].mxu1 }
 0x30d   : > { %1323 = vst.msk [vmem:[%s2136_s14 + $0x18] sm:$0x3] %vm1320_vm4, %v1051_v36  ;;  %v1622_v37 = vpop.f32.mrb[19].mxu1 }
 0x30e   : > { %v1092_v10 = vpop.f32.mrb[20].mxu0 }
 0x30f   : > { %1324 = vst.msk [vmem:[%s2136_s14 + $0x20] sm:$0xff] %vm365_vm1, %v1092_v10  ;;  %v1627_v1 = vpop.f32.mrb[21].mxu0 }
 0x310   : > { %v1095_v12 = vpop.f32.mrb[22].mxu0 }
 0x311   : > { %1325 = vst.msk [vmem:[%s2136_s14 + $0x28] sm:$0x3] %vm1320_vm4, %v1095_v12  ;;  %v1628_v39 = vpop.f32.mrb[23].mxu0 }
 0x313   : > { %v1136_v14 = vpop.f32.mrb[20].mxu1 }
 0x314   : > { %1326 = vst.msk [vmem:[%s2136_s14 + $0x30] sm:$0xff] %vm365_vm1, %v1136_v14  ;;  %v1633_v40 = vpop.f32.mrb[21].mxu1 }
 0x315   : > { %v1139_v25 = vpop.f32.mrb[22].mxu1 }
 0x316   : > { %1327 = vst.msk [vmem:[%s2136_s14 + $0x38] sm:$0x3] %vm1320_vm4, %v1139_v25  ;;  %v1634_v30 = vpop.f32.mrb[23].mxu1 }
 0x317   : > { %v1180_v42 = vpop.f32.mrb[24].mxu0 }
 0x318   : > { %1328 = vst.msk [vmem:[%s2136_s14 + $0x40] sm:$0xff] %vm365_vm1, %v1180_v42  ;;  %v1639_v43 = vpop.f32.mrb[25].mxu0 }
 0x319   : > { %v1183_v17 = vpop.f32.mrb[26].mxu0 }
 0x31a   : > { %1329 = vst.msk [vmem:[%s2136_s14 + $0x48] sm:$0x3] %vm1320_vm4, %v1183_v17  ;;  %v1640_v44 = vpop.f32.mrb[27].mxu0 }
 0x31b   : > { %v1224_v46 = vpop.f32.mrb[24].mxu1 }
 0x31c   : > { %1330 = vst.msk [vmem:[%s2136_s14 + $0x50] sm:$0xff] %vm365_vm1, %v1224_v46  ;;  %v1645_v47 = vpop.f32.mrb[25].mxu1 }
 0x31d   : > { %v1227_v31 = vpop.f32.mrb[26].mxu1 }
 0x31e   : > { %1331 = vst.msk [vmem:[%s2136_s14 + $0x58] sm:$0x3] %vm1320_vm4, %v1227_v31  ;;  %v1646_v49 = vpop.f32.mrb[27].mxu1 }
 0x31f   : > { %v1268_v7 = vpop.f32.mrb[28].mxu0 }
 0x320   : > { %1332 = vst.msk [vmem:[%s2136_s14 + $0x60] sm:$0xff] %vm365_vm1, %v1268_v7  ;;  %v1651_v53 = vpop.f32.mrb[29].mxu0 }
 0x321   : > { %v1271_v45 = vpop.f32.mrb[30].mxu0 }
 0x322   : > { %1333 = vst.msk [vmem:[%s2136_s14 + $0x68] sm:$0x3] %vm1320_vm4, %v1271_v45  ;;  %v1652_v54 = vpop.f32.mrb[31].mxu0 }
 0x323   : > { %v1312_v50 = vpop.f32.mrb[28].mxu1 }
 0x324   : > { %1334 = vst.msk [vmem:[%s2136_s14 + $0x70] sm:$0xff] %vm365_vm1, %v1312_v50  ;;  %v1657_v58 = vpop.f32.mrb[29].mxu1 }
 0x325   : > { %v1315_v57 = vpop.f32.mrb[30].mxu1 }
 0x326   : > { %1335 = vst.msk [vmem:[%s2136_s14 + $0x78] sm:$0x3] %vm1320_vm4, %v1315_v57  ;;  %v1658_v59 = vpop.f32.mrb[31].mxu1 }
 0x327 PF: > { %s16_s18 = sadd.s32 1, %s1739_s18  }
 0x328   : > { %p13_p4 = scmp.ge.s32.totalorder %s16_s18, 4  }
 0x32a   :  { %15 = sbr.rel (!%p13_p4) target bundleno = 1 (0x1), region = 87 }

</bundles_post_ra>
